<compile_context>
chip_gen: v5e
topology: v5e:2x2
jax: 0.10.0
libtpu: 0.0.40
codegen_flags: <defaults>
</compile_context>

<pallas_src>
import numpy as np
import jax
import jax.numpy as jnp
from jax import lax
from jax.experimental import pallas as pl
from jax.experimental.pallas import tpu as pltpu

LEAKY_SLOPE = 0.01   # nn.LeakyReLU() default negative_slope
BN_EPS = 1e-5        # nn.BatchNorm2d default eps


def down_block_forward(x_nchw, params):
    """x_nchw: (N, Cin, H, W) -> (N, Cout, H//2, W//2)  (matches PyTorch eval)."""
    w1, s1, b1, w2, s2, b2 = params          # w*: (9*C_in_layer, Cout) matrices
    N, Cin, H, W = x_nchw.shape
    Cout = w1.shape[-1]
    assert H % 2 == 0 and W % 2 == 0, "even spatial dims expected"
    assert w1.shape[0] == 9 * Cin and w2.shape[0] == 9 * Cout

    H2, W2 = H // 2, W // 2
    PW = ((W2 + 2 + 7) // 8) * 8             # padded pooled row width (mult. of 8)
    PH = H2 + 3                              # 1 top + 2 bottom zero pad rows
    S = PH * PW                              # flat padded pooled image length
    M = H2 * PW                              # flat extended-output slab length

    # ----- wrapper-side layout prep (pure XLA data movement, once per call) -----
    # Pad by 2 on each side so pool(pad(x)) == zero-pad-1(pool(x)); deinterleave
    # the 2x2 pooling window into a leading dim of 4; flatten spatial.
    x_nhwc = jnp.transpose(x_nchw, (0, 2, 3, 1)).astype(jnp.float32)
    x_pad = jnp.pad(x_nhwc, ((0, 0), (2, 2 * PH - H - 2),
                             (2, 2 * PW - W - 2), (0, 0)))
    x_in = (x_pad.reshape(N, PH, 2, PW, 2, Cin)
            .transpose(0, 2, 4, 1, 3, 5)
            .reshape(N, 4, S, Cin))

    # valid-output-column mask on the PW-wide extended rows (w' < W2)
    mask = jnp.asarray((np.arange(M) % PW < W2).astype(np.float32)).reshape(M, 1)

    s1 = s1.reshape(1, Cout).astype(jnp.float32)
    b1 = b1.reshape(1, Cout).astype(jnp.float32)
    s2 = s2.reshape(1, Cout).astype(jnp.float32)
    b2 = b2.reshape(1, Cout).astype(jnp.float32)
    w1 = w1.astype(jnp.float32)
    w2 = w2.astype(jnp.float32)

    offs = tuple(dy * PW + dx for dy in range(3) for dx in range(3))

    def kernel(x_ref, mask_ref, w1_ref, s1_ref, b1_ref,
               w2_ref, s2_ref, b2_ref, o_ref, pool_ref, act_ref):
        # ---------- fused MaxPool2d(2): 3 vector maxes, no strided access ----------
        v = x_ref[...].reshape(4, S, Cin)
        pool_ref[...] = jnp.maximum(jnp.maximum(v[0], v[1]),
                                    jnp.maximum(v[2], v[3]))

        def conv3x3_bn_lrelu(src_ref, w_ref, s_ref, b_ref):
            # im2col: the 9 taps are 9 unit-stride shifted row-slices of the flat
            # zero-padded image, lane-concatenated -> ONE matmul with K = 9*C.
            patches = jnp.concatenate(
                [src_ref[o:o + M, :] for o in offs], axis=1)
            z = jnp.dot(patches, w_ref[...],
                        preferred_element_type=jnp.float32,
                        precision=lax.Precision.HIGHEST)
            # (bf16 cast of patches/weights is a one-line switch if desired)
            z = z * s_ref[...] + b_ref[...]     # conv bias + eval-mode BN (folded)
            return jnp.where(z > 0, z, LEAKY_SLOPE * z)   # LeakyReLU

        a1 = conv3x3_bn_lrelu(pool_ref, w1_ref, s1_ref, b1_ref)
        a1 = a1 * mask_ref[...]                 # zero out-of-image helper columns
        # Dropout: identity in eval mode.

        # Stage conv1 output as conv2's zero-padded input; only the thin
        # top/bottom pad rows get zeros (no full-buffer zero-fill).
        act_ref[0:PW + 1, :] = jnp.zeros((PW + 1, Cout), jnp.float32)
        act_ref[PW + 1:PW + 1 + M, :] = a1
        act_ref[PW + 1 + M:S, :] = jnp.zeros((S - PW - 1 - M, Cout), jnp.float32)

        a2 = conv3x3_bn_lrelu(act_ref, w2_ref, s2_ref, b2_ref)
        o_ref[...] = a2[None].astype(o_ref.dtype)

    flops = 2 * N * M * 9 * (Cin * Cout + Cout * Cout)
    bytes_accessed = 4 * (N * 4 * S * Cin + M + 9 * Cin * Cout
                          + 9 * Cout * Cout + 4 * Cout + N * M * Cout)

    out_flat = pl.pallas_call(
        kernel,
        out_shape=jax.ShapeDtypeStruct((N, M, Cout), jnp.float32),
        grid_spec=pltpu.PrefetchScalarGridSpec(
            num_scalar_prefetch=0,
            grid=(N,),
            in_specs=[
                pl.BlockSpec((1, 4, S, Cin), lambda n: (n, 0, 0, 0)),
                pl.BlockSpec((M, 1), lambda n: (0, 0)),
                pl.BlockSpec((9 * Cin, Cout), lambda n: (0, 0)),
                pl.BlockSpec((1, Cout), lambda n: (0, 0)),
                pl.BlockSpec((1, Cout), lambda n: (0, 0)),
                pl.BlockSpec((9 * Cout, Cout), lambda n: (0, 0)),
                pl.BlockSpec((1, Cout), lambda n: (0, 0)),
                pl.BlockSpec((1, Cout), lambda n: (0, 0)),
            ],
            out_specs=pl.BlockSpec((1, M, Cout), lambda n: (n, 0, 0)),
            scratch_shapes=[
                pltpu.VMEM((S, Cin), jnp.float32),    # flat padded pooled image
                pltpu.VMEM((S, Cout), jnp.float32),   # flat padded conv1 activations
            ],
        ),
        compiler_params=pltpu.CompilerParams(
            dimension_semantics=("parallel",),
            vmem_limit_bytes=64 * 1024 * 1024),
        cost_estimate=pl.CostEstimate(flops=flops, transcendentals=0,
                                      bytes_accessed=bytes_accessed),
    )(x_in, mask, w1, s1, b1, w2, s2, b2)

    out = out_flat.reshape(N, H2, PW, Cout)[:, :, :W2, :]
    return jnp.transpose(out, (0, 3, 1, 2))           # -> NCHW


# ---------------------- parameter construction ----------------------
def init_params(key, cin, cout):
    ks = jax.random.split(key, 12)

    def conv_bn(k, ci, co):
        return dict(
            w=0.1 * jax.random.normal(k[0], (co, ci, 3, 3), jnp.float32),  # OIHW
            b=0.1 * jax.random.normal(k[1], (co,), jnp.float32),
            gamma=1.0 + 0.1 * jax.random.normal(k[2], (co,), jnp.float32),
            beta=0.1 * jax.random.normal(k[3], (co,), jnp.float32),
            mean=0.1 * jax.random.normal(k[4], (co,), jnp.float32),
            var=jax.random.uniform(k[5], (co,), jnp.float32, 0.5, 1.5),
        )

    return conv_bn(ks[0:6], cin, cout), conv_bn(ks[6:12], cout, cout)


def fold_layer(l):
    """Fold conv bias + eval-mode BatchNorm into per-channel scale/bias and
    reshape the 3x3 weights to an im2col matrix (9*Cin, Cout)."""
    scale = l["gamma"] / jnp.sqrt(l["var"] + BN_EPS)
    bias = l["beta"] + scale * (l["b"] - l["mean"])
    w_hwio = jnp.transpose(l["w"], (2, 3, 1, 0))          # (3, 3, Cin, Cout)
    w_mat = w_hwio.reshape(9 * w_hwio.shape[2], w_hwio.shape[3])
    return w_mat, scale, bias


# --------------------------- pure-JAX reference ---------------------------
def ref_forward(x, l1, l2):
    N, C, H, W = x.shape
    p = jnp.max(x.reshape(N, C, H // 2, 2, W // 2, 2), axis=(3, 5))

    def conv_bn_lrelu(u, l):
        z = lax.conv_general_dilated(
            u, l["w"], (1, 1), "SAME",
            dimension_numbers=("NCHW", "OIHW", "NCHW"),
            precision=lax.Precision.HIGHEST)
        z = z + l["b"][None, :, None, None]
        z = (z - l["mean"][None, :, None, None]) / \
            jnp.sqrt(l["var"] + BN_EPS)[None, :, None, None]
        z = z * l["gamma"][None, :, None, None] + l["beta"][None, :, None, None]
        return jnp.where(z > 0, z, LEAKY_SLOPE * z)

    a1 = conv_bn_lrelu(p, l1)
    return conv_bn_lrelu(a1, l2)


if __name__ == "__main__":
    key = jax.random.PRNGKey(0)
    kx, kp = jax.random.split(key)

    N, Cin, Cout, H, W = 2, 4, 8, 16, 16
    x = jax.random.normal(kx, (N, Cin, H, W), jnp.float32)

    l1, l2 = init_params(kp, Cin, Cout)
    w1, s1, b1 = fold_layer(l1)
    w2, s2, b2 = fold_layer(l2)

    out = down_block_forward(x, (w1, s1, b1, w2, s2, b2))
    out = jax.block_until_ready(out)

    ref = ref_forward(x, l1, l2)
    np.testing.assert_allclose(np.asarray(out), np.asarray(ref),
                               rtol=2e-3, atol=2e-3)
    print("KERNEL_OK")
</pallas_src>

<mosaic_0001>
module attributes {stable_mosaic.version = 11 : i64} {
  func.func @kernel(%arg0: i32, %arg1: memref<1x4x176x4xf32, #tpu.memory_space<vmem>>, %arg2: memref<128x1xf32, #tpu.memory_space<vmem>>, %arg3: memref<36x8xf32, #tpu.memory_space<vmem>>, %arg4: memref<1x8xf32, #tpu.memory_space<vmem>>, %arg5: memref<1x8xf32, #tpu.memory_space<vmem>>, %arg6: memref<72x8xf32, #tpu.memory_space<vmem>>, %arg7: memref<1x8xf32, #tpu.memory_space<vmem>>, %arg8: memref<1x8xf32, #tpu.memory_space<vmem>>, %arg9: memref<1x128x8xf32, #tpu.memory_space<vmem>>, %arg10: memref<176x4xf32, #tpu.memory_space<vmem>>, %arg11: memref<176x8xf32, #tpu.memory_space<vmem>>) attributes {dimension_semantics = [#tpu.dimension_semantics<parallel>], iteration_bounds = array<i64: 2>, scalar_prefetch = 0 : i64, scratch_operands = 2 : i64, tpu.core_type = #tpu.core_type<tc>, window_params = [{transform_indices = @transform_0, window_bounds = array<i64: 1, 4, 176, 4>}, {pipeline_mode = #tpu.pipeline_mode<synchronous>, transform_indices = @transform_1, window_bounds = array<i64: 128, 1>}, {pipeline_mode = #tpu.pipeline_mode<synchronous>, transform_indices = @transform_2, window_bounds = array<i64: 36, 8>}, {pipeline_mode = #tpu.pipeline_mode<synchronous>, transform_indices = @transform_3, window_bounds = array<i64: 1, 8>}, {pipeline_mode = #tpu.pipeline_mode<synchronous>, transform_indices = @transform_4, window_bounds = array<i64: 1, 8>}, {pipeline_mode = #tpu.pipeline_mode<synchronous>, transform_indices = @transform_5, window_bounds = array<i64: 72, 8>}, {pipeline_mode = #tpu.pipeline_mode<synchronous>, transform_indices = @transform_6, window_bounds = array<i64: 1, 8>}, {pipeline_mode = #tpu.pipeline_mode<synchronous>, transform_indices = @transform_7, window_bounds = array<i64: 1, 8>}, {transform_indices = @transform_8, window_bounds = array<i64: 1, 128, 8>}]} {
    %c0 = arith.constant 0 : index
    %c0_0 = arith.constant 0 : index
    %c0_1 = arith.constant 0 : index
    %c0_2 = arith.constant 0 : index
    %0 = vector.load %arg1[%c0, %c0_0, %c0_1, %c0_2] : memref<1x4x176x4xf32, #tpu.memory_space<vmem>>, vector<1x4x176x4xf32>
    %1 = vector.shape_cast %0 : vector<1x4x176x4xf32> to vector<4x176x4xf32>
    %2 = vector.extract_strided_slice %1 {offsets = [0, 0, 0], sizes = [1, 176, 4], strides = [1, 1, 1]} : vector<4x176x4xf32> to vector<1x176x4xf32>
    %3 = vector.shape_cast %2 : vector<1x176x4xf32> to vector<176x4xf32>
    %4 = vector.extract_strided_slice %1 {offsets = [1, 0, 0], sizes = [1, 176, 4], strides = [1, 1, 1]} : vector<4x176x4xf32> to vector<1x176x4xf32>
    %5 = vector.shape_cast %4 : vector<1x176x4xf32> to vector<176x4xf32>
    %6 = arith.maximumf %3, %5 : vector<176x4xf32>
    %7 = vector.extract_strided_slice %1 {offsets = [2, 0, 0], sizes = [1, 176, 4], strides = [1, 1, 1]} : vector<4x176x4xf32> to vector<1x176x4xf32>
    %8 = vector.shape_cast %7 : vector<1x176x4xf32> to vector<176x4xf32>
    %9 = vector.extract_strided_slice %1 {offsets = [3, 0, 0], sizes = [1, 176, 4], strides = [1, 1, 1]} : vector<4x176x4xf32> to vector<1x176x4xf32>
    %10 = vector.shape_cast %9 : vector<1x176x4xf32> to vector<176x4xf32>
    %11 = arith.maximumf %8, %10 : vector<176x4xf32>
    %12 = arith.maximumf %6, %11 : vector<176x4xf32>
    %c0_3 = arith.constant 0 : index
    %c0_4 = arith.constant 0 : index
    %13 = vector.load %arg10[%c0_3, %c0_4] : memref<176x4xf32, #tpu.memory_space<vmem>>, vector<176x4xf32>
    tpu.vector_store %arg10[%c0_3, %c0_4], %12 {strides = array<i32>} : memref<176x4xf32, #tpu.memory_space<vmem>>, vector<176x4xf32>,
    %c0_5 = arith.constant 0 : index
    %c0_6 = arith.constant 0 : index
    %14 = vector.load %arg10[%c0_5, %c0_6] : memref<176x4xf32, #tpu.memory_space<vmem>>, vector<128x4xf32>
    %c1 = arith.constant 1 : index
    %c0_7 = arith.constant 0 : index
    %15 = vector.load %arg10[%c1, %c0_7] : memref<176x4xf32, #tpu.memory_space<vmem>>, vector<128x4xf32>
    %c2 = arith.constant 2 : index
    %c0_8 = arith.constant 0 : index
    %16 = vector.load %arg10[%c2, %c0_8] : memref<176x4xf32, #tpu.memory_space<vmem>>, vector<128x4xf32>
    %c16 = arith.constant 16 : index
    %c0_9 = arith.constant 0 : index
    %17 = vector.load %arg10[%c16, %c0_9] : memref<176x4xf32, #tpu.memory_space<vmem>>, vector<128x4xf32>
    %c17 = arith.constant 17 : index
    %c0_10 = arith.constant 0 : index
    %18 = vector.load %arg10[%c17, %c0_10] : memref<176x4xf32, #tpu.memory_space<vmem>>, vector<128x4xf32>
    %c18 = arith.constant 18 : index
    %c0_11 = arith.constant 0 : index
    %19 = vector.load %arg10[%c18, %c0_11] : memref<176x4xf32, #tpu.memory_space<vmem>>, vector<128x4xf32>
    %c32 = arith.constant 32 : index
    %c0_12 = arith.constant 0 : index
    %20 = vector.load %arg10[%c32, %c0_12] : memref<176x4xf32, #tpu.memory_space<vmem>>, vector<128x4xf32>
    %c33 = arith.constant 33 : index
    %c0_13 = arith.constant 0 : index
    %21 = vector.load %arg10[%c33, %c0_13] : memref<176x4xf32, #tpu.memory_space<vmem>>, vector<128x4xf32>
    %c34 = arith.constant 34 : index
    %c0_14 = arith.constant 0 : index
    %22 = vector.load %arg10[%c34, %c0_14] : memref<176x4xf32, #tpu.memory_space<vmem>>, vector<128x4xf32>
    %23 = tpu.concatenate %14, %15, %16, %17, %18, %19, %20, %21, %22 in 1 : vector<128x4xf32>, vector<128x4xf32>, vector<128x4xf32>, vector<128x4xf32>, vector<128x4xf32>, vector<128x4xf32>, vector<128x4xf32>, vector<128x4xf32>, vector<128x4xf32> -> vector<128x36xf32>
    %c0_15 = arith.constant 0 : index
    %c0_16 = arith.constant 0 : index
    %24 = vector.load %arg3[%c0_15, %c0_16] : memref<36x8xf32, #tpu.memory_space<vmem>>, vector<36x8xf32>
    %cst = arith.constant dense<0.000000e+00> : vector<128x8xf32>
    %25 = tpu.matmul %23, %24, %cst {dimension_numbers = #tpu.dot_dimension_numbers<[1], [0], [0], [1], [0, 0, 1, 1], [], []>, precision = #tpu.contract_precision<fp32>} : vector<128x36xf32>, vector<36x8xf32>, vector<128x8xf32> -> vector<128x8xf32>
    %c0_17 = arith.constant 0 : index
    %c0_18 = arith.constant 0 : index
    %26 = vector.load %arg4[%c0_17, %c0_18] : memref<1x8xf32, #tpu.memory_space<vmem>>, vector<1x8xf32>
    %27 = vector.broadcast %26 : vector<1x8xf32> to vector<128x8xf32>
    %28 = arith.mulf %25, %27 : vector<128x8xf32>
    %c0_19 = arith.constant 0 : index
    %c0_20 = arith.constant 0 : index
    %29 = vector.load %arg5[%c0_19, %c0_20] : memref<1x8xf32, #tpu.memory_space<vmem>>, vector<1x8xf32>
    %30 = vector.broadcast %29 : vector<1x8xf32> to vector<128x8xf32>
    %31 = arith.addf %28, %30 : vector<128x8xf32>
    %cst_21 = arith.constant 0.000000e+00 : f32
    %32 = vector.broadcast %cst_21 : f32 to vector<128x8xf32>
    %33 = arith.cmpf ogt, %31, %32 : vector<128x8xf32>
    %cst_22 = arith.constant 0.00999999977 : f32
    %34 = vector.broadcast %cst_22 : f32 to vector<128x8xf32>
    %35 = arith.mulf %34, %31 : vector<128x8xf32>
    %36 = arith.select %33, %31, %35 : vector<128x8xi1>, vector<128x8xf32>
    %c0_23 = arith.constant 0 : index
    %c0_24 = arith.constant 0 : index
    %37 = vector.load %arg2[%c0_23, %c0_24] : memref<128x1xf32, #tpu.memory_space<vmem>>, vector<128x1xf32>
    %38 = vector.broadcast %37 : vector<128x1xf32> to vector<128x8xf32>
    %39 = arith.mulf %36, %38 : vector<128x8xf32>
    %cst_25 = arith.constant 0.000000e+00 : f32
    %40 = vector.broadcast %cst_25 : f32 to vector<17x8xf32>
    %c0_26 = arith.constant 0 : index
    %c0_27 = arith.constant 0 : index
    %41 = vector.load %arg11[%c0_26, %c0_27] : memref<176x8xf32, #tpu.memory_space<vmem>>, vector<17x8xf32>
    tpu.vector_store %arg11[%c0_26, %c0_27], %40 {strides = array<i32>} : memref<176x8xf32, #tpu.memory_space<vmem>>, vector<17x8xf32>,
    %c17_28 = arith.constant 17 : index
    %c0_29 = arith.constant 0 : index
    %42 = vector.load %arg11[%c17_28, %c0_29] : memref<176x8xf32, #tpu.memory_space<vmem>>, vector<128x8xf32>
    tpu.vector_store %arg11[%c17_28, %c0_29], %39 {strides = array<i32>} : memref<176x8xf32, #tpu.memory_space<vmem>>, vector<128x8xf32>,
    %cst_30 = arith.constant 0.000000e+00 : f32
    %43 = vector.broadcast %cst_30 : f32 to vector<31x8xf32>
    %c145 = arith.constant 145 : index
    %c0_31 = arith.constant 0 : index
    %44 = vector.load %arg11[%c145, %c0_31] : memref<176x8xf32, #tpu.memory_space<vmem>>, vector<31x8xf32>
    tpu.vector_store %arg11[%c145, %c0_31], %43 {strides = array<i32>} : memref<176x8xf32, #tpu.memory_space<vmem>>, vector<31x8xf32>,
    %c0_32 = arith.constant 0 : index
    %c0_33 = arith.constant 0 : index
    %45 = vector.load %arg11[%c0_32, %c0_33] : memref<176x8xf32, #tpu.memory_space<vmem>>, vector<128x8xf32>
    %c1_34 = arith.constant 1 : index
    %c0_35 = arith.constant 0 : index
    %46 = vector.load %arg11[%c1_34, %c0_35] : memref<176x8xf32, #tpu.memory_space<vmem>>, vector<128x8xf32>
    %c2_36 = arith.constant 2 : index
    %c0_37 = arith.constant 0 : index
    %47 = vector.load %arg11[%c2_36, %c0_37] : memref<176x8xf32, #tpu.memory_space<vmem>>, vector<128x8xf32>
    %c16_38 = arith.constant 16 : index
    %c0_39 = arith.constant 0 : index
    %48 = vector.load %arg11[%c16_38, %c0_39] : memref<176x8xf32, #tpu.memory_space<vmem>>, vector<128x8xf32>
    %c17_40 = arith.constant 17 : index
    %c0_41 = arith.constant 0 : index
    %49 = vector.load %arg11[%c17_40, %c0_41] : memref<176x8xf32, #tpu.memory_space<vmem>>, vector<128x8xf32>
    %c18_42 = arith.constant 18 : index
    %c0_43 = arith.constant 0 : index
    %50 = vector.load %arg11[%c18_42, %c0_43] : memref<176x8xf32, #tpu.memory_space<vmem>>, vector<128x8xf32>
    %c32_44 = arith.constant 32 : index
    %c0_45 = arith.constant 0 : index
    %51 = vector.load %arg11[%c32_44, %c0_45] : memref<176x8xf32, #tpu.memory_space<vmem>>, vector<128x8xf32>
    %c33_46 = arith.constant 33 : index
    %c0_47 = arith.constant 0 : index
    %52 = vector.load %arg11[%c33_46, %c0_47] : memref<176x8xf32, #tpu.memory_space<vmem>>, vector<128x8xf32>
    %c34_48 = arith.constant 34 : index
    %c0_49 = arith.constant 0 : index
    %53 = vector.load %arg11[%c34_48, %c0_49] : memref<176x8xf32, #tpu.memory_space<vmem>>, vector<128x8xf32>
    %54 = tpu.concatenate %45, %46, %47, %48, %49, %50, %51, %52, %53 in 1 : vector<128x8xf32>, vector<128x8xf32>, vector<128x8xf32>, vector<128x8xf32>, vector<128x8xf32>, vector<128x8xf32>, vector<128x8xf32>, vector<128x8xf32>, vector<128x8xf32> -> vector<128x72xf32>
    %c0_50 = arith.constant 0 : index
    %c0_51 = arith.constant 0 : index
    %55 = vector.load %arg6[%c0_50, %c0_51] : memref<72x8xf32, #tpu.memory_space<vmem>>, vector<72x8xf32>
    %cst_52 = arith.constant dense<0.000000e+00> : vector<128x8xf32>
    %56 = tpu.matmul %54, %55, %cst_52 {dimension_numbers = #tpu.dot_dimension_numbers<[1], [0], [0], [1], [0, 0, 1, 1], [], []>, precision = #tpu.contract_precision<fp32>} : vector<128x72xf32>, vector<72x8xf32>, vector<128x8xf32> -> vector<128x8xf32>
    %c0_53 = arith.constant 0 : index
    %c0_54 = arith.constant 0 : index
    %57 = vector.load %arg7[%c0_53, %c0_54] : memref<1x8xf32, #tpu.memory_space<vmem>>, vector<1x8xf32>
    %58 = vector.broadcast %57 : vector<1x8xf32> to vector<128x8xf32>
    %59 = arith.mulf %56, %58 : vector<128x8xf32>
    %c0_55 = arith.constant 0 : index
    %c0_56 = arith.constant 0 : index
    %60 = vector.load %arg8[%c0_55, %c0_56] : memref<1x8xf32, #tpu.memory_space<vmem>>, vector<1x8xf32>
    %61 = vector.broadcast %60 : vector<1x8xf32> to vector<128x8xf32>
    %62 = arith.addf %59, %61 : vector<128x8xf32>
    %cst_57 = arith.constant 0.000000e+00 : f32
    %63 = vector.broadcast %cst_57 : f32 to vector<128x8xf32>
    %64 = arith.cmpf ogt, %62, %63 : vector<128x8xf32>
    %cst_58 = arith.constant 0.00999999977 : f32
    %65 = vector.broadcast %cst_58 : f32 to vector<128x8xf32>
    %66 = arith.mulf %65, %62 : vector<128x8xf32>
    %67 = arith.select %64, %62, %66 : vector<128x8xi1>, vector<128x8xf32>
    %68 = vector.shape_cast %67 : vector<128x8xf32> to vector<1x128x8xf32>
    %c0_59 = arith.constant 0 : index
    %c0_60 = arith.constant 0 : index
    %c0_61 = arith.constant 0 : index
    %69 = vector.load %arg9[%c0_59, %c0_60, %c0_61] : memref<1x128x8xf32, #tpu.memory_space<vmem>>, vector<1x128x8xf32>
    tpu.vector_store %arg9[%c0_59, %c0_60, %c0_61], %68 {strides = array<i32>} : memref<1x128x8xf32, #tpu.memory_space<vmem>>, vector<1x128x8xf32>,
    return
  }
  func.func @transform_0(%arg0: i32) -> (i32, i32, i32, i32) {
    %c0_i32 = arith.constant 0 : i32
    %c0_i32_0 = arith.constant 0 : i32
    %c0_i32_1 = arith.constant 0 : i32
    %c0_i32_2 = arith.constant 0 : i32
    return %arg0, %c0_i32, %c0_i32_0, %c0_i32_1 : i32, i32, i32, i32
  }
  func.func @transform_1(%arg0: i32) -> (i32, i32) {
    %c0_i32 = arith.constant 0 : i32
    %c0_i32_0 = arith.constant 0 : i32
    %c0_i32_1 = arith.constant 0 : i32
    return %c0_i32, %c0_i32_0 : i32, i32
  }
  func.func @transform_2(%arg0: i32) -> (i32, i32) {
    %c0_i32 = arith.constant 0 : i32
    %c0_i32_0 = arith.constant 0 : i32
    %c0_i32_1 = arith.constant 0 : i32
    return %c0_i32, %c0_i32_0 : i32, i32
  }
  func.func @transform_3(%arg0: i32) -> (i32, i32) {
    %c0_i32 = arith.constant 0 : i32
    %c0_i32_0 = arith.constant 0 : i32
    %c0_i32_1 = arith.constant 0 : i32
    return %c0_i32, %c0_i32_0 : i32, i32
  }
  func.func @transform_4(%arg0: i32) -> (i32, i32) {
    %c0_i32 = arith.constant 0 : i32
    %c0_i32_0 = arith.constant 0 : i32
    %c0_i32_1 = arith.constant 0 : i32
    return %c0_i32, %c0_i32_0 : i32, i32
  }
  func.func @transform_5(%arg0: i32) -> (i32, i32) {
    %c0_i32 = arith.constant 0 : i32
    %c0_i32_0 = arith.constant 0 : i32
    %c0_i32_1 = arith.constant 0 : i32
    return %c0_i32, %c0_i32_0 : i32, i32
  }
  func.func @transform_6(%arg0: i32) -> (i32, i32) {
    %c0_i32 = arith.constant 0 : i32
    %c0_i32_0 = arith.constant 0 : i32
    %c0_i32_1 = arith.constant 0 : i32
    return %c0_i32, %c0_i32_0 : i32, i32
  }
  func.func @transform_7(%arg0: i32) -> (i32, i32) {
    %c0_i32 = arith.constant 0 : i32
    %c0_i32_0 = arith.constant 0 : i32
    %c0_i32_1 = arith.constant 0 : i32
    return %c0_i32, %c0_i32_0 : i32, i32
  }
  func.func @transform_8(%arg0: i32) -> (i32, i32, i32) {
    %c0_i32 = arith.constant 0 : i32
    %c0_i32_0 = arith.constant 0 : i32
    %c0_i32_1 = arith.constant 0 : i32
    return %arg0, %c0_i32, %c0_i32_0 : i32, i32, i32
  }
}

</mosaic_0001>

<bundles_post_ra>
// kernel: tpu_custom_call.1
= control target key start
LH: loop header
LB: loop body
LE: loop exit
PB: predicated region body
PF: predicated region fallthrough
CT: control target
= control target key end

     0   :  { %s3742_s27 = smov 0   ;;  %s5751_s0 = inlined_call_operand.vmem [shape: f32[2,4,176,4], index: 0, kind: input, shape index: {}]   ;;  %s5752_s1 = inlined_call_operand.vmem [shape: f32[128,1], index: 1, kind: input, shape index: {}]   ;;  %s5753_s2 = inlined_call_operand.vmem [shape: f32[36,8], index: 2, kind: input, shape index: {}]   ;;  %s5754_s3 = inlined_call_operand.vmem [shape: f32[1,8], index: 3, kind: input, shape index: {}]   ;;  %s5755_s4 = inlined_call_operand.vmem [shape: f32[1,8], index: 4, kind: input, shape index: {}]   ;;  %s5756_s5 = inlined_call_operand.vmem [shape: f32[72,8], index: 5, kind: input, shape index: {}]   ;;  %s5757_s6 = inlined_call_operand.vmem [shape: f32[1,8], index: 6, kind: input, shape index: {}]   ;;  %s5758_s7 = inlined_call_operand.vmem [shape: f32[1,8], index: 7, kind: input, shape index: {}]   ;;  %s5759_s8 = inlined_call_operand.vmem [shape: f32[2,128,8], index: 8, kind: output, shape index: {}]  }
   0x1 LB: > { %s3632_s28 = sadd.s32 4294967295, %s3681_s27   ;;  %p3636_p0 = scmp.ge.s32.totalorder %s3681_s27, 1  ;;  %s3681_s27 = sphi %s3742_s27, %s18_s27  }
   0x2   : > { %p262_p1 = scmp.lt.s32.totalorder %s3681_s27, 3 }
   0x4   : > { %p263_p2 = pnand %p3636_p0, %p262_p1 }
   0x5   : > { %p296_p3 = scmp.lt.s32.totalorder (!%p263_p2), %s3632_s28, 1  ;;  %s3683_s11 = smov (!%p263_p2), 4  }
   0x6   : > { %266 = sbr.rel (%p263_p2) target bundleno = 1399 (0x577), region = 52  ;;  %s3684_s12 = smov (!%p263_p2), 8  }
   0x7   : > { %s3685_s13 = smov (!%p263_p2), 12   ;;  %s3686_s14 = smov (!%p263_p2), 24  }
   0x8   : > { %s3687_s15 = smov (!%p263_p2), 20   ;;  %s3688_s16 = smov (!%p263_p2), 16  }
   0x9   : > { %s3689_s17 = smov (!%p263_p2), 32   ;;  %s3690_s18 = smov (!%p263_p2), 28  }
   0xa   : > { %s3693_s25 = smov (!%p263_p2), 40   ;;  %s3694_s26 = smov (!%p263_p2), 48  }
   0xb   : > { %s5761_s28 = smov (!%p296_p3, %s3632_s28), 1  ;;  %vm460_vm0 = vcmask 31744   ;;  %vm1174_vm1 = vcmask 1043456   ;;  %vm1001_vm2 = vcmask 64512   ;;  %vm1018_vm3 = vcmask 97280   ;;  %s3696_s30 = smov 64  }
   0xc   : > { %s3643_s29 = smul.u32 704, %s5761_s28  ;;  %vm1035_vm4 = vcmask 130048   ;;  %vm1052_vm5 = vcmask 162816   ;;  %vm1069_vm6 = vcmask 195584   ;;  %vm1086_vm7 = vcmask 228352  }
   0xd   : > { %vm1103_vm8 = vcmask 261120   ;;  %vm1125_vm9 = vcmask 293888   ;;  %vm2043_vm10 = vcmask 57344  }
   0xe   : > { %s3756_s10 = scalar_lea.vmem %s5751_s0, %s3643_s29  ;;  %s3695_s29 = smov 56  }
   0xf   : > { %v310_v0 = vld [vmem:[%s3756_s10 + $0x20] sm:$0xff]  ;;  %v311_v1 = vld [vmem:[%s3756_s10 + $0x28] sm:$0xff]  ;;  %v332_v2 = vld [vmem:[%s3756_s10 + $0xd0] sm:$0xff] }
  0x10   : > { %v333_v3 = vld [vmem:[%s3756_s10 + $0xd8] sm:$0xff]  ;;  %v354_v4 = vld [vmem:[%s3756_s10 + $0x180] sm:$0xff]  ;;  %v355_v5 = vld [vmem:[%s3756_s10 + $0x188] sm:$0xff]  ;;  %v398_v6 = vmax.f32 %v310_v0, %v332_v2 }
  0x11   : > { %v376_v7 = vld [vmem:[%s3756_s10 + $0x230] sm:$0xff]  ;;  %v377_v8 = vld [vmem:[%s3756_s10 + $0x238] sm:$0xff]  ;;  %v399_v9 = vmax.f32 %v311_v1, %v333_v3  ;;  %v330_v14 = vld [vmem:[%s3756_s10 + $0xc0] sm:$0xff] }
  0x12   : > { %v308_v10 = vld [vmem:[%s3756_s10 + $0x10] sm:$0xff]  ;;  %v420_v11 = vmax.f32 %v354_v4, %v376_v7  ;;  %v421_v12 = vmax.f32 %v355_v5, %v377_v8  ;;  %v309_v13 = vld [vmem:[%s3756_s10 + $0x18] sm:$0xff]  ;;  %v331_v15 = vld [vmem:[%s3756_s10 + $0xc8] sm:$0xff] }
  0x13   : > { %v352_v16 = vld [vmem:[%s3756_s10 + $0x170] sm:$0xff]  ;;  %v353_v17 = vld [vmem:[%s3756_s10 + $0x178] sm:$0xff]  ;;  %v374_v18 = vld [vmem:[%s3756_s10 + $0x220] sm:$0xff]  ;;  %v396_v19 = vmax.f32 %v308_v10, %v330_v14  ;;  %v397_v20 = vmax.f32 %v309_v13, %v331_v15 }
  0x14   : > { %v442_v21 = vmax.f32 %v398_v6, %v420_v11  ;;  %v443_v22 = vmax.f32 %v399_v9, %v421_v12  ;;  %v375_v23 = vld [vmem:[%s3756_s10 + $0x228] sm:$0xff]  ;;  %v418_v24 = vmax.f32 %v352_v16, %v374_v18  ;;  %v306_v25 = vld [vmem:[%s3756_s10] sm:$0xff]  ;;  %v328_v28 = vld [vmem:[%s3756_s10 + $0xb0] sm:$0xff] }
  0x15   : > { %v307_v26 = vld [vmem:[%s3756_s10 + $0x8] sm:$0xff]  ;;  %v419_v27 = vmax.f32 %v353_v17, %v375_v23  ;;  %v329_v29 = vld [vmem:[%s3756_s10 + $0xb8] sm:$0xff]  ;;  %v350_v30 = vld [vmem:[%s3756_s10 + $0x160] sm:$0xff]  ;;  %v394_v35 = vmax.f32 %v306_v25, %v328_v28 }
  0x16   : > { %465 = vst.msk [vmem:[#allocation2 + $0x20] sm:$0xff] %vm460_vm0, %v442_v21  ;;  %v440_v31 = vmax.f32 %v396_v19, %v418_v24  ;;  %v351_v32 = vld [vmem:[%s3756_s10 + $0x168] sm:$0xff]  ;;  %v372_v33 = vld [vmem:[%s3756_s10 + $0x210] sm:$0xff]  ;;  %v373_v34 = vld [vmem:[%s3756_s10 + $0x218] sm:$0xff]  ;;  %v395_v36 = vmax.f32 %v307_v26, %v329_v29 }
  0x17   : > { %466 = vst.msk [vmem:[#allocation2 + $0x28] sm:$0xff] %vm460_vm0, %v443_v22  ;;  %v441_v37 = vmax.f32 %v397_v20, %v419_v27  ;;  %v416_v38 = vmax.f32 %v350_v30, %v372_v33  ;;  %v417_v39 = vmax.f32 %v351_v32, %v373_v34  ;;  %v312_v40 = vld [vmem:[%s3756_s10 + $0x30] sm:$0xff]  ;;  %v334_v41 = vld [vmem:[%s3756_s10 + $0xe0] sm:$0xff]  ;;  %v315_v46 = vld [vmem:[%s3756_s10 + $0x48] sm:$0xff] }
  0x18   : > { %v356_v42 = vld [vmem:[%s3756_s10 + $0x190] sm:$0xff]  ;;  %463 = vst.msk [vmem:[#allocation2 + $0x10] sm:$0xff] %vm460_vm0, %v440_v31  ;;  %v378_v43 = vld [vmem:[%s3756_s10 + $0x240] sm:$0xff]  ;;  %v400_v44 = vmax.f32 %v312_v40, %v334_v41  ;;  %v337_v51 = vld [vmem:[%s3756_s10 + $0xf8] sm:$0xff] }
  0x19   : > { %v314_v45 = vld [vmem:[%s3756_s10 + $0x40] sm:$0xff]  ;;  %464 = vst.msk [vmem:[#allocation2 + $0x18] sm:$0xff] %vm460_vm0, %v441_v37  ;;  %v438_v47 = vmax.f32 %v394_v35, %v416_v38  ;;  %v439_v48 = vmax.f32 %v395_v36, %v417_v39  ;;  %v422_v49 = vmax.f32 %v356_v42, %v378_v43  ;;  %v336_v50 = vld [vmem:[%s3756_s10 + $0xf0] sm:$0xff]  ;;  %v359_v53 = vld [vmem:[%s3756_s10 + $0x1a8] sm:$0xff]  ;;  %v403_v57 = vmax.f32 %v315_v46, %v337_v51 }
  0x1a   : > { %v358_v52 = vld [vmem:[%s3756_s10 + $0x1a0] sm:$0xff]  ;;  %v380_v54 = vld [vmem:[%s3756_s10 + $0x250] sm:$0xff]  ;;  %v381_v55 = vld [vmem:[%s3756_s10 + $0x258] sm:$0xff]  ;;  %v402_v56 = vmax.f32 %v314_v45, %v336_v50 }
  0x1b   : > { %461 = vst.msk [vmem:[#allocation2] sm:$0xff] %vm460_vm0, %v438_v47  ;;  %v444_v58 = vmax.f32 %v400_v44, %v422_v49  ;;  %v424_v59 = vmax.f32 %v358_v52, %v380_v54  ;;  %v425_v60 = vmax.f32 %v359_v53, %v381_v55  ;;  %v313_v61 = vld [vmem:[%s3756_s10 + $0x38] sm:$0xff]  ;;  %v335_v62 = vld [vmem:[%s3756_s10 + $0xe8] sm:$0xff]  ;;  %v318_v3 = vld [vmem:[%s3756_s10 + $0x60] sm:$0xff] }
  0x1c   : > { %v357_v63 = vld [vmem:[%s3756_s10 + $0x198] sm:$0xff]  ;;  %462 = vst.msk [vmem:[#allocation2 + $0x8] sm:$0xff] %vm460_vm0, %v439_v48  ;;  %v379_v0 = vld [vmem:[%s3756_s10 + $0x248] sm:$0xff]  ;;  %v401_v1 = vmax.f32 %v313_v61, %v335_v62  ;;  %v340_v8 = vld [vmem:[%s3756_s10 + $0x110] sm:$0xff] }
  0x1d   : > { %v317_v2 = vld [vmem:[%s3756_s10 + $0x58] sm:$0xff]  ;;  %467 = vst.msk [vmem:[#allocation2 + $0x30] sm:$0xff] %vm460_vm0, %v444_v58  ;;  %v446_v4 = vmax.f32 %v402_v56, %v424_v59  ;;  %v447_v5 = vmax.f32 %v403_v57, %v425_v60  ;;  %v423_v6 = vmax.f32 %v357_v63, %v379_v0  ;;  %v339_v7 = vld [vmem:[%s3756_s10 + $0x108] sm:$0xff]  ;;  %v362_v11 = vld [vmem:[%s3756_s10 + $0x1c0] sm:$0xff]  ;;  %v406_v14 = vmax.f32 %v318_v3, %v340_v8 }
  0x1e   : > { %v361_v9 = vld [vmem:[%s3756_s10 + $0x1b8] sm:$0xff]  ;;  %v3810_v10 = vld [vmem:[#allocation2 + $0x21] sm:$0xff]  ;;  %v405_v13 = vmax.f32 %v317_v2, %v339_v7  ;;  %v384_v16 = vld [vmem:[%s3756_s10 + $0x270] sm:$0xff] }
  0x1f   : > { %v383_v12 = vld [vmem:[%s3756_s10 + $0x268] sm:$0xff]  ;;  %567 = vrot.lane.b32.xlu2 %v3810_v10, %s3683_s11  ;;  %469 = vst.msk [vmem:[#allocation2 + $0x40] sm:$0xff] %vm460_vm0, %v446_v4  ;;  %v445_v15 = vmax.f32 %v401_v1, %v423_v6  ;;  %v316_v18 = vld [vmem:[%s3756_s10 + $0x50] sm:$0xff]  ;;  %v338_v19 = vld [vmem:[%s3756_s10 + $0x100] sm:$0xff]  ;;  %v428_v21 = vmax.f32 %v362_v11, %v384_v16 }
  0x20   : > { %v427_v17 = vmax.f32 %v361_v9, %v383_v12  ;;  %v3820_v20 = vld [vmem:[#allocation2 + $0x11] sm:$0xff]  ;;  %470 = vst.msk [vmem:[#allocation2 + $0x48] sm:$0xff] %vm460_vm0, %v447_v5  ;;  %v404_v23 = vmax.f32 %v316_v18, %v338_v19  ;;  %v382_v25 = vld [vmem:[%s3756_s10 + $0x260] sm:$0xff]  ;;  %v343_v31 = vld [vmem:[%s3756_s10 + $0x128] sm:$0xff] }
  0x21   : > { %v360_v22 = vld [vmem:[%s3756_s10 + $0x1b0] sm:$0xff]  ;;  %563 = vrot.lane.b32.xlu1 %v3820_v20, %s3683_s11  ;;  %468 = vst.msk [vmem:[#allocation2 + $0x38] sm:$0xff] %vm460_vm0, %v445_v15  ;;  %v321_v27 = vld [vmem:[%s3756_s10 + $0x78] sm:$0xff]  ;;  %v450_v28 = vmax.f32 %v406_v14, %v428_v21  ;;  %v342_v30 = vld [vmem:[%s3756_s10 + $0x120] sm:$0xff] }
  0x22   : > { %v449_v24 = vmax.f32 %v405_v13, %v427_v17  ;;  %v320_v26 = vld [vmem:[%s3756_s10 + $0x70] sm:$0xff]  ;;  %v426_v29 = vmax.f32 %v360_v22, %v382_v25  ;;  %v365_v34 = vld [vmem:[%s3756_s10 + $0x1d8] sm:$0xff]  ;;  %v409_v36 = vmax.f32 %v321_v27, %v343_v31  ;;  %v386_v39 = vld [vmem:[%s3756_s10 + $0x280] sm:$0xff] }
  0x23   : > { %v364_v32 = vld [vmem:[%s3756_s10 + $0x1d0] sm:$0xff]  ;;  %v499_v33 = vld [vmem:[#allocation2 + $0x1] sm:$0xff]  ;;  %v408_v35 = vmax.f32 %v320_v26, %v342_v30  ;;  %473 = vst.msk [vmem:[#allocation2 + $0x60] sm:$0xff] %vm460_vm0, %v450_v28  ;;  %v341_v44 = vld [vmem:[%s3756_s10 + $0x118] sm:$0xff] }
  0x24   : > { %472 = vst.msk [vmem:[#allocation2 + $0x58] sm:$0xff] %vm460_vm0, %v449_v24  ;;  %559 = vrot.lane.b32.xlu0 %v499_v33, %s3683_s11  ;;  %v3836_v37 = vld [vmem:[#allocation2 + $0x29] sm:$0xff]  ;;  %v448_v38 = vmax.f32 %v404_v23, %v426_v29  ;;  %v430_v41 = vmax.f32 %v364_v32, %v386_v39  ;;  %v3844_v46 = vld [vmem:[#allocation2 + $0x19] sm:$0xff] }
  0x25   : > { %v387_v40 = vld [vmem:[%s3756_s10 + $0x288] sm:$0xff]  ;;  %v385_v47 = vld [vmem:[%s3756_s10 + $0x278] sm:$0xff]  ;;  %v322_v49 = vld [vmem:[%s3756_s10 + $0x80] sm:$0xff] }
  0x26   : > { %v431_v42 = vmax.f32 %v365_v34, %v387_v40  ;;  %v319_v43 = vld [vmem:[%s3756_s10 + $0x68] sm:$0xff]  ;;  %471 = vst.msk [vmem:[#allocation2 + $0x50] sm:$0xff] %vm460_vm0, %v448_v38  ;;  %v452_v50 = vmax.f32 %v408_v35, %v430_v41  ;;  %v344_v53 = vld [vmem:[%s3756_s10 + $0x130] sm:$0xff]  ;;  %v366_v54 = vld [vmem:[%s3756_s10 + $0x1e0] sm:$0xff] }
  0x27   : > { %v363_v45 = vld [vmem:[%s3756_s10 + $0x1c8] sm:$0xff]  ;;  %v407_v48 = vmax.f32 %v319_v43, %v341_v44  ;;  %569 = vrot.lane.b32.xlu2 %v3836_v37, %s3683_s11  ;;  %v410_v55 = vmax.f32 %v322_v49, %v344_v53  ;;  %v388_v58 = vld [vmem:[%s3756_s10 + $0x290] sm:$0xff]  ;;  %v518_v11 = vld [vmem:[#allocation2 + $0x1a] sm:$0xff] }
  0x28   : > { %v453_v51 = vmax.f32 %v409_v36, %v431_v42  ;;  %v429_v52 = vmax.f32 %v363_v45, %v385_v47  ;;  %v500_v56 = vld [vmem:[#allocation2 + $0x9] sm:$0xff]  ;;  %475 = vst.msk [vmem:[#allocation2 + $0x70] sm:$0xff] %vm460_vm0, %v452_v50  ;;  %v432_v59 = vmax.f32 %v366_v54, %v388_v58  ;;  %v3860_v60 = vld [vmem:[#allocation2 + $0x41] sm:$0xff]  ;;  %v3862_v62 = vld [vmem:[#allocation2 + $0x39] sm:$0xff] }
  0x29   : > { %565 = vrot.lane.b32.xlu1 %v3844_v46, %s3683_s11  ;;  %v3869_v63 = vld [vmem:[#allocation2 + $0x31] sm:$0xff]  ;;  %v515_v7 = vld [vmem:[#allocation2 + $0x2] sm:$0xff]  ;;  %v3969_v26 = vld [vmem:[#allocation2 + $0x3a] sm:$0xff] }
  0x2a   : > { %v451_v57 = vmax.f32 %v407_v48, %v429_v52  ;;  %476 = vst.msk [vmem:[#allocation2 + $0x78] sm:$0xff] %vm460_vm0, %v453_v51  ;;  %v454_v61 = vmax.f32 %v410_v55, %v432_v59  ;;  %v516_v6 = vld [vmem:[#allocation2 + $0xa] sm:$0xff]  ;;  %v519_v9 = vld [vmem:[#allocation2 + $0x22] sm:$0xff]  ;;  %v517_v12 = vld [vmem:[#allocation2 + $0x12] sm:$0xff] }
  0x2b   : > { %v3873_v0 = vld [vmem:[#allocation2 + $0x59] sm:$0xff]  ;;  %v3906_v13 = vld [vmem:[#allocation2 + $0x10] sm:$0xff]  ;;  %v3926_v18 = vld [vmem:[#allocation2 + $0x28] sm:$0xff] }
  0x2c   : > { %474 = vst.msk [vmem:[#allocation2 + $0x68] sm:$0xff] %vm460_vm0, %v451_v57  ;;  %561 = vrot.lane.b32.xlu0 %v500_v56, %s3683_s11  ;;  %v521_v14 = vld [vmem:[#allocation2 + $0x32] sm:$0xff]  ;;  %v520_v15 = vld [vmem:[#allocation2 + $0x2a] sm:$0xff]  ;;  %v3912_v16 = vld [vmem:[#allocation2 + $0x20] sm:$0xff] }
  0x2d   : > { %477 = vst.msk [vmem:[#allocation2 + $0x80] sm:$0xff] %vm460_vm0, %v454_v61  ;;  %v3875_v1 = vld [vmem:[#allocation2 + $0x51] sm:$0xff]  ;;  %v3881_v2 = vld [vmem:[#allocation2 + $0x49] sm:$0xff]  ;;  %v3979_v29 = vld [vmem:[#allocation2 + $0x40] sm:$0xff] }
  0x2e   : > { %v3919_v17 = vld [vmem:[#allocation2 + $0x18] sm:$0xff]  ;;  %v3996_v34 = vld [vmem:[#allocation2 + $0x42] sm:$0xff]  ;;  %v1122_v47 = vld [vmem:[%s5753_s2 + $0x10] sm:$0xff] }
  0x2f   : > { %575 = vrot.lane.b32.xlu2 %v3860_v60, %s3683_s11  ;;  %v3956_v23 = vld [vmem:[#allocation2 + $0x38] sm:$0xff]  ;;  %v1124_v39 = vld [vmem:[%s5753_s2 + $0x20] sm:$0xf]  ;;  %v4039_v50 = vand.u32 4294901760, %v1122_v47  ;;  %v4044_v52 = vld [vmem:[#allocation2 + $0x4a] sm:$0xff] }
  0x30   : > { %v1176_v40 = vsel %vm1174_vm1, %v1124_v39, 0  ;;  %v1123_v43 = vld [vmem:[%s5753_s2 + $0x18] sm:$0xff]  ;;  %v1121_v53 = vld [vmem:[%s5753_s2 + $0x8] sm:$0xff]  ;;  %v1120_v58 = vld [vmem:[%s5753_s2] sm:$0xff] }
  0x31   : > { %573 = vrot.lane.b32.xlu1 %v3862_v62, %s3683_s11  ;;  %v3885_v3 = vld [vmem:[#allocation2 + $0x71] sm:$0xff]  ;;  %v4021_v42 = vand.u32 4294901760, %v1176_v40  ;;  %v1352_v56 = vsub.f32 %v1122_v47, %v4039_v50  ;;  %v1195_v57 = vand.u32 4294901760, %v1121_v53 }
  0x33   : > { %v3887_v4 = vld [vmem:[#allocation2 + $0x69] sm:$0xff]  ;;  %v3893_v5 = vld [vmem:[#allocation2 + $0x61] sm:$0xff]  ;;  %v1340_v45 = vsub.f32 %v1176_v40, %v4021_v42  ;;  %1553 = vmatpush.msra.mxu3 %v4021_v42  ;;  %1190 = vmatpush.msra.mxu0 %v4021_v42 }
  0x34   : > { %571 = vrot.lane.b32.xlu0 %v3869_v63, %s3683_s11  ;;  %v3899_v8 = vld [vmem:[#allocation2 + $0x79] sm:$0xff] }
  0x35   : > { %v1341_v48 = vand.u32 4294901760, %v1340_v45  ;;  %1447 = vmatpush.msra.mxu2 %v1340_v45 }
  0x37   : > { %581 = vrot.lane.b32.xlu2 %v3873_v0, %s3683_s11  ;;  %v1342_v54 = vsub.f32 %v1340_v45, %v1341_v48 }
  0x39   : > { %579 = vrot.lane.b32.xlu1 %v3875_v1, %s3683_s11  ;;  %v1343_v61 = vand.u32 4294901760, %v1342_v54 }
  0x3b   : > { %1344 = vmatpush.msra.mxu1 %v1343_v61 }
  0x3c   : > { %577 = vrot.lane.b32.xlu0 %v3881_v2, %s3683_s11 }
  0x3f   : > { %587 = vrot.lane.b32.xlu2 %v3885_v3, %s3683_s11 }
  0x41   : > { %585 = vrot.lane.b32.xlu1 %v3887_v4, %s3683_s11 }
  0x44   : > { %583 = vrot.lane.b32.xlu0 %v3893_v5, %s3683_s11 }
  0x47   : > { %625 = vrot.lane.b32.xlu2 %v516_v6, %s3684_s12  ;;  %v1197_v6 = vand.u32 4294901760, %v1120_v58 }
  0x49   : > { %623 = vrot.lane.b32.xlu1 %v515_v7, %s3684_s12  ;;  %v1358_v7 = vsub.f32 %v1121_v53, %v1195_v57 }
  0x4b   : > { %v1359_v39 = vand.u32 4294901760, %v1358_v7 }
  0x4c   : > { %589 = vrot.lane.b32.xlu0 %v3899_v8, %s3683_s11 }
  0x4d   : > { %v1360_v47 = vsub.f32 %v1358_v7, %v1359_v39 }
  0x4f   : > { %631 = vrot.lane.b32.xlu2 %v519_v9, %s3684_s12  ;;  %v1361_v54 = vand.u32 4294901760, %v1360_v47 }
  0x51   : > { %629 = vrot.lane.b32.xlu1 %v518_v11, %s3684_s12 }
  0x54   : > { %627 = vrot.lane.b32.xlu0 %v517_v12, %s3684_s12 }
  0x57   : > { %687 = vrot.lane.b32.xlu2 %v3906_v13, %s3685_s13 }
  0x59   : > { %635 = vrot.lane.b32.xlu1 %v521_v14, %s3684_s12 }
  0x5c   : > { %633 = vrot.lane.b32.xlu0 %v520_v15, %s3684_s12 }
  0x5f   : > { %837 = vrot.lane.b32.xlu2 %v3912_v16, %s3686_s14 }
  0x61   : > { %787 = vrot.lane.b32.xlu1 %v517_v12, %s3687_s15 }
  0x64   : > { %737 = vrot.lane.b32.xlu0 %v3820_v20, %s3688_s16  ;;  %v3940_v20 = vld [vmem:[#allocation2 + $0x30] sm:$0xff] }
  0x67   : > { %689 = vrot.lane.b32.xlu2 %v3919_v17, %s3685_s13 }
  0x69   : > { %937 = vrot.lane.b32.xlu1 %v519_v9, %s3689_s17 }
  0x6c   : > { %887 = vrot.lane.b32.xlu0 %v3810_v10, %s3690_s18 }
  0x6f   : > { %839 = vrot.lane.b32.xlu2 %v3926_v18, %s3686_s14 }
  0x71   : > { %789 = vrot.lane.b32.xlu1 %v518_v11, %s3687_s15 }
  0x74   : > { %739 = vrot.lane.b32.xlu0 %v3844_v46, %s3688_s16  ;;  %v4029_v46 = vand.u32 4294901760, %v1123_v43 }
  0x76   : > { %v1346_v49 = vsub.f32 %v1123_v43, %v4029_v46  ;;  %1555 = vmatpush.msra.mxu3 %v4029_v46  ;;  %1192 = vmatpush.msra.mxu0 %v4029_v46  ;;  %v4064_v43 = vld [vmem:[#allocation2 + $0x50] sm:$0xff] }
  0x77   : > { %691 = vrot.lane.b32.xlu2 %v3912_v16, %s3685_s13 }
  0x78   : > { %v1347_v55 = vand.u32 4294901760, %v1346_v49  ;;  %1450 = vmatpush.msra.mxu2 %v1346_v49  ;;  %1557 = vmatpush.msra.mxu3 %v4039_v50 }
  0x79   : > { %939 = vrot.lane.b32.xlu1 %v520_v15, %s3689_s17  ;;  %v3936_v19 = vpop.permute.xlu2 %567  ;;  %1194 = vmatpush.msra.mxu0 %v4039_v50 }
  0x7a   : > { %1453 = vmatpush.msra.mxu2 %v1352_v56  ;;  %1559 = vmatpush.msra.mxu3 %v1195_v57 }
  0x7b   : > { %1196 = vmatpush.msra.mxu0 %v1195_v57 }
  0x7c   : > { %889 = vrot.lane.b32.xlu0 %v3836_v37, %s3690_s18  ;;  %1456 = vmatpush.msra.mxu2 %v1358_v7 }
  0x7d   : > { %1561 = vmatpush.msra.mxu3 %v1197_v6  ;;  %1198 = vmatpush.msra.mxu0 %v1197_v6 }
  0x7f   : > { %841 = vrot.lane.b32.xlu2 %v3940_v20, %s3686_s14  ;;  %1673 = vmatpush.msrb.mxu0 %v1341_v48 }
  0x81   : > { %791 = vrot.lane.b32.xlu1 %v519_v9, %s3687_s15  ;;  %v3945_v21 = vpop.permute.xlu2 %569  ;;  %1677 = vmatpush.msrb.mxu0 %v1347_v55 }
  0x84   : > { %741 = vrot.lane.b32.xlu0 %v3810_v10, %s3688_s16 }
  0x87   : > { %693 = vrot.lane.b32.xlu2 %v3926_v18, %s3685_s13 }
  0x89   : > { %941 = vrot.lane.b32.xlu1 %v521_v14, %s3689_s17  ;;  %v3952_v22 = vpop.permute.xlu2 %575 }
  0x8c   : > { %891 = vrot.lane.b32.xlu0 %v3869_v63, %s3690_s18 }
  0x8f   : > { %843 = vrot.lane.b32.xlu2 %v3956_v23, %s3686_s14 }
  0x91   : > { %793 = vrot.lane.b32.xlu1 %v520_v15, %s3687_s15  ;;  %v3961_v24 = vpop.permute.xlu2 %581 }
  0x93   : > { %v3963_v10 = vpop.permute.xlu1 %563 }
  0x94   : > { %743 = vrot.lane.b32.xlu0 %v3836_v37, %s3688_s16  ;;  %v4008_v37 = vld [vmem:[#allocation2 + $0x48] sm:$0xff] }
  0x96   : > { %v3967_v25 = vpop.permute.xlu0 %559 }
  0x97   : > { %695 = vrot.lane.b32.xlu2 %v3940_v20, %s3685_s13 }
  0x99   : > { %943 = vrot.lane.b32.xlu1 %v3969_v26, %s3689_s17  ;;  %v3975_v27 = vpop.permute.xlu2 %587 }
  0x9b   : > { %v3977_v28 = vpop.permute.xlu1 %565 }
  0x9c   : > { %893 = vrot.lane.b32.xlu0 %v3862_v62, %s3690_s18 }
  0x9e   : > { %v3983_v30 = vpop.permute.xlu0 %561 }
  0x9f   : > { %845 = vrot.lane.b32.xlu2 %v3979_v29, %s3686_s14 }
  0xa1   : > { %795 = vrot.lane.b32.xlu1 %v521_v14, %s3687_s15  ;;  %v3988_v31 = vpop.permute.xlu2 %625  ;;  %v1364_v14 = vsub.f32 %v1120_v58, %v1197_v6 }
  0xa3   : > { %v3990_v32 = vpop.permute.xlu1 %573  ;;  %v1365_v40 = vand.u32 4294901760, %v1364_v14  ;;  %1459 = vmatpush.msra.mxu2 %v1364_v14 }
  0xa4   : > { %745 = vrot.lane.b32.xlu0 %v3869_v63, %s3688_s16  ;;  %v1353_v63 = vand.u32 4294901760, %v1352_v56 }
  0xa6   : > { %v3994_v33 = vpop.permute.xlu0 %571  ;;  %v1354_v12 = vsub.f32 %v1352_v56, %v1353_v63  ;;  %1681 = vmatpush.msrb.mxu0 %v1353_v63 }
  0xa7   : > { %697 = vrot.lane.b32.xlu2 %v3956_v23, %s3685_s13 }
  0xa8   : > { %v1355_v15 = vand.u32 4294901760, %v1354_v12  ;;  %1685 = vmatpush.msrb.mxu0 %v1359_v39 }
  0xa9   : > { %945 = vrot.lane.b32.xlu1 %v3996_v34, %s3689_s17  ;;  %v4002_v35 = vpop.permute.xlu2 %631 }
  0xaa   : > { %1689 = vmatpush.msrb.mxu0 %v1365_v40 }
  0xab   : > { %v4004_v36 = vpop.permute.xlu1 %579 }
  0xac   : > { %895 = vrot.lane.b32.xlu0 %v3860_v60, %s3690_s18 }
  0xae   : > { %v4010_v38 = vpop.permute.xlu0 %577 }
  0xaf   : > { %847 = vrot.lane.b32.xlu2 %v4008_v37, %s3686_s14 }
  0xb1   : > { %797 = vrot.lane.b32.xlu1 %v3969_v26, %s3687_s15  ;;  %v4019_v41 = vpop.permute.xlu2 %687 }
  0xb3   : > { %v4026_v44 = vpop.permute.xlu1 %585 }
  0xb4   : > { %747 = vrot.lane.b32.xlu0 %v3862_v62, %s3688_s16  ;;  %v1348_v62 = vsub.f32 %v1346_v49, %v1347_v55  ;;  %v1366_v49 = vsub.f32 %v1364_v14, %v1365_v40 }
  0xb6   : > { %v4042_v51 = vpop.permute.xlu0 %583  ;;  %v1349_v11 = vand.u32 4294901760, %v1348_v62  ;;  %v1367_v56 = vand.u32 4294901760, %v1366_v49  ;;  %v4080_v62 = vld [vmem:[#allocation2 + $0x52] sm:$0xff]  ;;  %v484_v49 = vld [vmem:[#allocation2 + $0x8] sm:$0xff] }
  0xb7   : > { %699 = vrot.lane.b32.xlu2 %v3979_v29, %s3685_s13 }
  0xb8   : > { %1350 = vmatpush.msra.mxu1 %v1349_v11 }
  0xb9   : > { %947 = vrot.lane.b32.xlu1 %v4044_v52, %s3689_s17  ;;  %v4060_v59 = vpop.permute.xlu2 %837 }
  0xba   : > { %1356 = vmatpush.msra.mxu1 %v1355_v15 }
  0xbb   : > { %v624_v9 = vpop.permute.xlu1 %623 }
  0xbc   : > { %897 = vrot.lane.b32.xlu0 %v3881_v2, %s3690_s18  ;;  %1362 = vmatpush.msra.mxu1 %v1361_v54 }
  0xbe   : > { %v4066_v45 = vpop.permute.xlu0 %589  ;;  %1368 = vmatpush.msra.mxu1 %v1367_v56 }
  0xbf   : > { %849 = vrot.lane.b32.xlu2 %v4064_v43, %s3686_s14 }
  0xc0   : > { %1767 = vmatpush.msrb.mxu1 %v4021_v42 }
  0xc1   : > { %799 = vrot.lane.b32.xlu1 %v3996_v34, %s3687_s15  ;;  %v4072_v53 = vpop.permute.xlu2 %689 }
  0xc2   : > { %1769 = vmatpush.msrb.mxu1 %v4029_v46 }
  0xc3   : > { %v4074_v58 = vpop.permute.xlu1 %629 }
  0xc4   : > { %749 = vrot.lane.b32.xlu0 %v3860_v60, %s3688_s16  ;;  %1771 = vmatpush.msrb.mxu1 %v4039_v50 }
  0xc6   : > { %v4078_v61 = vpop.permute.xlu0 %627  ;;  %1773 = vmatpush.msrb.mxu1 %v1195_v57  ;;  %v4108_v57 = vld [vmem:[#allocation2 + $0x5a] sm:$0xff] }
  0xc7   : > { %637 = vrot.lane.b32.xlu2 %v3969_v26, %s3684_s12  ;;  %v483_v26 = vld [vmem:[#allocation2] sm:$0xff] }
  0xc8   : > { %1775 = vmatpush.msrb.mxu1 %v1197_v6  ;;  %v985_v50 = vsel %vm460_vm0, %v483_v26, %v3967_v25 }
  0xc9   : > { %949 = vrot.lane.b32.xlu1 %v4080_v62, %s3689_s17  ;;  %v4088_v48 = vpop.permute.xlu2 %839  ;;  %v1002_v63 = vsel %vm1001_vm2, %v985_v50, %v624_v9  ;;  %v4119_v9 = vld [vmem:[#allocation2 + $0x58] sm:$0xff] }
  0xcb   : > { %v4091_v60 = vpop.permute.xlu1 %635 }
  0xcc   : > { %899 = vrot.lane.b32.xlu0 %v3875_v1, %s3690_s18 }
  0xce   : > { %v4095_v42 = vpop.permute.xlu0 %633 }
  0xcf   : > { %801 = vrot.lane.b32.xlu2 %v4044_v52, %s3687_s15 }
  0xd1   : > { %751 = vrot.lane.b32.xlu1 %v3881_v2, %s3688_s16  ;;  %v4101_v46 = vpop.permute.xlu2 %691  ;;  %v1019_v2 = vsel %vm1018_vm3, %v1002_v63, %v4019_v41 }
  0xd3   : > { %v788_v55 = vpop.permute.xlu1 %787 }
  0xd4   : > { %701 = vrot.lane.b32.xlu0 %v4008_v37, %s3685_s13 }
  0xd6   : > { %v738_v6 = vpop.permute.xlu0 %737 }
  0xd7   : > { %951 = vrot.lane.b32.xlu2 %v4108_v57, %s3689_s17  ;;  %v1036_v25 = vsel %vm1035_vm4, %v1019_v2, %v738_v6 }
  0xd8   : > { %v1053_v11 = vsel %vm1052_vm5, %v1036_v25, %v788_v55 }
  0xd9   : > { %901 = vrot.lane.b32.xlu1 %v3873_v0, %s3690_s18  ;;  %v4117_v7 = vpop.permute.xlu2 %841  ;;  %v1070_v14 = vsel %vm1069_vm6, %v1053_v11, %v4060_v59  ;;  %v986_v59 = vsel %vm460_vm0, %v484_v49, %v3983_v30 }
  0xda   : > { %v1003_v26 = vsel %vm1001_vm2, %v986_v59, %v3988_v31  ;;  %v4181_v59 = vld [vmem:[#allocation2 + $0x68] sm:$0xff] }
  0xdb   : > { %v938_v12 = vpop.permute.xlu1 %937  ;;  %v1020_v63 = vsel %vm1018_vm3, %v1003_v26, %v4072_v53 }
  0xdc   : > { %851 = vrot.lane.b32.xlu0 %v4119_v9, %s3686_s14 }
  0xde   : > { %v888_v41 = vpop.permute.xlu0 %887 }
  0xdf   : > { %v1087_v15 = vsel %vm1086_vm7, %v1070_v14, %v888_v41  ;;  %753 = vrot.lane.b32.xlu2 %v3875_v1, %s3688_s16 }
  0xe0   : > { %v1104_v39 = vsel %vm1103_vm8, %v1087_v15, %v938_v12 }
  0xe1   : > { %v1127_v40 = vsel %vm1125_vm9, %v1104_v39, 0  ;;  %703 = vrot.lane.b32.xlu1 %v4064_v43, %s3685_s13  ;;  %v4133_v47 = vpop.permute.xlu2 %693  ;;  %v4168_v39 = vld [vmem:[#allocation2 + $0x62] sm:$0xff] }
  0xe2   : > { %v4135_v54 = vand.u32 4294901760, %v1127_v40 }
  0xe3   : > { %v790_v56 = vpop.permute.xlu1 %789 }
  0xe4   : > { %639 = vrot.lane.b32.xlu0 %v3996_v34, %s3684_s12  ;;  %1370 = vmatmul.f32.vlgmr.msra.gmra.mxu1 %v4135_v54  ;;  %v1200_v1 = vsub.f32 %v1127_v40, %v4135_v54  ;;  %v4149_v34 = vld [vmem:[#allocation2 + $0x60] sm:$0xff] }
  0xe6   : > { %v740_v50 = vpop.permute.xlu0 %739  ;;  %1462 = vmatmul.f32.vlgmr.msra.gmra.mxu2 %v1200_v1  ;;  %v1201_v55 = vand.u32 4294901760, %v1200_v1 }
  0xe7   : > { %903 = vrot.lane.b32.xlu2 %v3893_v5, %s3690_s18  ;;  %v1037_v6 = vsel %vm1035_vm4, %v1020_v63, %v740_v50 }
  0xe8   : > { %1565 = vmatmul.f32.vlgmr.msra.gmra.mxu3 %v1201_v55  ;;  %v1202_v2 = vsub.f32 %v1200_v1, %v1201_v55  ;;  %v1054_v25 = vsel %vm1052_vm5, %v1037_v6, %v790_v56  ;;  %v987_v1 = vsel %vm460_vm0, %v3906_v13, %v3963_v10 }
  0xe9   : > { %853 = vrot.lane.b32.xlu1 %v4149_v34, %s3686_s14  ;;  %v4154_v30 = vpop.permute.xlu2 %843  ;;  %v1071_v53 = vsel %vm1069_vm6, %v1054_v25, %v4088_v48  ;;  %v4199_v25 = vld [vmem:[#allocation2 + $0x6a] sm:$0xff] }
  0xea   : > { %v1203_v31 = vand.u32 4294901760, %v1202_v2 }
  0xeb   : > { %v940_v11 = vpop.permute.xlu1 %939 }
  0xec   : > { %803 = vrot.lane.b32.xlu0 %v4080_v62, %s3687_s15  ;;  %1204 = vmatmul.f32.vlgmr.msra.gmra.mxu0 %v1203_v31 }
  0xee   : > { %v890_v12 = vpop.permute.xlu0 %889 }
  0xef   : > { %v1088_v41 = vsel %vm1086_vm7, %v1071_v53, %v890_v12  ;;  %705 = vrot.lane.b32.xlu2 %v4119_v9, %s3685_s13 }
  0xf0   : > { %v1105_v14 = vsel %vm1103_vm8, %v1088_v41, %v940_v11 }
  0xf1   : > { %v1130_v15 = vsel %vm1125_vm9, %v1105_v14, 0  ;;  %641 = vrot.lane.b32.xlu1 %v4044_v52, %s3684_s12  ;;  %v4170_v40 = vpop.permute.xlu2 %695  ;;  %v1004_v52 = vsel %vm1001_vm2, %v987_v1, %v4078_v61 }
  0xf2   : > { %v4172_v49 = vand.u32 4294901760, %v1130_v15  ;;  %v1021_v55 = vsel %vm1018_vm3, %v1004_v52, %v4101_v46 }
  0xf3   : > { %v792_v48 = vpop.permute.xlu1 %791 }
  0xf4   : > { %953 = vrot.lane.b32.xlu0 %v4168_v39, %s3689_s17  ;;  %1374 = vmatmul.f32.gmra.mxu1 %v4172_v49  ;;  %v1208_v56 = vsub.f32 %v1130_v15, %v4172_v49 }
  0xf6   : > { %v742_v26 = vpop.permute.xlu0 %741  ;;  %1467 = vmatmul.f32.gmra.mxu2 %v1208_v56  ;;  %v1209_v50 = vand.u32 4294901760, %v1208_v56 }
  0xf7   : > { %855 = vrot.lane.b32.xlu2 %v4181_v59, %s3686_s14  ;;  %v1038_v63 = vsel %vm1035_vm4, %v1021_v55, %v742_v26 }
  0xf8   : > { %1571 = vmatmul.f32.gmra.mxu3 %v1209_v50  ;;  %v1210_v6 = vsub.f32 %v1208_v56, %v1209_v50  ;;  %v1055_v61 = vsel %vm1052_vm5, %v1038_v63, %v792_v48  ;;  %v4233_v50 = vld [vmem:[#allocation2 + $0x72] sm:$0xff] }
  0xf9   : > { %805 = vrot.lane.b32.xlu1 %v4108_v57, %s3687_s15  ;;  %v4192_v13 = vpop.permute.xlu2 %845  ;;  %v1072_v46 = vsel %vm1069_vm6, %v1055_v61, %v4117_v7  ;;  %v367_v61 = vld [vmem:[%s3756_s10 + $0x1e8] sm:$0xff] }
  0xfa   : > { %v1211_v10 = vand.u32 4294901760, %v1210_v6 }
  0xfb   : > { %v942_v2 = vpop.permute.xlu1 %941 }
  0xfc   : > { %755 = vrot.lane.b32.xlu0 %v3873_v0, %s3688_s16  ;;  %1212 = vmatmul.f32.gmra.mxu0 %v1211_v10  ;;  %v345_v10 = vld [vmem:[%s3756_s10 + $0x138] sm:$0xff] }
  0xfe   : > { %v892_v31 = vpop.permute.xlu0 %891 }
  0xff   : > { %v1089_v11 = vsel %vm1086_vm7, %v1072_v46, %v892_v31  ;;  %643 = vrot.lane.b32.xlu2 %v4080_v62, %s3684_s12  ;;  %v988_v62 = vsel %vm460_vm0, %v3919_v17, %v3977_v28  ;;  %v389_v46 = vld [vmem:[%s3756_s10 + $0x298] sm:$0xff] }
 0x100   : > { %v1106_v53 = vsel %vm1103_vm8, %v1089_v11, %v942_v2  ;;  %v1005_v15 = vsel %vm1001_vm2, %v988_v62, %v4074_v58 }
 0x101   : > { %v1133_v12 = vsel %vm1125_vm9, %v1106_v53, 0  ;;  %955 = vrot.lane.b32.xlu1 %v4199_v25, %s3689_s17  ;;  %v4208_v0 = vpop.permute.xlu2 %697  ;;  %v1022_v1 = vsel %vm1018_vm3, %v1005_v15, %v4133_v47 }
 0x102   : > { %v4210_v41 = vand.u32 4294901760, %v1133_v12 }
 0x103   : > { %v794_v7 = vpop.permute.xlu1 %793 }
 0x104   : > { %905 = vrot.lane.b32.xlu0 %v3887_v4, %s3690_s18  ;;  %1378 = vmatmul.f32.gmra.mxu1 %v4210_v41  ;;  %v1216_v14 = vsub.f32 %v1133_v12, %v4210_v41 }
 0x106   : > { %v744_v48 = vpop.permute.xlu0 %743  ;;  %1472 = vmatmul.f32.gmra.mxu2 %v1216_v14  ;;  %v1217_v56 = vand.u32 4294901760, %v1216_v14 }
 0x107   : > { %807 = vrot.lane.b32.xlu2 %v4168_v39, %s3687_s15  ;;  %v1039_v52 = vsel %vm1035_vm4, %v1022_v1, %v744_v48  ;;  %v989_v48 = vsel %vm460_vm0, %v3912_v16, %v3936_v19 }
 0x108   : > { %1577 = vmatmul.f32.gmra.mxu3 %v1217_v56  ;;  %v1218_v26 = vsub.f32 %v1216_v14, %v1217_v56  ;;  %v1056_v58 = vsel %vm1052_vm5, %v1039_v52, %v794_v7  ;;  %v4252_v7 = vld [vmem:[#allocation2 + $0x70] sm:$0xff]  ;;  %v1006_v56 = vsel %vm1001_vm2, %v989_v48, %v4002_v35 }
 0x109   : > { %757 = vrot.lane.b32.xlu1 %v3893_v5, %s3688_s16  ;;  %v4228_v17 = vpop.permute.xlu2 %847  ;;  %v1073_v55 = vsel %vm1069_vm6, %v1056_v58, %v4154_v30  ;;  %v323_v5 = vld [vmem:[%s3756_s10 + $0x88] sm:$0xff]  ;;  %v433_v30 = vmax.f32 %v367_v61, %v389_v46 }
 0x10a   : > { %v1219_v28 = vand.u32 4294901760, %v1218_v26  ;;  %v411_v31 = vmax.f32 %v323_v5, %v345_v10  ;;  %v1023_v26 = vsel %vm1018_vm3, %v1006_v56, %v4170_v40  ;;  %v368_v5 = vld [vmem:[%s3756_s10 + $0x1f0] sm:$0xff]  ;;  %v4284_v10 = vld [vmem:[#allocation2 + $0x78] sm:$0xff] }
 0x10b   : > { %v944_v47 = vpop.permute.xlu1 %943 }
 0x10c   : > { %707 = vrot.lane.b32.xlu0 %v4149_v34, %s3685_s13  ;;  %1220 = vmatmul.f32.gmra.mxu0 %v1219_v28  ;;  %v455_v62 = vmax.f32 %v411_v31, %v433_v30 }
 0x10e   : > { %v894_v63 = vpop.permute.xlu0 %893  ;;  %478 = vst.msk [vmem:[#allocation2 + $0x88] sm:$0xff] %vm460_vm0, %v455_v62 }
 0x10f   : > { %v1090_v6 = vsel %vm1086_vm7, %v1073_v55, %v894_v63  ;;  %957 = vrot.lane.b32.xlu2 %v4233_v50, %s3689_s17  ;;  %v324_v63 = vld [vmem:[%s3756_s10 + $0x90] sm:$0xff] }
 0x110   : > { %v1107_v2 = vsel %vm1103_vm8, %v1090_v6, %v944_v47  ;;  %v346_v6 = vld [vmem:[%s3756_s10 + $0x140] sm:$0xff] }
 0x111   : > { %v1136_v11 = vsel %vm1125_vm9, %v1107_v2, 0  ;;  %907 = vrot.lane.b32.xlu1 %v3885_v3, %s3690_s18  ;;  %v4248_v53 = vpop.permute.xlu2 %699  ;;  %v390_v2 = vld [vmem:[%s3756_s10 + $0x2a0] sm:$0xff]  ;;  %v412_v46 = vmax.f32 %v324_v63, %v346_v6 }
 0x112   : > { %v4250_v12 = vand.u32 4294901760, %v1136_v11  ;;  %v434_v31 = vmax.f32 %v368_v5, %v390_v2  ;;  %v991_v5 = vsel %vm460_vm0, %v3940_v20, %v3994_v33  ;;  %v391_v33 = vld [vmem:[%s3756_s10 + $0x2a8] sm:$0xff] }
 0x113   : > { %v796_v14 = vpop.permute.xlu1 %795 }
 0x114   : > { %857 = vrot.lane.b32.xlu0 %v4252_v7, %s3686_s14  ;;  %1382 = vmatmul.f32.gmra.mxu1 %v4250_v12  ;;  %v1224_v15 = vsub.f32 %v1136_v11, %v4250_v12 }
 0x116   : > { %v746_v1 = vpop.permute.xlu0 %745  ;;  %1477 = vmatmul.f32.gmra.mxu2 %v1224_v15  ;;  %v1225_v52 = vand.u32 4294901760, %v1224_v15 }
 0x117   : > { %759 = vrot.lane.b32.xlu2 %v3887_v4, %s3688_s16  ;;  %v1040_v28 = vsel %vm1035_vm4, %v1023_v26, %v746_v1 }
 0x118   : > { %1583 = vmatmul.f32.gmra.mxu3 %v1225_v52  ;;  %v1226_v16 = vsub.f32 %v1224_v15, %v1225_v52  ;;  %v1057_v58 = vsel %vm1052_vm5, %v1040_v28, %v796_v14  ;;  %v456_v14 = vmax.f32 %v412_v46, %v434_v31  ;;  %v990_v15 = vsel %vm460_vm0, %v3926_v18, %v3945_v21  ;;  %v4312_v18 = vld [vmem:[#allocation2 + $0x7a] sm:$0xff] }
 0x119   : > { %709 = vrot.lane.b32.xlu1 %v4181_v59, %s3685_s13  ;;  %v4271_v19 = vpop.permute.xlu2 %849  ;;  %v1074_v4 = vsel %vm1069_vm6, %v1057_v58, %v4192_v13  ;;  %v1007_v48 = vsel %vm1001_vm2, %v990_v15, %v4095_v42  ;;  %v325_v31 = vld [vmem:[%s3756_s10 + $0x98] sm:$0xff]  ;;  %v533_v15 = vld [vmem:[#allocation2 + $0x81] sm:$0xff] }
 0x11a   : > { %v1227_v35 = vand.u32 4294901760, %v1226_v16  ;;  %479 = vst.msk [vmem:[#allocation2 + $0x90] sm:$0xff] %vm460_vm0, %v456_v14  ;;  %v1024_v52 = vsel %vm1018_vm3, %v1007_v48, %v4208_v0  ;;  %v4319_v0 = vld [vmem:[#allocation2 + $0x80] sm:$0xff]  ;;  %v369_v14 = vld [vmem:[%s3756_s10 + $0x1f8] sm:$0xff] }
 0x11b   : > { %v946_v40 = vpop.permute.xlu1 %945  ;;  %v435_v48 = vmax.f32 %v369_v14, %v391_v33 }
 0x11c   : > { %645 = vrot.lane.b32.xlu0 %v4108_v57, %s3684_s12  ;;  %1228 = vmatmul.f32.gmra.mxu0 %v1227_v35 }
 0x11e   : > { %v896_v47 = vpop.permute.xlu0 %895 }
 0x11f   : > { %v1091_v55 = vsel %vm1086_vm7, %v1074_v4, %v896_v47  ;;  %909 = vrot.lane.b32.xlu2 %v3899_v8, %s3690_s18 }
 0x120   : > { %v1108_v61 = vsel %vm1103_vm8, %v1091_v55, %v946_v40 }
 0x121   : > { %v1139_v57 = vsel %vm1125_vm9, %v1108_v61, 0  ;;  %859 = vrot.lane.b32.xlu1 %v4284_v10, %s3686_s14  ;;  %v4291_v13 = vpop.permute.xlu2 %637  ;;  %v1008_v61 = vsel %vm1001_vm2, %v991_v5, %v4091_v60 }
 0x122   : > { %v4293_v11 = vand.u32 4294901760, %v1139_v57 }
 0x123   : > { %v798_v30 = vpop.permute.xlu1 %797 }
 0x124   : > { %809 = vrot.lane.b32.xlu0 %v4199_v25, %s3687_s15  ;;  %1386 = vmatmul.f32.gmra.mxu1 %v4293_v11  ;;  %v1232_v62 = vsub.f32 %v1139_v57, %v4293_v11  ;;  %v4343_v57 = vld [vmem:[#allocation2 + $0x82] sm:$0xff] }
 0x126   : > { %v748_v56 = vpop.permute.xlu0 %747  ;;  %1482 = vmatmul.f32.gmra.mxu2 %v1232_v62  ;;  %v1233_v1 = vand.u32 4294901760, %v1232_v62 }
 0x127   : > { %711 = vrot.lane.b32.xlu2 %v4252_v7, %s3685_s13  ;;  %v1041_v26 = vsel %vm1035_vm4, %v1024_v52, %v748_v56 }
 0x128   : > { %1589 = vmatmul.f32.gmra.mxu3 %v1233_v1  ;;  %v1234_v28 = vsub.f32 %v1232_v62, %v1233_v1  ;;  %v1058_v16 = vsel %vm1052_vm5, %v1041_v26, %v798_v30  ;;  %v347_v30 = vld [vmem:[%s3756_s10 + $0x148] sm:$0xff] }
 0x129   : > { %647 = vrot.lane.b32.xlu1 %v4168_v39, %s3684_s12  ;;  %v4314_v21 = vpop.permute.xlu2 %801  ;;  %v1075_v58 = vsel %vm1069_vm6, %v1058_v16, %v4228_v17  ;;  %v413_v60 = vmax.f32 %v325_v31, %v347_v30  ;;  %v392_v30 = vld [vmem:[%s3756_s10 + $0x2b0] sm:$0xff] }
 0x12a   : > { %v1235_v42 = vand.u32 4294901760, %v1234_v28 }
 0x12b   : > { %v948_v35 = vpop.permute.xlu1 %947  ;;  %v457_v52 = vmax.f32 %v413_v60, %v435_v48 }
 0x12c   : > { %959 = vrot.lane.b32.xlu0 %v4312_v18, %s3689_s17  ;;  %1236 = vmatmul.f32.gmra.mxu0 %v1235_v42 }
 0x12d   : > { %480 = vst.msk [vmem:[#allocation2 + $0x98] sm:$0xff] %vm460_vm0, %v457_v52 }
 0x12e   : > { %v898_v40 = vpop.permute.xlu0 %897 }
 0x12f   : > { %v1092_v39 = vsel %vm1086_vm7, %v1075_v58, %v898_v40  ;;  %861 = vrot.lane.b32.xlu2 %v4319_v0, %s3686_s14 }
 0x130   : > { %v1109_v4 = vsel %vm1103_vm8, %v1092_v39, %v948_v35  ;;  %v4376_v39 = vld [vmem:[#allocation2 + $0x8a] sm:$0xff] }
 0x131   : > { %v1142_v47 = vsel %vm1125_vm9, %v1109_v4, 0  ;;  %811 = vrot.lane.b32.xlu1 %v4233_v50, %s3687_s15  ;;  %v4330_v55 = vpop.permute.xlu2 %951 }
 0x132   : > { %v4332_v63 = vand.u32 4294901760, %v1142_v47 }
 0x133   : > { %v800_v17 = vpop.permute.xlu1 %799 }
 0x134   : > { %761 = vrot.lane.b32.xlu0 %v3885_v3, %s3688_s16  ;;  %1390 = vmatmul.f32.gmra.mxu1 %v4332_v63  ;;  %v1240_v6 = vsub.f32 %v1142_v47, %v4332_v63  ;;  %v1025_v3 = vsel %vm1018_vm3, %v1008_v61, %v4248_v53  ;;  %v326_v61 = vld [vmem:[%s3756_s10 + $0xa0] sm:$0xff] }
 0x136   : > { %v750_v2 = vpop.permute.xlu0 %749  ;;  %1487 = vmatmul.f32.gmra.mxu2 %v1240_v6  ;;  %v1241_v46 = vand.u32 4294901760, %v1240_v6 }
 0x137   : > { %649 = vrot.lane.b32.xlu2 %v4199_v25, %s3684_s12  ;;  %v1042_v62 = vsel %vm1035_vm4, %v1025_v3, %v750_v2  ;;  %v348_v2 = vld [vmem:[%s3756_s10 + $0x150] sm:$0xff] }
 0x138   : > { %1595 = vmatmul.f32.gmra.mxu3 %v1241_v46  ;;  %v1242_v20 = vsub.f32 %v1240_v6, %v1241_v46  ;;  %v1059_v53 = vsel %vm1052_vm5, %v1042_v62, %v800_v17  ;;  %v4383_v6 = vld [vmem:[#allocation2 + $0x89] sm:$0xff]  ;;  %v370_v46 = vld [vmem:[%s3756_s10 + $0x200] sm:$0xff] }
 0x139   : > { %961 = vrot.lane.b32.xlu1 %v4343_v57, %s3689_s17  ;;  %v4357_v1 = vpop.permute.xlu2 %753  ;;  %v1076_v26 = vsel %vm1069_vm6, %v1059_v53, %v4271_v19  ;;  %v436_v14 = vmax.f32 %v370_v46, %v392_v30 }
 0x13a   : > { %v1243_v56 = vand.u32 4294901760, %v1242_v20 }
 0x13b   : > { %v950_v25 = vpop.permute.xlu1 %949 }
 0x13c   : > { %911 = vrot.lane.b32.xlu0 %v533_v15, %s3690_s18  ;;  %1244 = vmatmul.f32.gmra.mxu0 %v1243_v56 }
 0x13e   : > { %v900_v28 = vpop.permute.xlu0 %899 }
 0x13f   : > { %v1093_v42 = vsel %vm1086_vm7, %v1076_v26, %v900_v28  ;;  %813 = vrot.lane.b32.xlu2 %v4312_v18, %s3687_s15 }
 0x140   : > { %v1110_v16 = vsel %vm1103_vm8, %v1093_v42, %v950_v25 }
 0x141   : > { %v1145_v35 = vsel %vm1125_vm9, %v1110_v16, 0  ;;  %763 = vrot.lane.b32.xlu1 %v3899_v8, %s3688_s16  ;;  %v4378_v4 = vpop.permute.xlu2 %903  ;;  %v992_v8 = vsel %vm460_vm0, %v3956_v23, %v3990_v32  ;;  %v414_v23 = vmax.f32 %v326_v61, %v348_v2  ;;  %v532_v32 = vld [vmem:[#allocation2 + $0x88] sm:$0xff] }
 0x142   : > { %v4370_v58 = vand.u32 4294901760, %v1145_v35  ;;  %v1009_v5 = vsel %vm1001_vm2, %v992_v8, %v4291_v13 }
 0x143   : > { %v752_v40 = vpop.permute.xlu1 %751  ;;  %v458_v33 = vmax.f32 %v414_v23, %v436_v14 }
 0x144   : > { %713 = vrot.lane.b32.xlu0 %v4284_v10, %s3685_s13  ;;  %1394 = vmatmul.f32.gmra.mxu1 %v4370_v58  ;;  %v1248_v19 = vsub.f32 %v1145_v35, %v4370_v58  ;;  %v537_v35 = vld [vmem:[#allocation2 + $0x90] sm:$0xff] }
 0x145   : > { %481 = vst.msk [vmem:[#allocation2 + $0xa0] sm:$0xff] %vm460_vm0, %v458_v33 }
 0x146   : > { %v702_v47 = vpop.permute.xlu0 %701  ;;  %1492 = vmatmul.f32.gmra.mxu2 %v1248_v19  ;;  %v1249_v17 = vand.u32 4294901760, %v1248_v19 }
 0x147   : > { %963 = vrot.lane.b32.xlu2 %v4376_v39, %s3689_s17  ;;  %v1026_v3 = vsel %vm1018_vm3, %v1009_v5, %v702_v47 }
 0x148   : > { %1601 = vmatmul.f32.gmra.mxu3 %v1249_v17  ;;  %v1250_v31 = vsub.f32 %v1248_v19, %v1249_v17  ;;  %v1043_v13 = vsel %vm1035_vm4, %v1026_v3, %v752_v40 }
 0x149   : > { %913 = vrot.lane.b32.xlu1 %v4383_v6, %s3690_s18  ;;  %v1060_v60 = vsel %vm1052_vm5, %v1043_v13, %v4314_v21  ;;  %v706_v56 = vpop.permute.xlu2 %705  ;;  %v539_v21 = vld [vmem:[#allocation2 + $0x91] sm:$0xff] }
 0x14a   : > { %v1251_v62 = vand.u32 4294901760, %v1250_v31 }
 0x14b   : > { %v902_v20 = vpop.permute.xlu1 %901 }
 0x14c   : > { %863 = vrot.lane.b32.xlu0 %v532_v32, %s3686_s14  ;;  %1252 = vmatmul.f32.gmra.mxu0 %v1251_v62 }
 0x14e   : > { %v852_v48 = vpop.permute.xlu0 %851 }
 0x14f   : > { %v1077_v53 = vsel %vm1069_vm6, %v1060_v60, %v852_v48  ;;  %765 = vrot.lane.b32.xlu2 %v533_v15, %s3688_s16  ;;  %v542_v60 = vld [vmem:[#allocation2 + $0x9a] sm:$0xff] }
 0x150   : > { %v1094_v25 = vsel %vm1086_vm7, %v1077_v53, %v902_v20  ;;  %v540_v53 = vld [vmem:[#allocation2 + $0x99] sm:$0xff] }
 0x151   : > { %v1111_v52 = vsel %vm1103_vm8, %v1094_v25, %v4330_v55  ;;  %715 = vrot.lane.b32.xlu1 %v4319_v0, %s3685_s13  ;;  %v993_v0 = vsel %vm460_vm0, %v3979_v29, %v3952_v22  ;;  %v856_v40 = vpop.permute.xlu2 %855  ;;  %v541_v29 = vld [vmem:[#allocation2 + $0x92] sm:$0xff] }
 0x152   : > { %v1148_v26 = vsel %vm1125_vm9, %v1111_v52, 0 }
 0x153   : > { %v4409_v28 = vand.u32 4294901760, %v1148_v26  ;;  %v704_v42 = vpop.permute.xlu1 %703 }
 0x154   : > { %651 = vrot.lane.b32.xlu0 %v4233_v50, %s3684_s12 }
 0x155   : > { %1398 = vmatmul.f32.gmra.mxu1 %v4409_v28  ;;  %v1256_v15 = vsub.f32 %v1148_v26, %v4409_v28 }
 0x156   : > { %v640_v16 = vpop.permute.xlu0 %639 }
 0x157   : > { %1497 = vmatmul.f32.gmra.mxu2 %v1256_v15  ;;  %v1257_v55 = vand.u32 4294901760, %v1256_v15  ;;  %915 = vrot.lane.b32.xlu2 %v539_v21, %s3690_s18  ;;  %v1010_v19 = vsel %vm1001_vm2, %v993_v0, %v640_v16  ;;  %v995_v0 = vsel %vm460_vm0, %v4064_v43, %v4004_v36 }
 0x158   : > { %v1027_v17 = vsel %vm1018_vm3, %v1010_v19, %v704_v42 }
 0x159   : > { %1607 = vmatmul.f32.gmra.mxu3 %v1257_v55  ;;  %865 = vrot.lane.b32.xlu1 %v537_v35, %s3686_s14  ;;  %v1258_v50 = vsub.f32 %v1256_v15, %v1257_v55  ;;  %v1044_v61 = vsel %vm1035_vm4, %v1027_v17, %v4357_v1  ;;  %v644_v2 = vpop.permute.xlu2 %643 }
 0x15b   : > { %v1259_v8 = vand.u32 4294901760, %v1258_v50  ;;  %v854_v47 = vpop.permute.xlu1 %853  ;;  %v1012_v50 = vsel %vm1001_vm2, %v995_v0, %v644_v2 }
 0x15c   : > { %815 = vrot.lane.b32.xlu0 %v4343_v57, %s3687_s15  ;;  %v538_v57 = vld [vmem:[#allocation2 + $0x98] sm:$0xff] }
 0x15d   : > { %1260 = vmatmul.f32.gmra.mxu0 %v1259_v8 }
 0x15e   : > { %v804_v5 = vpop.permute.xlu0 %803 }
 0x15f   : > { %717 = vrot.lane.b32.xlu2 %v532_v32, %s3685_s13  ;;  %v1061_v22 = vsel %vm1052_vm5, %v1044_v61, %v804_v5 }
 0x160   : > { %v1078_v46 = vsel %vm1069_vm6, %v1061_v22, %v854_v47 }
 0x161   : > { %653 = vrot.lane.b32.xlu1 %v4312_v18, %s3684_s12  ;;  %v1095_v31 = vsel %vm1086_vm7, %v1078_v46, %v4378_v4  ;;  %v994_v18 = vsel %vm460_vm0, %v4008_v37, %v4010_v38  ;;  %v808_v13 = vpop.permute.xlu2 %807 }
 0x163   : > { %v642_v3 = vpop.permute.xlu1 %641 }
 0x164   : > { %965 = vrot.lane.b32.xlu0 %v541_v29, %s3689_s17  ;;  %v1011_v62 = vsel %vm1001_vm2, %v994_v18, %v642_v3 }
 0x166   : > { %v954_v30 = vpop.permute.xlu0 %953 }
 0x167   : > { %v1112_v1 = vsel %vm1103_vm8, %v1095_v31, %v954_v30  ;;  %867 = vrot.lane.b32.xlu2 %v538_v57, %s3686_s14 }
 0x168   : > { %v1151_v23 = vsel %vm1125_vm9, %v1112_v1, 0 }
 0x169   : > { %v4437_v32 = vand.u32 4294901760, %v1151_v23  ;;  %817 = vrot.lane.b32.xlu1 %v4376_v39, %s3687_s15  ;;  %v1028_v39 = vsel %vm1018_vm3, %v1011_v62, %v706_v56  ;;  %v958_v42 = vpop.permute.xlu2 %957 }
 0x16b   : > { %v1264_v14 = vsub.f32 %v1151_v23, %v4437_v32  ;;  %1402 = vmatmul.f32.gmra.mxu1 %v4437_v32  ;;  %v806_v4 = vpop.permute.xlu1 %805 }
 0x16c   : > { %767 = vrot.lane.b32.xlu0 %v4383_v6, %s3688_s16 }
 0x16d   : > { %1502 = vmatmul.f32.gmra.mxu2 %v1264_v14  ;;  %v1265_v20 = vand.u32 4294901760, %v1264_v14 }
 0x16e   : > { %v756_v33 = vpop.permute.xlu0 %755 }
 0x16f   : > { %1613 = vmatmul.f32.gmra.mxu3 %v1265_v20  ;;  %v1266_v48 = vsub.f32 %v1264_v14, %v1265_v20  ;;  %v1045_v37 = vsel %vm1035_vm4, %v1028_v39, %v756_v33  ;;  %v996_v14 = vsel %vm460_vm0, %v4119_v9, %v3961_v24 }
 0x170   : > { %v1062_v25 = vsel %vm1052_vm5, %v1045_v37, %v806_v4 }
 0x171   : > { %v1267_v38 = vand.u32 4294901760, %v1266_v48  ;;  %967 = vrot.lane.b32.xlu1 %v542_v60, %s3689_s17  ;;  %v1079_v6 = vsel %vm1069_vm6, %v1062_v25, %v856_v40  ;;  %v760_v17 = vpop.permute.xlu2 %759 }
 0x173   : > { %1268 = vmatmul.f32.gmra.mxu0 %v1267_v38  ;;  %v956_v52 = vpop.permute.xlu1 %955 }
 0x174   : > { %917 = vrot.lane.b32.xlu0 %v540_v53, %s3690_s18 }
 0x176   : > { %v906_v26 = vpop.permute.xlu0 %905 }
 0x177   : > { %v1096_v56 = vsel %vm1086_vm7, %v1079_v6, %v906_v26 }
 0x178   : > { %v1113_v21 = vsel %vm1103_vm8, %v1096_v56, %v956_v52 }
 0x179   : > { %v1154_v15 = vsel %vm1125_vm9, %v1113_v21, 0  ;;  %v910_v57 = vpop.permute.xlu2 %909 }
 0x17a   : > { %v4458_v16 = vand.u32 4294901760, %v1154_v15 }
 0x17b   : > { %v758_v35 = vpop.permute.xlu1 %757 }
 0x17c   : > { %1406 = vmatmul.f32.gmra.mxu1 %v4458_v16  ;;  %v1272_v55 = vsub.f32 %v1154_v15, %v4458_v16 }
 0x17e   : > { %v708_v40 = vpop.permute.xlu0 %707  ;;  %1507 = vmatmul.f32.gmra.mxu2 %v1272_v55  ;;  %v1273_v19 = vand.u32 4294901760, %v1272_v55 }
 0x17f   : > { %v1029_v8 = vsel %vm1018_vm3, %v1012_v50, %v708_v40 }
 0x180   : > { %1619 = vmatmul.f32.gmra.mxu3 %v1273_v19  ;;  %v1274_v47 = vsub.f32 %v1272_v55, %v1273_v19  ;;  %v1046_v61 = vsel %vm1035_vm4, %v1029_v8, %v758_v35 }
 0x181   : > { %v1063_v29 = vsel %vm1052_vm5, %v1046_v61, %v808_v13  ;;  %v712_v60 = vpop.permute.xlu2 %711 }
 0x182   : > { %v1275_v5 = vand.u32 4294901760, %v1274_v47 }
 0x183   : > { %v908_v22 = vpop.permute.xlu1 %907 }
 0x184   : > { %1276 = vmatmul.f32.gmra.mxu0 %v1275_v5 }
 0x186   : > { %v858_v46 = vpop.permute.xlu0 %857 }
 0x187   : > { %v1080_v36 = vsel %vm1069_vm6, %v1063_v29, %v858_v46 }
 0x188   : > { %v1097_v43 = vsel %vm1086_vm7, %v1080_v36, %v908_v22 }
 0x189   : > { %v1114_v3 = vsel %vm1103_vm8, %v1097_v43, %v958_v42  ;;  %v862_v25 = vpop.permute.xlu2 %861  ;;  %v997_v42 = vsel %vm460_vm0, %v4149_v34, %v4042_v51 }
 0x18a   : > { %v1157_v2 = vsel %vm1125_vm9, %v1114_v3, 0  ;;  %v998_v3 = vsel %vm460_vm0, %v4181_v59, %v4026_v44 }
 0x18b   : > { %v4473_v31 = vand.u32 4294901760, %v1157_v2  ;;  %v710_v30 = vpop.permute.xlu1 %709 }
 0x18d   : > { %1410 = vmatmul.f32.gmra.mxu1 %v4473_v31  ;;  %v1280_v1 = vsub.f32 %v1157_v2, %v4473_v31 }
 0x18e   : > { %v646_v23 = vpop.permute.xlu0 %645 }
 0x18f   : > { %1512 = vmatmul.f32.gmra.mxu2 %v1280_v1  ;;  %v1281_v18 = vand.u32 4294901760, %v1280_v1  ;;  %v1013_v4 = vsel %vm1001_vm2, %v996_v14, %v646_v23 }
 0x190   : > { %v1030_v33 = vsel %vm1018_vm3, %v1013_v4, %v710_v30 }
 0x191   : > { %1625 = vmatmul.f32.gmra.mxu3 %v1281_v18  ;;  %v1282_v62 = vsub.f32 %v1280_v1, %v1281_v18  ;;  %v1047_v48 = vsel %vm1035_vm4, %v1030_v33, %v760_v17  ;;  %v650_v50 = vpop.permute.xlu2 %649 }
 0x192   : > { %v1015_v30 = vsel %vm1001_vm2, %v998_v3, %v650_v50 }
 0x193   : > { %v1283_v13 = vand.u32 4294901760, %v1282_v62  ;;  %v860_v20 = vpop.permute.xlu1 %859 }
 0x195   : > { %1284 = vmatmul.f32.gmra.mxu0 %v1283_v13 }
 0x196   : > { %v810_v39 = vpop.permute.xlu0 %809 }
 0x197   : > { %v1064_v37 = vsel %vm1052_vm5, %v1047_v48, %v810_v39 }
 0x198   : > { %v1081_v38 = vsel %vm1069_vm6, %v1064_v37, %v860_v20 }
 0x199   : > { %v1098_v24 = vsel %vm1086_vm7, %v1081_v38, %v910_v57  ;;  %v814_v29 = vpop.permute.xlu2 %813 }
 0x19b   : > { %v648_v53 = vpop.permute.xlu1 %647 }
 0x19c   : > { %v1014_v15 = vsel %vm1001_vm2, %v997_v42, %v648_v53  ;;  %v1930_v42 = vld [vmem:[%s5752_s1 + $0x8] sm:$0xff] }
 0x19d   : > { %v1031_v0 = vsel %vm1018_vm3, %v1014_v15, %v712_v60 }
 0x19e   : > { %v960_v9 = vpop.permute.xlu0 %959 }
 0x19f   : > { %v1115_v52 = vsel %vm1103_vm8, %v1098_v24, %v960_v9  ;;  %v999_v9 = vsel %vm460_vm0, %v4252_v7, %v3975_v27 }
 0x1a0   : > { %v1160_v6 = vsel %vm1125_vm9, %v1115_v52, 0 }
 0x1a1   : > { %v4488_v26 = vand.u32 4294901760, %v1160_v6  ;;  %v964_v62 = vpop.permute.xlu2 %963 }
 0x1a3   : > { %v1288_v56 = vsub.f32 %v1160_v6, %v4488_v26  ;;  %1414 = vmatmul.f32.gmra.mxu1 %v4488_v26  ;;  %v812_v21 = vpop.permute.xlu1 %811  ;;  %v3691_v6 = vmov 0  }
 0x1a4   : > { %3667 = vset.pattern.permute.xlu0 %v3691_v6  ;;  %3666 = vset.pattern.permute.xlu2 %v3691_v6 }
 0x1a5   : > { %1517 = vmatmul.f32.gmra.mxu2 %v1288_v56  ;;  %v1289_v35 = vand.u32 4294901760, %v1288_v56  ;;  %1952 = vperm.xlu0 %3667, %v1930_v42   ;;  %v4586_v42 = vpop.f32.mrf.mxu0 }
 0x1a6   : > { %v762_v55 = vpop.permute.xlu0 %761  ;;  %3668 = vset.pattern.permute.xlu1 %v3691_v6  ;;  %v1940_v6 = vld [vmem:[%s5752_s1 + $0x58] sm:$0xff] }
 0x1a7   : > { %1631 = vmatmul.f32.gmra.mxu3 %v1289_v35  ;;  %v1290_v40 = vsub.f32 %v1288_v56, %v1289_v35  ;;  %v1048_v19 = vsel %vm1035_vm4, %v1031_v0, %v762_v55  ;;  %v1935_v0 = vld [vmem:[%s5752_s1 + $0x30] sm:$0xff] }
 0x1a8   : > { %v1065_v51 = vsel %vm1052_vm5, %v1048_v19, %v812_v21 }
 0x1a9   : > { %v1291_v8 = vand.u32 4294901760, %v1290_v40  ;;  %v1082_v47 = vsel %vm1069_vm6, %v1065_v51, %v862_v25  ;;  %v766_v38 = vpop.permute.xlu2 %765  ;;  %v3692_v40 = vmov 0.0  }
 0x1aa   : > { %2041 = vst.msk [vmem:[#allocation3] sm:$0xff] %vm1001_vm2, %v3692_v40 }
 0x1ab   : > { %1292 = vmatmul.f32.gmra.mxu0 %v1291_v8  ;;  %v962_v34 = vpop.permute.xlu1 %961  ;;  %2042 = vst.msk [vmem:[#allocation3 + $0x8] sm:$0xff] %vm1001_vm2, %v3692_v40 }
 0x1ac   : > { %2061 = vst.msk [vmem:[#allocation3 + $0x91] sm:$0xff] %vm1001_vm2, %v3692_v40 }
 0x1ad   : > { %1977 = vperm.xlu0 %3667, %v1935_v0   ;;  %2062 = vst.msk [vmem:[#allocation3 + $0x99] sm:$0xff] %vm1001_vm2, %v3692_v40  ;;  %v1936_v0 = vld [vmem:[%s5752_s1 + $0x38] sm:$0xff] }
 0x1ae   : > { %v912_v17 = vpop.permute.xlu0 %911  ;;  %2063 = vst.msk [vmem:[#allocation3 + $0xa1] sm:$0xff] %vm1001_vm2, %v3692_v40 }
 0x1af   : > { %v1099_v5 = vsel %vm1086_vm7, %v1082_v47, %v912_v17  ;;  %2044 = vst.msk [vmem:[#allocation3 + $0x10] sm:$0x1] %vm2043_vm10, %v3692_v40 }
 0x1b0   : > { %v1116_v61 = vsel %vm1103_vm8, %v1099_v5, %v962_v34 }
 0x1b1   : > { %v1163_v22 = vsel %vm1125_vm9, %v1116_v61, 0  ;;  %v916_v7 = vpop.permute.xlu2 %915 }
 0x1b2   : > { %v4503_v46 = vand.u32 4294901760, %v1163_v22  ;;  %v2082_v61 = vld [vmem:[#allocation3 + $0x1] sm:$0xff] }
 0x1b3   : > { %v764_v36 = vpop.permute.xlu1 %763 }
 0x1b4   : > { %1418 = vmatmul.f32.gmra.mxu1 %v4503_v46  ;;  %v1296_v43 = vsub.f32 %v1163_v22, %v4503_v46  ;;  %v1000_v22 = vsel %vm460_vm0, %v4284_v10, %v4066_v45  ;;  %v1938_v45 = vld [vmem:[%s5752_s1 + $0x48] sm:$0xff] }
 0x1b5   : > { %2142 = vrot.lane.b32.xlu0 %v2082_v61, %s3684_s12 }
 0x1b6   : > { %v714_v2 = vpop.permute.xlu0 %713  ;;  %1522 = vmatmul.f32.gmra.mxu2 %v1296_v43  ;;  %v1297_v57 = vand.u32 4294901760, %v1296_v43 }
 0x1b7   : > { %v1032_v1 = vsel %vm1018_vm3, %v1015_v30, %v714_v2 }
 0x1b8   : > { %1637 = vmatmul.f32.gmra.mxu3 %v1297_v57  ;;  %v1298_v23 = vsub.f32 %v1296_v43, %v1297_v57  ;;  %v1049_v14 = vsel %vm1035_vm4, %v1032_v1, %v764_v36 }
 0x1b9   : > { %v1066_v13 = vsel %vm1052_vm5, %v1049_v14, %v814_v29  ;;  %v718_v5 = vpop.permute.xlu2 %717 }
 0x1ba   : > { %v1299_v18 = vand.u32 4294901760, %v1298_v23 }
 0x1bb   : > { %v914_v4 = vpop.permute.xlu1 %913 }
 0x1bc   : > { %1300 = vmatmul.f32.gmra.mxu0 %v1299_v18 }
 0x1bd   : > { %1992 = vperm.xlu0 %3667, %v1938_v45  }
 0x1be   : > { %v864_v20 = vpop.permute.xlu0 %863 }
 0x1bf   : > { %v1083_v44 = vsel %vm1069_vm6, %v1066_v13, %v864_v20 }
 0x1c0   : > { %v1100_v59 = vsel %vm1086_vm7, %v1083_v44, %v914_v4 }
 0x1c1   : > { %v1117_v33 = vsel %vm1103_vm8, %v1100_v59, %v964_v62  ;;  %v868_v18 = vpop.permute.xlu2 %867  ;;  %v2083_v59 = vld [vmem:[#allocation3 + $0x9] sm:$0xff] }
 0x1c2   : > { %v1166_v60 = vsel %vm1125_vm9, %v1117_v33, 0 }
 0x1c3   : > { %v4518_v39 = vand.u32 4294901760, %v1166_v60  ;;  %v716_v48 = vpop.permute.xlu1 %715 }
 0x1c5   : > { %v1304_v37 = vsub.f32 %v1166_v60, %v4518_v39  ;;  %1422 = vmatmul.f32.gmra.mxu1 %v4518_v39  ;;  %2144 = vrot.lane.b32.xlu0 %v2083_v59, %s3684_s12 }
 0x1c6   : > { %v652_v53 = vpop.permute.xlu0 %651 }
 0x1c7   : > { %1527 = vmatmul.f32.gmra.mxu2 %v1304_v37  ;;  %v1305_v24 = vand.u32 4294901760, %v1304_v37  ;;  %v1016_v25 = vsel %vm1001_vm2, %v999_v9, %v652_v53  ;;  %v1939_v53 = vld [vmem:[%s5752_s1 + $0x50] sm:$0xff] }
 0x1c8   : > { %v1033_v15 = vsel %vm1018_vm3, %v1016_v25, %v716_v48  ;;  %v1929_v48 = vld [vmem:[%s5752_s1] sm:$0xff]  ;;  %v1932_v25 = vld [vmem:[%s5752_s1 + $0x18] sm:$0xff] }
 0x1c9   : > { %1643 = vmatmul.f32.gmra.mxu3 %v1305_v24  ;;  %v1306_v52 = vsub.f32 %v1304_v37, %v1305_v24  ;;  %v1050_v27 = vsel %vm1035_vm4, %v1033_v15, %v766_v38  ;;  %1947 = vperm.xlu2 %3666, %v1929_v48   ;;  %v4574_v24 = vpop.f32.mrf.mxu1  ;;  %v1933_v15 = vld [vmem:[%s5752_s1 + $0x20] sm:$0xff] }
 0x1cb   : > { %v1307_v56 = vand.u32 4294901760, %v1306_v52  ;;  %v866_v21 = vpop.permute.xlu1 %865  ;;  %v1931_v52 = vld [vmem:[%s5752_s1 + $0x10] sm:$0xff] }
 0x1cc   : > { %1957 = vperm.xlu1 %3668, %v1931_v52  }
 0x1cd   : > { %1308 = vmatmul.f32.gmra.mxu0 %v1307_v56  ;;  %1997 = vperm.xlu0 %3667, %v1939_v53  }
 0x1ce   : > { %v816_v35 = vpop.permute.xlu0 %815 }
 0x1cf   : > { %v1067_v55 = vsel %vm1052_vm5, %v1050_v27, %v816_v35  ;;  %v4598_v35 = vpop.f32.mrf.mxu0 }
 0x1d0   : > { %v1084_v19 = vsel %vm1069_vm6, %v1067_v55, %v866_v21  ;;  %v1934_v21 = vld [vmem:[%s5752_s1 + $0x28] sm:$0xff]  ;;  %v1937_v55 = vld [vmem:[%s5752_s1 + $0x40] sm:$0xff] }
 0x1d1   : > { %v1101_v8 = vsel %vm1086_vm7, %v1084_v19, %v916_v7  ;;  %1962 = vperm.xlu2 %3666, %v1932_v25   ;;  %v4588_v56 = vpop.f32.mrf.mxu1 }
 0x1d2   : > { %v1376_v45 = vadd.f32 %v4588_v56, %v4598_v35 }
 0x1d3   : > { %v654_v50 = vpop.permute.xlu1 %653 }
 0x1d4   : > { %v1017_v43 = vsel %vm1001_vm2, %v1000_v22, %v654_v50  ;;  %1967 = vperm.xlu1 %3668, %v1933_v15  }
 0x1d5   : > { %v1034_v57 = vsel %vm1018_vm3, %v1017_v43, %v718_v5  ;;  %2002 = vperm.xlu0 %3667, %v1940_v6  }
 0x1d6   : > { %v966_v51 = vpop.permute.xlu0 %965 }
 0x1d7   : > { %v1118_v34 = vsel %vm1103_vm8, %v1101_v8, %v966_v51 }
 0x1d8   : > { %v1169_v47 = vsel %vm1125_vm9, %v1118_v34, 0 }
 0x1d9   : > { %v4544_v17 = vand.u32 4294901760, %v1169_v47  ;;  %v4600_v27 = vpop.f32.mrf.mxu1  ;;  %1972 = vperm.xlu2 %3666, %v1934_v21  }
 0x1db   : > { %v1312_v29 = vsub.f32 %v1169_v47, %v4544_v17  ;;  %1426 = vmatmul.f32.gmra.mxu1 %v4544_v17  ;;  %v818_v36 = vpop.permute.xlu1 %817 }
 0x1dc   : > { %1982 = vperm.xlu1 %3668, %v1936_v0  }
 0x1dd   : > { %1532 = vmatmul.f32.gmra.mxu2 %v1312_v29  ;;  %v1313_v3 = vand.u32 4294901760, %v1312_v29 }
 0x1de   : > { %v768_v2 = vpop.permute.xlu0 %767 }
 0x1df   : > { %1649 = vmatmul.f32.gmra.mxu3 %v1313_v3  ;;  %v1314_v30 = vsub.f32 %v1312_v29, %v1313_v3  ;;  %v1051_v1 = vsel %vm1035_vm4, %v1034_v57, %v768_v2  ;;  %v2098_v29 = vld [vmem:[#allocation3 + $0x2] sm:$0xff] }
 0x1e0   : > { %v1068_v10 = vsel %vm1052_vm5, %v1051_v1, %v818_v36 }
 0x1e1   : > { %v1315_v23 = vand.u32 4294901760, %v1314_v30  ;;  %v1085_v4 = vsel %vm1069_vm6, %v1068_v10, %v868_v18  ;;  %v4606_v7 = vpop.f32.mrf.mxu1  ;;  %1987 = vperm.xlu2 %3666, %v1937_v55   ;;  %v1463_v30 = vpop.f32.mrf.mxu2 }
 0x1e3   : > { %1316 = vmatmul.f32.gmra.mxu0 %v1315_v23  ;;  %v968_v14 = vpop.permute.xlu1 %967 }
 0x1e4   : > { %2206 = vrot.lane.b32.xlu1 %v2098_v29, %s3688_s16 }
 0x1e6   : > { %v918_v62 = vpop.permute.xlu0 %917 }
 0x1e7   : > { %v1102_v13 = vsel %vm1086_vm7, %v1085_v4, %v918_v62 }
 0x1e8   : > { %v1119_v20 = vsel %vm1103_vm8, %v1102_v13, %v968_v14 }
 0x1e9   : > { %v1172_v44 = vsel %vm1125_vm9, %v1119_v20, 0  ;;  %v4618_v40 = vpop.f32.mrf.mxu1  ;;  %v1468_v4 = vpop.f32.mrf.mxu2  ;;  %v4704_v20 = vld [vmem:[%s5755_s4] ss:$0 sm:$0xff] }
 0x1ea   : > { %v4563_v33 = vand.u32 4294901760, %v1172_v44  ;;  %v1469_v62 = vadd.f32 %v1468_v4, %v1376_v45 }
 0x1ec   : > { %v1320_v60 = vsub.f32 %v1172_v44, %v4563_v33  ;;  %1430 = vmatmul.f32.gmra.mxu1 %v4563_v33 }
 0x1ee   : > { %1537 = vmatmul.f32.gmra.mxu2 %v1320_v60  ;;  %v1321_v37 = vand.u32 4294901760, %v1320_v60 }
 0x1f0   : > { %1655 = vmatmul.f32.gmra.mxu3 %v1321_v37  ;;  %v1322_v38 = vsub.f32 %v1320_v60, %v1321_v37 }
 0x1f1   : > { %v4624_v50 = vpop.f32.mrf.mxu1 }
 0x1f2   : > { %v1323_v9 = vand.u32 4294901760, %v1322_v38 }
 0x1f4   : > { %1324 = vmatmul.f32.gmra.mxu0 %v1323_v9  ;;  %1777 = vmatmul.f32.vlgmr.msrb.gmra.mxu1 %v4135_v54  ;;  %v1473_v9 = vpop.f32.mrf.mxu2 }
 0x1fc   : > { %1691 = vmatmul.f32.vlgmr.msrb.gmra.mxu0 %v4135_v54  ;;  %1781 = vmatmul.f32.gmra.mxu1 %v4172_v49  ;;  %v4604_v54 = vpop.f32.mrf.mxu0 }
 0x1fd   : > { %v1380_v60 = vadd.f32 %v4600_v27, %v4604_v54 }
 0x1ff   : > { %v1474_v25 = vadd.f32 %v1473_v9, %v1380_v60 }
 0x204   : > { %1695 = vmatmul.f32.gmra.mxu0 %v4172_v49  ;;  %1785 = vmatmul.f32.gmra.mxu1 %v4210_v41  ;;  %v4616_v49 = vpop.f32.mrf.mxu0 }
 0x205   : > { %v1384_v27 = vadd.f32 %v4606_v7, %v4616_v49 }
 0x20c   : > { %1699 = vmatmul.f32.gmra.mxu0 %v4210_v41  ;;  %1789 = vmatmul.f32.gmra.mxu1 %v4250_v12  ;;  %v4622_v19 = vpop.f32.mrf.mxu0  ;;  %v4630_v41 = vpop.f32.mrf.mxu1 }
 0x214   : > { %1703 = vmatmul.f32.gmra.mxu0 %v4250_v12  ;;  %1793 = vmatmul.f32.gmra.mxu1 %v4293_v11  ;;  %v4628_v8 = vpop.f32.mrf.mxu0  ;;  %v4636_v12 = vpop.f32.mrf.mxu1 }
 0x21c   : > { %1707 = vmatmul.f32.gmra.mxu0 %v4293_v11  ;;  %1797 = vmatmul.f32.gmra.mxu1 %v4332_v63  ;;  %v4634_v51 = vpop.f32.mrf.mxu0  ;;  %v4642_v11 = vpop.f32.mrf.mxu1 }
 0x223   : > { %v1948_v52 = vpop.permute.xlu2 %1947 }
 0x224   : > { %1711 = vmatmul.f32.gmra.mxu0 %v4332_v63  ;;  %1801 = vmatmul.f32.gmra.mxu1 %v4370_v58  ;;  %v4640_v34 = vpop.f32.mrf.mxu0  ;;  %v4648_v63 = vpop.f32.mrf.mxu1 }
 0x22c   : > { %1715 = vmatmul.f32.gmra.mxu0 %v4370_v58  ;;  %1805 = vmatmul.f32.gmra.mxu1 %v4409_v28  ;;  %v4646_v47 = vpop.f32.mrf.mxu0  ;;  %v4654_v58 = vpop.f32.mrf.mxu1 }
 0x234   : > { %1719 = vmatmul.f32.gmra.mxu0 %v4409_v28  ;;  %1809 = vmatmul.f32.gmra.mxu1 %v4437_v32  ;;  %v4652_v5 = vpop.f32.mrf.mxu0  ;;  %v4660_v28 = vpop.f32.mrf.mxu1 }
 0x23c   : > { %1723 = vmatmul.f32.gmra.mxu0 %v4437_v32  ;;  %1813 = vmatmul.f32.gmra.mxu1 %v4458_v16  ;;  %v4658_v61 = vpop.f32.mrf.mxu0  ;;  %v4666_v32 = vpop.f32.mrf.mxu1 }
 0x244   : > { %1727 = vmatmul.f32.gmra.mxu0 %v4458_v16  ;;  %1817 = vmatmul.f32.gmra.mxu1 %v4473_v31  ;;  %v4664_v22 = vpop.f32.mrf.mxu0  ;;  %v4673_v36 = vpop.f32.mrf.mxu1 }
 0x24c   : > { %1731 = vmatmul.f32.gmra.mxu0 %v4473_v31  ;;  %1821 = vmatmul.f32.gmra.mxu1 %v4488_v26  ;;  %v4671_v16 = vpop.f32.mrf.mxu0 }
 0x254   : > { %1735 = vmatmul.f32.gmra.mxu0 %v4488_v26  ;;  %1825 = vmatmul.f32.gmra.mxu1 %v4503_v46  ;;  %v4677_v31 = vpop.f32.mrf.mxu0 }
 0x258   : > { %v4679_v43 = vpop.f32.mrf.mxu1 }
 0x25c   : > { %1739 = vmatmul.f32.gmra.mxu0 %v4503_v46  ;;  %1829 = vmatmul.f32.gmra.mxu1 %v4518_v39  ;;  %v1372_v46 = vadd.f32 %v4574_v24, %v4586_v42 }
 0x25e   : > { %v1464_v1 = vadd.f32 %v1463_v30, %v1372_v46 }
 0x260   : > { %v4683_v26 = vpop.f32.mrf.mxu0 }
 0x264   : > { %1743 = vmatmul.f32.gmra.mxu0 %v4518_v39  ;;  %1833 = vmatmul.f32.gmra.mxu1 %v4544_v17  ;;  %v1566_v39 = vpop.f32.mrf.mxu3 }
 0x265   : > { %v1567_v23 = vadd.f32 %v1566_v39, %v1464_v1  ;;  %v1953_v1 = vpop.permute.xlu0 %1952 }
 0x269   : > { %v4685_v3 = vpop.f32.mrf.mxu1 }
 0x26c   : > { %1747 = vmatmul.f32.gmra.mxu0 %v4544_v17  ;;  %1837 = vmatmul.f32.gmra.mxu1 %v4563_v33  ;;  %v4699_v17 = vld [vmem:[%s5754_s3] ss:$0 sm:$0xff]  ;;  %v1572_v59 = vpop.f32.mrf.mxu3 }
 0x271   : > { %v4691_v2 = vpop.f32.mrf.mxu0  ;;  %v1778_v57 = vpop.f32.mrf.mxu1 }
 0x274   : > { %1751 = vmatmul.f32.gmra.mxu0 %v4563_v33  ;;  %v1573_v33 = vadd.f32 %v1572_v59, %v1469_v62  ;;  %v1578_v15 = vpop.f32.mrf.mxu3  ;;  %v1388_v62 = vadd.f32 %v4618_v40, %v4622_v19 }
 0x275   : > { %v1579_v35 = vadd.f32 %v1578_v15, %v1474_v25 }
 0x279   : > { %v1692_v10 = vpop.f32.mrf.mxu0  ;;  %v1782_v14 = vpop.f32.mrf.mxu1 }
 0x27a   : > { %v1693_v18 = vadd.f32 %v1692_v10, %v1567_v23 }
 0x27c   : > { %v1779_v13 = vadd.f32 %v1778_v57, %v1693_v18  ;;  %v1478_v57 = vpop.f32.mrf.mxu2  ;;  %v1584_v7 = vpop.f32.mrf.mxu3 }
 0x27d   : > { %v1479_v30 = vadd.f32 %v1478_v57, %v1384_v27 }
 0x27e   : > { %v1845_v44 = vmul.f32 %v4699_v17, %v1779_v13 }
 0x27f   : > { %v1585_v49 = vadd.f32 %v1584_v7, %v1479_v30 }
 0x280   : > { %v1865_v48 = vadd.f32 %v4704_v20, %v1845_v44 }
 0x281   : > { %v1696_v37 = vpop.f32.mrf.mxu0  ;;  %v1786_v24 = vpop.f32.mrf.mxu1 }
 0x282   : > { %vm1881_vm11 = vcmp.gt.f32.partialorder %v1865_v48, 0.0  ;;  %v1897_v38 = vmul.f32 0.01, %v1865_v48  ;;  %v1697_v53 = vadd.f32 %v1696_v37, %v1573_v33 }
 0x284   : > { %v1913_v6 = vsel %vm1881_vm11, %v1865_v48, %v1897_v38  ;;  %v1783_v42 = vadd.f32 %v1782_v14, %v1697_v53  ;;  %v1483_v48 = vpop.f32.mrf.mxu2  ;;  %v1958_v38 = vpop.permute.xlu1 %1957  ;;  %vm2632_vm11 = vcmask 326656  }
 0x285   : > { %v2025_v56 = vmul.f32 %v1948_v52, %v1913_v6  ;;  %v1484_v37 = vadd.f32 %v1483_v48, %v1388_v62  ;;  %v1590_v19 = vpop.f32.mrf.mxu3 }
 0x286   : > { %v1846_v21 = vmul.f32 %v4699_v17, %v1783_v42  ;;  %v1392_v42 = vadd.f32 %v4624_v50, %v4628_v8 }
 0x287   : > { %2045 = vst.msk [vmem:[#allocation3 + $0x11] sm:$0xff] %vm1001_vm2, %v2025_v56  ;;  %v1591_v6 = vadd.f32 %v1590_v19, %v1484_v37  ;;  %v1400_v37 = vadd.f32 %v4636_v12, %v4640_v34 }
 0x288   : > { %v1866_v54 = vadd.f32 %v4704_v20, %v1846_v21 }
 0x289   : > { %v1700_v55 = vpop.f32.mrf.mxu0  ;;  %v1790_v46 = vpop.f32.mrf.mxu1 }
 0x28a   : > { %vm1882_vm12 = vcmp.gt.f32.partialorder %v1866_v54, 0.0  ;;  %v1898_v0 = vmul.f32 0.01, %v1866_v54  ;;  %v1701_v29 = vadd.f32 %v1700_v55, %v1579_v35 }
 0x28c   : > { %v1914_v39 = vsel %vm1882_vm12, %v1866_v54, %v1898_v0  ;;  %v1787_v23 = vadd.f32 %v1786_v24, %v1701_v29  ;;  %v1488_v54 = vpop.f32.mrf.mxu2  ;;  %v1963_v0 = vpop.permute.xlu2 %1962  ;;  %vm2649_vm12 = vcmask 392192  }
 0x28d   : > { %v2026_v45 = vmul.f32 %v1953_v1, %v1914_v39  ;;  %v1489_v55 = vadd.f32 %v1488_v54, %v1392_v42  ;;  %v1596_v8 = vpop.f32.mrf.mxu3 }
 0x28e   : > { %v1847_v10 = vmul.f32 %v4699_v17, %v1787_v23  ;;  %v2099_v18 = vld [vmem:[#allocation3 + $0xa] sm:$0xff]  ;;  %v1396_v23 = vadd.f32 %v4630_v41, %v4634_v51 }
 0x28f   : > { %v2084_v14 = vld [vmem:[#allocation3 + $0x11] sm:$0xff]  ;;  %2046 = vst.msk [vmem:[#allocation3 + $0x19] sm:$0xff] %vm1001_vm2, %v2026_v45  ;;  %2208 = vrot.lane.b32.xlu1 %v2099_v18, %s3688_s16  ;;  %v1597_v39 = vadd.f32 %v1596_v8, %v1489_v55  ;;  %v1404_v55 = vadd.f32 %v4642_v11, %v4646_v47 }
 0x290   : > { %v4716_v4 = vld [vmem:[#allocation3 + $0x10] sm:$0xff]  ;;  %2320 = vrot.lane.b32.xlu0 %v2084_v14, %s3689_s17  ;;  %v1867_v13 = vadd.f32 %v4704_v20, %v1847_v10 }
 0x291   : > { %2270 = vrot.lane.b32.xlu2 %v4716_v4, %s3686_s14  ;;  %v1704_v44 = vpop.f32.mrf.mxu0  ;;  %v1794_v60 = vpop.f32.mrf.mxu1 }
 0x292   : > { %vm1883_vm13 = vcmp.gt.f32.partialorder %v1867_v13, 0.0  ;;  %v1899_v59 = vmul.f32 0.01, %v1867_v13  ;;  %v1705_v33 = vadd.f32 %v1704_v44, %v1585_v49 }
 0x294   : > { %v1915_v53 = vsel %vm1883_vm13, %v1867_v13, %v1899_v59  ;;  %v1791_v24 = vadd.f32 %v1790_v46, %v1705_v33  ;;  %v1493_v49 = vpop.f32.mrf.mxu2  ;;  %v1968_v13 = vpop.permute.xlu1 %1967  ;;  %vm2666_vm13 = vcmask 457728  }
 0x295   : > { %v2027_v9 = vmul.f32 %v1958_v38, %v1915_v53  ;;  %v1494_v62 = vadd.f32 %v1493_v49, %v1396_v23  ;;  %v1602_v51 = vpop.f32.mrf.mxu3  ;;  %v1973_v42 = vpop.permute.xlu2 %1972  ;;  %v1408_v49 = vadd.f32 %v4648_v63, %v4652_v5 }
 0x296   : > { %v1848_v25 = vmul.f32 %v4699_v17, %v1791_v24  ;;  %v2100_v52 = vld [vmem:[#allocation3 + $0x12] sm:$0xff]  ;;  %v1978_v24 = vpop.permute.xlu0 %1977 }
 0x297   : > { %v4727_v40 = vld [vmem:[#allocation3 + $0x18] sm:$0xff]  ;;  %2047 = vst.msk [vmem:[#allocation3 + $0x21] sm:$0xff] %vm1001_vm2, %v2027_v9  ;;  %2370 = vrot.lane.b32.xlu1 %v2100_v52, %s3693_s25  ;;  %v1603_v48 = vadd.f32 %v1602_v51, %v1494_v62 }
 0x298   : > { %2146 = vrot.lane.b32.xlu0 %v2084_v14, %s3684_s12  ;;  %v1868_v56 = vadd.f32 %v4704_v20, %v1848_v25  ;;  %v2085_v1 = vld [vmem:[#allocation3 + $0x19] sm:$0xff] }
 0x299   : > { %2272 = vrot.lane.b32.xlu2 %v4727_v40, %s3686_s14  ;;  %v1708_v21 = vpop.f32.mrf.mxu0  ;;  %v1798_v27 = vpop.f32.mrf.mxu1 }
 0x29a   : > { %vm1884_vm14 = vcmp.gt.f32.partialorder %v1868_v56, 0.0  ;;  %v1900_v15 = vmul.f32 0.01, %v1868_v56  ;;  %v1709_v35 = vadd.f32 %v1708_v21, %v1591_v6 }
 0x29c   : > { %v1916_v29 = vsel %vm1884_vm14, %v1868_v56, %v1900_v15  ;;  %v1795_v46 = vadd.f32 %v1794_v60, %v1709_v35  ;;  %v1983_v51 = vpop.permute.xlu1 %1982  ;;  %vm2683_vm14 = vcmask 523264  }
 0x29d   : > { %v2028_v57 = vmul.f32 %v1963_v0, %v1916_v29  ;;  %v1608_v34 = vpop.f32.mrf.mxu3 }
 0x29e   : > { %v1849_v30 = vmul.f32 %v4699_v17, %v1795_v46  ;;  %v4738_v50 = vld [vmem:[#allocation3 + $0x20] sm:$0xff]  ;;  %v4772_v8 = vpop.permute.xlu0 %2142 }
 0x29f   : > { %2048 = vst.msk [vmem:[#allocation3 + $0x29] sm:$0xff] %vm1001_vm2, %v2028_v57  ;;  %2210 = vrot.lane.b32.xlu1 %v2100_v52, %s3688_s16  ;;  %v4749_v41 = vld [vmem:[#allocation3 + $0x21] sm:$0xff]  ;;  %v1498_v52 = vpop.f32.mrf.mxu2 }
 0x2a0   : > { %2322 = vrot.lane.b32.xlu0 %v2085_v1, %s3689_s17  ;;  %v1869_v45 = vadd.f32 %v4704_v20, %v1849_v30  ;;  %v1499_v6 = vadd.f32 %v1498_v52, %v1400_v37  ;;  %v2101_v12 = vld [vmem:[#allocation3 + $0x1a] sm:$0xff]  ;;  %v1412_v52 = vadd.f32 %v4654_v58, %v4658_v61 }
 0x2a1   : > { %2420 = vrot.lane.b32.xlu2 %v4738_v50, %s3694_s26  ;;  %v1712_v10 = vpop.f32.mrf.mxu0  ;;  %v1802_v7 = vpop.f32.mrf.mxu1 }
 0x2a2   : > { %vm1885_vm15 = vcmp.gt.f32.partialorder %v1869_v45, 0.0  ;;  %v1901_v18 = vmul.f32 0.01, %v1869_v45  ;;  %v1713_v14 = vadd.f32 %v1712_v10, %v1597_v39  ;;  %v1609_v54 = vadd.f32 %v1608_v34, %v1499_v6 }
 0x2a4   : > { %v1917_v44 = vsel %vm1885_vm15, %v1869_v45, %v1901_v18  ;;  %v1799_v59 = vadd.f32 %v1798_v27, %v1713_v14  ;;  %vm2709_vm15 = vcmask 588800  }
 0x2a5   : > { %v2029_v33 = vmul.f32 %v1968_v13, %v1917_v44  ;;  %v1614_v18 = vpop.f32.mrf.mxu3 }
 0x2a6   : > { %v1850_v60 = vmul.f32 %v4699_v17, %v1799_v59  ;;  %v4765_v27 = vld [vmem:[#allocation3 + $0x22] sm:$0xff]  ;;  %v1993_v63 = vpop.permute.xlu0 %1992 }
 0x2a7   : > { %2049 = vst.msk [vmem:[#allocation3 + $0x31] sm:$0xff] %vm1001_vm2, %v2029_v33  ;;  %2470 = vrot.lane.b32.xlu1 %v4749_v41, %s3695_s29  ;;  %v1503_v30 = vpop.f32.mrf.mxu2  ;;  %v4775_v47 = vld [vmem:[#allocation3 + $0x29] sm:$0xff] }
 0x2a8   : > { %2148 = vrot.lane.b32.xlu0 %v2085_v1, %s3684_s12  ;;  %v1870_v38 = vadd.f32 %v4704_v20, %v1850_v60  ;;  %v1504_v1 = vadd.f32 %v1503_v30, %v1404_v55  ;;  %v4781_v14 = vld [vmem:[#allocation3 + $0x28] sm:$0xff] }
 0x2a9   : > { %2274 = vrot.lane.b32.xlu2 %v4738_v50, %s3686_s14  ;;  %v1716_v53 = vpop.f32.mrf.mxu0  ;;  %v1806_v19 = vpop.f32.mrf.mxu1 }
 0x2aa   : > { %vm1886_vm0 = vcmp.gt.f32.partialorder %v1870_v38, 0.0  ;;  %v1902_v9 = vmul.f32 0.01, %v1870_v38  ;;  %v1717_v25 = vadd.f32 %v1716_v53, %v1603_v48 }
 0x2ac   : > { %v1918_v56 = vsel %vm1886_vm0, %v1870_v38, %v1902_v9  ;;  %v1803_v21 = vadd.f32 %v1802_v7, %v1717_v25  ;;  %v1615_v7 = vadd.f32 %v1614_v18, %v1504_v1  ;;  %v1941_v38 = vld [vmem:[%s5752_s1 + $0x60] sm:$0xff] }
 0x2ad   : > { %v2030_v15 = vmul.f32 %v1973_v42, %v1918_v56 }
 0x2ae   : > { %v1851_v35 = vmul.f32 %v4699_v17, %v1803_v21  ;;  %v4806_v58 = vld [vmem:[#allocation3 + $0x2a] sm:$0xff] }
 0x2af   : > { %2050 = vst.msk [vmem:[#allocation3 + $0x39] sm:$0xff] %vm1001_vm2, %v2030_v15  ;;  %2372 = vrot.lane.b32.xlu1 %v2101_v12, %s3693_s25  ;;  %v1508_v33 = vpop.f32.mrf.mxu2 }
 0x2b0   : > { %2324 = vrot.lane.b32.xlu0 %v4749_v41, %s3689_s17  ;;  %v1871_v0 = vadd.f32 %v4704_v20, %v1851_v35  ;;  %v1509_v60 = vadd.f32 %v1508_v33, %v1408_v49  ;;  %v1988_v35 = vpop.permute.xlu2 %1987  ;;  %v4823_v49 = vld [vmem:[#allocation3 + $0x30] sm:$0xff] }
 0x2b1   : > { %2520 = vrot.lane.b32.xlu2 %v4765_v27, %s3696_s30  ;;  %v1720_v29 = vpop.f32.mrf.mxu0  ;;  %v1810_v10 = vpop.f32.mrf.mxu1 }
 0x2b2   : > { %vm1887_vm1 = vcmp.gt.f32.partialorder %v1871_v0, 0.0  ;;  %v1903_v46 = vmul.f32 0.01, %v1871_v0  ;;  %v1721_v57 = vadd.f32 %v1720_v29, %v1609_v54  ;;  %v1416_v29 = vadd.f32 %v4660_v28, %v4664_v22  ;;  %v4816_v28 = vld [vmem:[#allocation3 + $0x31] sm:$0xff] }
 0x2b4   : > { %v1919_v39 = vsel %vm1887_vm1, %v1871_v0, %v1903_v46  ;;  %v1807_v23 = vadd.f32 %v1806_v19, %v1721_v57  ;;  %v4810_v46 = vpop.permute.xlu0 %2144 }
 0x2b5   : > { %v2031_v45 = vmul.f32 %v1978_v24, %v1919_v39  ;;  %v1620_v24 = vpop.f32.mrf.mxu3 }
 0x2b6   : > { %v1852_v11 = vmul.f32 %v4699_v17, %v1807_v23  ;;  %v1621_v25 = vadd.f32 %v1620_v24, %v1509_v60 }
 0x2b7   : > { %2051 = vst.msk [vmem:[#allocation3 + $0x41] sm:$0xff] %vm1001_vm2, %v2031_v45  ;;  %2212 = vrot.lane.b32.xlu1 %v2101_v12, %s3688_s16  ;;  %v1513_v21 = vpop.f32.mrf.mxu2 }
 0x2b8   : > { %2326 = vrot.lane.b32.xlu0 %v4775_v47, %s3689_s17  ;;  %v1872_v62 = vadd.f32 %v4704_v20, %v1852_v11  ;;  %v1514_v15 = vadd.f32 %v1513_v21, %v1412_v52  ;;  %v4843_v52 = vld [vmem:[#allocation3 + $0x32] sm:$0xff] }
 0x2b9   : > { %2422 = vrot.lane.b32.xlu2 %v4781_v14, %s3694_s26  ;;  %v1724_v13 = vpop.f32.mrf.mxu0  ;;  %v1814_v9 = vpop.f32.mrf.mxu1 }
 0x2ba   : > { %vm1888_vm3 = vcmp.gt.f32.partialorder %v1872_v62, 0.0  ;;  %v1904_v44 = vmul.f32 0.01, %v1872_v62  ;;  %v1725_v59 = vadd.f32 %v1724_v13, %v1615_v7 }
 0x2bc   : > { %v1920_v48 = vsel %vm1888_vm3, %v1872_v62, %v1904_v44  ;;  %v1811_v37 = vadd.f32 %v1810_v10, %v1725_v59  ;;  %v1998_v59 = vpop.permute.xlu0 %1997 }
 0x2bd   : > { %v2032_v53 = vmul.f32 %v1983_v51, %v1920_v48  ;;  %v1626_v0 = vpop.f32.mrf.mxu3 }
 0x2be   : > { %v1853_v5 = vmul.f32 %v4699_v17, %v1811_v37  ;;  %v1627_v61 = vadd.f32 %v1626_v0, %v1514_v15  ;;  %v2705_v0 = vld [vmem:[%s5756_s5 + $0x28] sm:$0xff] }
 0x2bf   : > { %2052 = vst.msk [vmem:[#allocation3 + $0x49] sm:$0xff] %vm1001_vm2, %v2032_v53  ;;  %2472 = vrot.lane.b32.xlu1 %v4775_v47, %s3695_s29  ;;  %v1518_v45 = vpop.f32.mrf.mxu2 }
 0x2c0   : > { %2007 = vperm.xlu0 %3667, %v1941_v38   ;;  %v1873_v19 = vadd.f32 %v4704_v20, %v1853_v5 }
 0x2c1   : > { %2276 = vrot.lane.b32.xlu2 %v4781_v14, %s3686_s14  ;;  %v1728_v6 = vpop.f32.mrf.mxu0  ;;  %v1818_v30 = vpop.f32.mrf.mxu1 }
 0x2c2   : > { %vm1889_vm5 = vcmp.gt.f32.partialorder %v1873_v19, 0.0  ;;  %v1905_v42 = vmul.f32 0.01, %v1873_v19  ;;  %v1729_v56 = vadd.f32 %v1728_v6, %v1621_v25 }
 0x2c4   : > { %v1921_v12 = vsel %vm1889_vm5, %v1873_v19, %v1905_v42  ;;  %v1815_v34 = vadd.f32 %v1814_v9, %v1729_v56  ;;  %v2003_v24 = vpop.permute.xlu0 %2002  ;;  %v2708_v19 = vld [vmem:[%s5756_s5 + $0x40] sm:$0xff]  ;;  %v4852_v42 = vld [vmem:[#allocation3 + $0x39] sm:$0xff]  ;;  %v2707_v56 = vld [vmem:[%s5756_s5 + $0x38] sm:$0xff] }
 0x2c5   : > { %v2033_v54 = vmul.f32 %v1988_v35, %v1921_v12  ;;  %v1632_v22 = vpop.f32.mrf.mxu3  ;;  %v4850_v6 = vand.u32 4294901760, %v2708_v19  ;;  %v4866_v15 = vand.u32 4294901760, %v2707_v56  ;;  %v2706_v35 = vld [vmem:[%s5756_s5 + $0x30] sm:$0xff] }
 0x2c6   : > { %v1854_v55 = vmul.f32 %v4699_v17, %v1815_v34 }
 0x2c7   : > { %2053 = vst.msk [vmem:[#allocation3 + $0x51] sm:$0xff] %vm1001_vm2, %v2033_v54  ;;  %2374 = vrot.lane.b32.xlu1 %v4765_v27, %s3693_s25  ;;  %v4864_v21 = vsub.f32 %v2708_v19, %v4850_v6  ;;  %3161 = vmatpush.msra.mxu1 %v4850_v6  ;;  %v4876_v34 = vsub.f32 %v2707_v56, %v4866_v15  ;;  %v4879_v54 = vand.u32 4294901760, %v2706_v35  ;;  %v2700_v19 = vld [vmem:[%s5756_s5] sm:$0xff] }
 0x2c8   : > { %2150 = vrot.lane.b32.xlu0 %v4749_v41, %s3684_s12  ;;  %v1874_v57 = vadd.f32 %v4704_v20, %v1854_v55  ;;  %v1519_v41 = vadd.f32 %v1518_v45, %v1416_v29  ;;  %2766 = vmatpush.msrb.mxu2 %v4850_v6 }
 0x2c9   : > { %2522 = vrot.lane.b32.xlu2 %v4806_v58, %s3696_s30  ;;  %v1732_v1 = vpop.f32.mrf.mxu0  ;;  %v1822_v51 = vpop.f32.mrf.mxu1  ;;  %v2921_v12 = vand.u32 4294901760, %v4864_v21  ;;  %3047 = vmatpush.msra.mxu0 %v4864_v21  ;;  %v2927_v29 = vand.u32 4294901760, %v4876_v34 }
 0x2ca   : > { %vm1890_vm7 = vcmp.gt.f32.partialorder %v1874_v57, 0.0  ;;  %v1906_v39 = vmul.f32 0.01, %v1874_v57  ;;  %v1733_v23 = vadd.f32 %v1732_v1, %v1627_v61  ;;  %v1633_v62 = vadd.f32 %v1632_v22, %v1519_v41  ;;  %3163 = vmatpush.msra.mxu1 %v4866_v15  ;;  %2768 = vmatpush.msrb.mxu2 %v4866_v15 }
 0x2cb   : > { %v2922_v61 = vsub.f32 %v4864_v21, %v2921_v12  ;;  %3050 = vmatpush.msra.mxu0 %v4876_v34  ;;  %v4900_v1 = vand.u32 4294901760, %v2705_v0  ;;  %v2928_v45 = vsub.f32 %v4876_v34, %v2927_v29 }
 0x2cc   : > { %v1922_v10 = vsel %vm1890_vm7, %v1874_v57, %v1906_v39  ;;  %v1819_v11 = vadd.f32 %v1818_v30, %v1733_v23  ;;  %v4893_v57 = vsub.f32 %v2706_v35, %v4879_v54  ;;  %v1943_v30 = vld [vmem:[%s5752_s1 + $0x70] sm:$0xff]  ;;  %v2704_v39 = vld [vmem:[%s5756_s5 + $0x20] sm:$0xff]  ;;  %3165 = vmatpush.msra.mxu1 %v4879_v54  ;;  %2770 = vmatpush.msrb.mxu2 %v4879_v54 }
 0x2cd   : > { %v2034_v18 = vmul.f32 %v1993_v63, %v1922_v10  ;;  %v2923_v23 = vand.u32 4294901760, %v2922_v61  ;;  %v4911_v10 = vand.u32 4294901760, %v2704_v39  ;;  %v2929_v22 = vand.u32 4294901760, %v2928_v45 }
 0x2ce   : > { %v1855_v7 = vmul.f32 %v4699_v17, %v1819_v11  ;;  %v2933_v41 = vand.u32 4294901760, %v4893_v57  ;;  %3053 = vmatpush.msra.mxu0 %v4893_v57  ;;  %v4915_v11 = vsub.f32 %v2705_v0, %v4900_v1  ;;  %3167 = vmatpush.msra.mxu1 %v4900_v1 }
 0x2cf   : > { %2054 = vst.msk [vmem:[#allocation3 + $0x59] sm:$0xff] %vm1001_vm2, %v2034_v18  ;;  %2214 = vrot.lane.b32.xlu1 %v4765_v27, %s3688_s16  ;;  %v1942_v27 = vld [vmem:[%s5752_s1 + $0x68] sm:$0xff]  ;;  %v2703_v18 = vld [vmem:[%s5756_s5 + $0x18] sm:$0xff]  ;;  %2924 = vmatpush.msrb.mxu3 %v2923_v23  ;;  %v4989_v23 = vld [vmem:[#allocation3 + $0x40] sm:$0xff] }
 0x2d0   : > { %2328 = vrot.lane.b32.xlu0 %v4816_v28, %s3689_s17  ;;  %v1875_v13 = vadd.f32 %v4704_v20, %v1855_v7  ;;  %v4923_v7 = vld [vmem:[#allocation3 + $0x3a] sm:$0xff]  ;;  %3056 = vmatpush.msra.mxu0 %v4915_v11 }
 0x2d1   : > { %2424 = vrot.lane.b32.xlu2 %v4823_v49, %s3694_s26  ;;  %v1736_v44 = vpop.f32.mrf.mxu0  ;;  %3169 = vmatpush.msra.mxu1 %v4911_v10 }
 0x2d2   : > { %vm1891_vm9 = vcmp.gt.f32.partialorder %v1875_v13, 0.0  ;;  %v1907_v33 = vmul.f32 0.01, %v1875_v13  ;;  %v1737_v60 = vadd.f32 %v1736_v44, %v1633_v62  ;;  %v2934_v62 = vsub.f32 %v4893_v57, %v2933_v41  ;;  %2930 = vmatpush.msrb.mxu3 %v2929_v22  ;;  %2772 = vmatpush.msrb.mxu2 %v4900_v1 }
 0x2d3   : > { %v4931_v44 = vand.u32 4294901760, %v2703_v18 }
 0x2d4   : > { %v1923_v48 = vsel %vm1891_vm9, %v1875_v13, %v1907_v33  ;;  %v1823_v37 = vadd.f32 %v1822_v51, %v1737_v60  ;;  %v4929_v13 = vsub.f32 %v2704_v39, %v4911_v10  ;;  %v2702_v33 = vld [vmem:[%s5756_s5 + $0x10] sm:$0xff]  ;;  %v2935_v60 = vand.u32 4294901760, %v2934_v62  ;;  %2774 = vmatpush.msrb.mxu2 %v4911_v10 }
 0x2d5   : > { %v2035_v38 = vmul.f32 %v1998_v59, %v1923_v48  ;;  %v2939_v59 = vand.u32 4294901760, %v4915_v11  ;;  %v4942_v48 = vsub.f32 %v2703_v18, %v4931_v44  ;;  %3171 = vmatpush.msra.mxu1 %v4931_v44  ;;  %v4982_v39 = vand.u32 4294901760, %v2700_v19 }
 0x2d6   : > { %v1856_v53 = vmul.f32 %v4699_v17, %v1823_v37  ;;  %v2945_v51 = vand.u32 4294901760, %v4929_v13  ;;  %v4944_v37 = vand.u32 4294901760, %v2702_v33  ;;  %3059 = vmatpush.msra.mxu0 %v4929_v13  ;;  %2936 = vmatpush.msrb.mxu3 %v2935_v60 }
 0x2d7   : > { %2055 = vst.msk [vmem:[#allocation3 + $0x61] sm:$0xff] %vm1001_vm2, %v2035_v38  ;;  %2474 = vrot.lane.b32.xlu1 %v4816_v28, %s3695_s29  ;;  %v2940_v38 = vsub.f32 %v4915_v11, %v2939_v59  ;;  %2776 = vmatpush.msrb.mxu2 %v4931_v44  ;;  %v4998_v62 = vsub.f32 %v2700_v19, %v4982_v39 }
 0x2d8   : > { %2012 = vperm.xlu0 %3667, %v1942_v27   ;;  %v1876_v63 = vadd.f32 %v4704_v20, %v1856_v53  ;;  %v2701_v53 = vld [vmem:[%s5756_s5 + $0x8] sm:$0xff]  ;;  %3062 = vmatpush.msra.mxu0 %v4942_v48 }
 0x2d9   : > { %2278 = vrot.lane.b32.xlu2 %v4823_v49, %s3686_s14  ;;  %3173 = vmatpush.msra.mxu1 %v4944_v37 }
 0x2da   : > { %vm1892_vm10 = vcmp.gt.f32.partialorder %v1876_v63, 0.0  ;;  %v1908_v5 = vmul.f32 0.01, %v1876_v63  ;;  %2778 = vmatpush.msrb.mxu2 %v4944_v37 }
 0x2dc   : > { %v1924_v9 = vsel %vm1892_vm10, %v1876_v63, %v1908_v5  ;;  %v2946_v63 = vsub.f32 %v4929_v13, %v2945_v51  ;;  %v2951_v5 = vand.u32 4294901760, %v4942_v48  ;;  %v1523_v13 = vpop.f32.mrf.mxu2 }
 0x2dd   : > { %v2036_v25 = vmul.f32 %v2003_v24, %v1924_v9  ;;  %v4962_v24 = vsub.f32 %v2702_v33, %v4944_v37  ;;  %v4964_v9 = vand.u32 4294901760, %v2701_v53  ;;  %v2207_v33 = vpop.permute.xlu1 %2206 }
 0x2de   : > { %v2947_v56 = vand.u32 4294901760, %v2946_v63  ;;  %v2952_v35 = vsub.f32 %v4942_v48, %v2951_v5 }
 0x2df   : > { %2056 = vst.msk [vmem:[#allocation3 + $0x69] sm:$0xff] %vm1001_vm2, %v2036_v25  ;;  %2376 = vrot.lane.b32.xlu1 %v4806_v58, %s3693_s25  ;;  %v2941_v25 = vand.u32 4294901760, %v2940_v38  ;;  %v2957_v0 = vand.u32 4294901760, %v4962_v24  ;;  %v4977_v61 = vsub.f32 %v2701_v53, %v4964_v9  ;;  %3065 = vmatpush.msra.mxu0 %v4962_v24  ;;  %v2969_v53 = vand.u32 4294901760, %v4998_v62 }
 0x2e0   : > { %2152 = vrot.lane.b32.xlu0 %v4775_v47, %s3684_s12  ;;  %v4861_v47 = vld [vmem:[#allocation3 + $0x38] sm:$0xff]  ;;  %v2953_v45 = vand.u32 4294901760, %v2952_v35  ;;  %3175 = vmatpush.msra.mxu1 %v4964_v9 }
 0x2e1   : > { %2524 = vrot.lane.b32.xlu2 %v4843_v52, %s3696_s30  ;;  %2942 = vmatpush.msrb.mxu3 %v2941_v25  ;;  %v2958_v18 = vsub.f32 %v4962_v24, %v2957_v0  ;;  %v2963_v22 = vand.u32 4294901760, %v4977_v61  ;;  %v2970_v25 = vsub.f32 %v4998_v62, %v2969_v53 }
 0x2e2   : > { %3068 = vmatpush.msra.mxu0 %v4977_v61  ;;  %3177 = vmatpush.msra.mxu1 %v4982_v39 }
 0x2e3   : > { %2948 = vmatpush.msrb.mxu3 %v2947_v56  ;;  %v2959_v60 = vand.u32 4294901760, %v2958_v18  ;;  %2780 = vmatpush.msrb.mxu2 %v4964_v9  ;;  %v2971_v19 = vand.u32 4294901760, %v2970_v25  ;;  %v5017_v56 = vld [vmem:[#allocation3 + $0x42] sm:$0xff] }
 0x2e4   : > { %3071 = vmatpush.msra.mxu0 %v4998_v62  ;;  %v2067_v25 = vld [vmem:[#allocation3 + $0x8] sm:$0xff] }
 0x2e5   : > { %2954 = vmatpush.msrb.mxu3 %v2953_v45  ;;  %2782 = vmatpush.msrb.mxu2 %v4982_v39 }
 0x2e7   : > { %2476 = vrot.lane.b32.xlu1 %v4852_v42, %s3695_s29  ;;  %2960 = vmatpush.msrb.mxu3 %v2959_v60 }
 0x2e8   : > { %2330 = vrot.lane.b32.xlu0 %v4852_v42, %s3689_s17  ;;  %3285 = vmatpush.msra.mxu2 %v2921_v12  ;;  %v2066_v12 = vld [vmem:[#allocation3] sm:$0xff] }
 0x2e9   : > { %2426 = vrot.lane.b32.xlu2 %v4861_v47, %s3694_s26  ;;  %v2568_v34 = vsel %vm1001_vm2, %v2066_v12, %v4772_v8  ;;  %v5122_v12 = vld [vmem:[#allocation3 + $0x50] sm:$0xff] }
 0x2ea   : > { %3289 = vmatpush.msra.mxu2 %v2927_v29  ;;  %v5062_v29 = vld [vmem:[#allocation3 + $0x48] sm:$0xff]  ;;  %v2584_v8 = vsel %vm1035_vm4, %v2568_v34, %v2207_v33  ;;  %v1826_v33 = vpop.f32.mrf.mxu1 }
 0x2eb   : > { %v4882_v55 = vpop.permute.xlu2 %2270 }
 0x2ec   : > { %3293 = vmatpush.msra.mxu2 %v2933_v41 }
 0x2ee   : > { %3297 = vmatpush.msra.mxu2 %v2939_v59 }
 0x2ef   : > { %2378 = vrot.lane.b32.xlu1 %v4843_v52, %s3693_s25 }
 0x2f0   : > { %2017 = vperm.xlu0 %3667, %v1943_v30   ;;  %v4980_v30 = vld [vmem:[#allocation3 + $0x41] sm:$0xff]  ;;  %3301 = vmatpush.msra.mxu2 %v2945_v51 }
 0x2f1   : > { %2526 = vrot.lane.b32.xlu2 %v4923_v7, %s3696_s30 }
 0x2f2   : > { %3305 = vmatpush.msra.mxu2 %v2951_v5 }
 0x2f3   : > { %v4947_v27 = vpop.permute.xlu2 %2272 }
 0x2f4   : > { %3309 = vmatpush.msra.mxu2 %v2957_v0 }
 0x2f6   : > { %3313 = vmatpush.msra.mxu2 %v2963_v22 }
 0x2f7   : > { %2478 = vrot.lane.b32.xlu1 %v4980_v30, %s3695_s29 }
 0x2f8   : > { %2154 = vrot.lane.b32.xlu0 %v4816_v28, %s3684_s12  ;;  %v2964_v28 = vsub.f32 %v4977_v61, %v2963_v22  ;;  %3317 = vmatpush.msra.mxu2 %v2969_v53  ;;  %v5101_v22 = vld [vmem:[#allocation3 + $0x59] sm:$0xff] }
 0x2f9   : > { %2428 = vrot.lane.b32.xlu2 %v4989_v23, %s3694_s26 }
 0x2fa   : > { %v2965_v63 = vand.u32 4294901760, %v2964_v28 }
 0x2fb   : > { %v5003_v38 = vpop.permute.xlu2 %2420 }
 0x2fc   : > { %2966 = vmatpush.msrb.mxu3 %v2965_v63 }
 0x2fe   : > { %2972 = vmatpush.msrb.mxu3 %v2971_v19 }
 0x2ff   : > { %2216 = vrot.lane.b32.xlu1 %v4806_v58, %s3688_s16  ;;  %v1944_v58 = vld [vmem:[%s5752_s1 + $0x78] sm:$0xff] }
 0x300   : > { %2332 = vrot.lane.b32.xlu0 %v4980_v30, %s3689_s17  ;;  %3391 = vmatpush.msra.mxu3 %v4850_v6 }
 0x301   : > { %2528 = vrot.lane.b32.xlu2 %v5017_v56, %s3696_s30  ;;  %v5021_v35 = vpop.permute.xlu1 %2208 }
 0x302   : > { %v2321_v61 = vpop.permute.xlu0 %2320  ;;  %3393 = vmatpush.msra.mxu3 %v4866_v15 }
 0x303   : > { %v5026_v45 = vpop.permute.xlu2 %2274 }
 0x304   : > { %3395 = vmatpush.msra.mxu3 %v4879_v54  ;;  %v5054_v54 = vld [vmem:[#allocation3 + $0x49] sm:$0xff] }
 0x306   : > { %3397 = vmatpush.msra.mxu3 %v4900_v1 }
 0x307   : > { %2380 = vrot.lane.b32.xlu1 %v4923_v7, %s3693_s25 }
 0x308   : > { %2022 = vperm.xlu0 %3667, %v1944_v58   ;;  %3399 = vmatpush.msra.mxu3 %v4911_v10  ;;  %v2600_v10 = vsel %vm1069_vm6, %v2584_v8, %v4882_v55 }
 0x309   : > { %2280 = vrot.lane.b32.xlu2 %v4861_v47, %s3686_s14  ;;  %v2371_v6 = vpop.permute.xlu1 %2370  ;;  %v2616_v11 = vsel %vm1103_vm8, %v2600_v10, %v2321_v61 }
 0x30a   : > { %v5043_v21 = vpop.permute.xlu0 %2146  ;;  %3401 = vmatpush.msra.mxu3 %v4931_v44  ;;  %v2633_v44 = vsel %vm2632_vm11, %v2616_v11, %v2371_v6  ;;  %v2569_v6 = vsel %vm1001_vm2, %v2067_v25, %v4810_v46 }
 0x30b   : > { %v2521_v15 = vpop.permute.xlu2 %2520  ;;  %v2650_v51 = vsel %vm2649_vm12, %v2633_v44, %v5003_v38  ;;  %v2585_v34 = vsel %vm1035_vm4, %v2569_v6, %v5021_v35 }
 0x30c   : > { %3403 = vmatpush.msra.mxu3 %v4944_v37  ;;  %v1740_v37 = vpop.f32.mrf.mxu0  ;;  %v2601_v11 = vsel %vm1069_vm6, %v2585_v34, %v4947_v27  ;;  %v5173_v34 = vld [vmem:[#allocation3 + $0x5a] sm:$0xff] }
 0x30e   : > { %3405 = vmatpush.msra.mxu3 %v4964_v9 }
 0x30f   : > { %2480 = vrot.lane.b32.xlu1 %v5054_v54, %s3695_s29 }
 0x310   : > { %2156 = vrot.lane.b32.xlu0 %v4852_v42, %s3684_s12  ;;  %v1420_v42 = vadd.f32 %v4666_v32, %v4671_v16  ;;  %3407 = vmatpush.msra.mxu3 %v4982_v39  ;;  %v5086_v32 = vld [vmem:[#allocation3 + $0x4a] sm:$0xff]  ;;  %v1638_v16 = vpop.f32.mrf.mxu3 }
 0x311   : > { %2430 = vrot.lane.b32.xlu2 %v5062_v29, %s3694_s26  ;;  %v5068_v57 = vpop.permute.xlu1 %2210 }
 0x312   : > { %v5070_v1 = vpop.permute.xlu0 %2322  ;;  %v1524_v59 = vadd.f32 %v1523_v13, %v1420_v42 }
 0x313   : > { %v5072_v41 = vpop.permute.xlu2 %2422  ;;  %v2617_v13 = vsel %vm1103_vm8, %v2601_v11, %v5070_v1 }
 0x314   : > { %v1639_v24 = vadd.f32 %v1638_v16, %v1524_v59  ;;  %v1528_v59 = vpop.f32.mrf.mxu2  ;;  %v5142_v16 = vld [vmem:[#allocation3 + $0x52] sm:$0xff] }
 0x316   : > { %v1741_v39 = vadd.f32 %v1740_v37, %v1639_v24 }
 0x317   : > { %2218 = vrot.lane.b32.xlu1 %v4843_v52, %s3688_s16 }
 0x318   : > { %2334 = vrot.lane.b32.xlu0 %v5054_v54, %s3689_s17  ;;  %v1827_v60 = vadd.f32 %v1826_v33, %v1741_v39  ;;  %v5160_v33 = vld [vmem:[#allocation3 + $0x62] sm:$0xff] }
 0x319   : > { %2530 = vrot.lane.b32.xlu2 %v5086_v32, %s3696_s30  ;;  %v2471_v55 = vpop.permute.xlu1 %2470 }
 0x31a   : > { %v5092_v48 = vpop.permute.xlu0 %2148  ;;  %v2667_v52 = vsel %vm2666_vm13, %v2650_v51, %v2471_v55  ;;  %v1857_v61 = vmul.f32 %v4699_v17, %v1827_v60  ;;  %v1744_v51 = vpop.f32.mrf.mxu0 }
 0x31b   : > { %v5095_v5 = vpop.permute.xlu2 %2276  ;;  %v2684_v9 = vsel %vm2683_vm14, %v2667_v52, %v2521_v15  ;;  %v5116_v15 = vld [vmem:[#allocation3 + $0x51] sm:$0xff]  ;;  %v1830_v60 = vpop.f32.mrf.mxu1 }
 0x31c   : > { %v2711_v0 = vsel %vm2709_vm15, %v2684_v9, 0  ;;  %v1877_v42 = vadd.f32 %v4704_v20, %v1857_v61 }
 0x31d   : > { %v5099_v18 = vand.u32 4294901760, %v2711_v0 }
 0x31e   : > { %v1909_v44 = vmul.f32 0.01, %v1877_v42  ;;  %vm1893_vm0 = vcmp.gt.f32.partialorder %v1877_v42, 0.0 }
 0x31f   : > { %v2784_v62 = vsub.f32 %v2711_v0, %v5099_v18  ;;  %2382 = vrot.lane.b32.xlu1 %v5017_v56, %s3693_s25  ;;  %2974 = vmatmul.f32.vlgmr.msrb.gmra.mxu3 %v5099_v18 }
 0x320   : > { %2484 = vrot.lane.b32.xlu0 %v5101_v22, %s3695_s29  ;;  %v1925_v27 = vsel %vm1893_vm0, %v1877_v42, %v1909_v44  ;;  %v5175_v42 = vld [vmem:[#allocation3 + $0x58] sm:$0xff]  ;;  %v5195_v44 = vld [vmem:[%s5755_s4] ss:$0 sm:$0xff] }
 0x321   : > { %2282 = vrot.lane.b32.xlu2 %v4989_v23, %s3686_s14  ;;  %v2785_v28 = vand.u32 4294901760, %v2784_v62  ;;  %v2373_v38 = vpop.permute.xlu1 %2372  ;;  %3074 = vmatmul.f32.vlgmr.msra.gmra.mxu0 %v2784_v62 }
 0x322   : > { %v5111_v53 = vpop.permute.xlu0 %2324  ;;  %v2634_v35 = vsel %vm2632_vm11, %v2617_v13, %v2373_v38 }
 0x323   : > { %v2523_v63 = vpop.permute.xlu2 %2522  ;;  %3181 = vmatmul.f32.vlgmr.msra.gmra.mxu1 %v2785_v28  ;;  %v2786_v19 = vsub.f32 %v2784_v62, %v2785_v28  ;;  %v2651_v20 = vsel %vm2649_vm12, %v2634_v35, %v5072_v41 }
 0x325   : > { %v2787_v58 = vand.u32 4294901760, %v2786_v19 }
 0x327   : > { %2482 = vrot.lane.b32.xlu1 %v5116_v15, %s3695_s29  ;;  %2788 = vmatmul.f32.vlgmr.msrb.gmra.mxu2 %v2787_v58 }
 0x328   : > { %2222 = vrot.lane.b32.xlu0 %v5017_v56, %s3688_s16  ;;  %v1424_v56 = vadd.f32 %v4673_v36, %v4677_v31  ;;  %v1644_v36 = vpop.f32.mrf.mxu3 }
 0x329   : > { %2432 = vrot.lane.b32.xlu2 %v5122_v12, %s3694_s26  ;;  %v5128_v8 = vpop.permute.xlu1 %2212 }
 0x32a   : > { %v5130_v46 = vpop.permute.xlu0 %2326  ;;  %v1529_v55 = vadd.f32 %v1528_v59, %v1424_v56  ;;  %v2570_v56 = vsel %vm1001_vm2, %v4716_v4, %v5043_v21  ;;  %v1428_v4 = vadd.f32 %v4679_v43, %v4683_v26 }
 0x32b   : > { %v5133_v10 = vpop.permute.xlu2 %2424 }
 0x32f   : > { %2220 = vrot.lane.b32.xlu1 %v4923_v7, %s3688_s16  ;;  %v1645_v7 = vadd.f32 %v1644_v36, %v1529_v55  ;;  %v1533_v36 = vpop.f32.mrf.mxu2 }
 0x330   : > { %2386 = vrot.lane.b32.xlu0 %v5142_v16, %s3693_s25  ;;  %v1650_v43 = vpop.f32.mrf.mxu3 }
 0x331   : > { %2532 = vrot.lane.b32.xlu2 %v5142_v16, %s3696_s30  ;;  %v2473_v31 = vpop.permute.xlu1 %2472  ;;  %v1745_v39 = vadd.f32 %v1744_v51, %v1645_v7  ;;  %v1748_v51 = vpop.f32.mrf.mxu0 }
 0x332   : > { %v2008_v1 = vpop.permute.xlu0 %2007  ;;  %v2668_v37 = vsel %vm2666_vm13, %v2651_v20, %v2473_v31  ;;  %v5205_v20 = vld [vmem:[#allocation3 + $0x68] sm:$0xff] }
 0x333   : > { %v2037_v52 = vmul.f32 %v2008_v1, %v1925_v27  ;;  %v5153_v24 = vpop.permute.xlu2 %2278  ;;  %v2685_v9 = vsel %vm2683_vm14, %v2668_v37, %v2523_v63  ;;  %v1831_v28 = vadd.f32 %v1830_v60, %v1745_v39  ;;  %v1534_v27 = vadd.f32 %v1533_v36, %v1428_v4  ;;  %v5224_v60 = vld [vmem:[#allocation3 + $0x60] sm:$0xff] }
 0x334   : > { %v2714_v0 = vsel %vm2709_vm15, %v2685_v9, 0 }
 0x335   : > { %2057 = vst.msk [vmem:[#allocation3 + $0x71] sm:$0xff] %vm1001_vm2, %v2037_v52  ;;  %v5158_v62 = vand.u32 4294901760, %v2714_v0  ;;  %v1858_v58 = vmul.f32 %v4699_v17, %v1831_v28  ;;  %v2586_v17 = vsel %vm1035_vm4, %v2570_v56, %v5068_v57  ;;  %v1651_v9 = vadd.f32 %v1650_v43, %v1534_v27  ;;  %v5243_v56 = vld [vmem:[%s5754_s3] ss:$0 sm:$0xff] }
 0x336   : > { %v2602_v21 = vsel %vm1069_vm6, %v2586_v17, %v5026_v45 }
 0x337   : > { %2384 = vrot.lane.b32.xlu1 %v5086_v32, %s3693_s25  ;;  %v2792_v41 = vsub.f32 %v2714_v0, %v5158_v62  ;;  %2978 = vmatmul.f32.gmra.mxu3 %v5158_v62  ;;  %v1878_v59 = vadd.f32 %v5195_v44, %v1858_v58  ;;  %v2618_v57 = vsel %vm1103_vm8, %v2602_v21, %v5111_v53  ;;  %v5249_v21 = vld [vmem:[#allocation3 + $0x61] sm:$0xff] }
 0x338   : > { %2536 = vrot.lane.b32.xlu0 %v5160_v33, %s3696_s30 }
 0x339   : > { %2284 = vrot.lane.b32.xlu2 %v5062_v29, %s3686_s14  ;;  %v2375_v38 = vpop.permute.xlu1 %2374  ;;  %3079 = vmatmul.f32.gmra.mxu0 %v2792_v41  ;;  %v2793_v25 = vand.u32 4294901760, %v2792_v41  ;;  %v1910_v55 = vmul.f32 0.01, %v1878_v59  ;;  %vm1894_vm1 = vcmp.gt.f32.partialorder %v1878_v59, 0.0 }
 0x33a   : > { %v5170_v63 = vpop.permute.xlu0 %2150  ;;  %v2635_v31 = vsel %vm2632_vm11, %v2618_v57, %v2375_v38 }
 0x33b   : > { %v2525_v19 = vpop.permute.xlu2 %2524  ;;  %3187 = vmatmul.f32.gmra.mxu1 %v2793_v25  ;;  %v2794_v61 = vsub.f32 %v2792_v41, %v2793_v25  ;;  %v2652_v45 = vsel %vm2649_vm12, %v2635_v31, %v5133_v10  ;;  %v1926_v53 = vsel %vm1894_vm1, %v1878_v59, %v1910_v55  ;;  %v1749_v41 = vadd.f32 %v1748_v51, %v1651_v9  ;;  %v1834_v25 = vpop.f32.mrf.mxu1 }
 0x33c   : > { %v2571_v10 = vsel %vm1001_vm2, %v4727_v40, %v5092_v48 }
 0x33d   : > { %v2795_v6 = vand.u32 4294901760, %v2794_v61  ;;  %v2587_v28 = vsel %vm1035_vm4, %v2571_v10, %v5128_v8  ;;  %v1835_v40 = vadd.f32 %v1834_v25, %v1749_v41 }
 0x33e   : > { %v2603_v61 = vsel %vm1069_vm6, %v2587_v28, %v5095_v5 }
 0x33f   : > { %2534 = vrot.lane.b32.xlu1 %v5173_v34, %s3696_s30  ;;  %2796 = vmatmul.f32.gmra.mxu2 %v2795_v6  ;;  %v2619_v17 = vsel %vm1103_vm8, %v2603_v61, %v5130_v46 }
 0x340   : > { %2288 = vrot.lane.b32.xlu0 %v5175_v42, %s3686_s14 }
 0x341   : > { %2434 = vrot.lane.b32.xlu2 %v5175_v42, %s3694_s26  ;;  %v5188_v11 = vpop.permute.xlu1 %2214 }
 0x342   : > { %v5190_v13 = vpop.permute.xlu0 %2328 }
 0x343   : > { %v2427_v35 = vpop.permute.xlu2 %2426 }
 0x347   : > { %2286 = vrot.lane.b32.xlu1 %v5122_v12, %s3686_s14 }
 0x348   : > { %2438 = vrot.lane.b32.xlu0 %v5205_v20, %s3694_s26 }
 0x349   : > { %2158 = vrot.lane.b32.xlu2 %v4980_v30, %s3684_s12  ;;  %v2475_v26 = vpop.permute.xlu1 %2474 }
 0x34a   : > { %v2013_v1 = vpop.permute.xlu0 %2012  ;;  %v2669_v37 = vsel %vm2666_vm13, %v2652_v45, %v2475_v26 }
 0x34b   : > { %v2038_v52 = vmul.f32 %v2013_v1, %v1926_v53  ;;  %v2527_v7 = vpop.permute.xlu2 %2526  ;;  %v2686_v0 = vsel %vm2683_vm14, %v2669_v37, %v2525_v19  ;;  %v1538_v53 = vpop.f32.mrf.mxu2  ;;  %v5271_v1 = vld [vmem:[#allocation3 + $0x71] sm:$0xff] }
 0x34c   : > { %v2717_v39 = vsel %vm2709_vm15, %v2686_v0, 0 }
 0x34d   : > { %2058 = vst.msk [vmem:[#allocation3 + $0x79] sm:$0xff] %vm1001_vm2, %v2038_v52  ;;  %v5219_v30 = vand.u32 4294901760, %v2717_v39 }
 0x34f   : > { %2436 = vrot.lane.b32.xlu1 %v5224_v60, %s3694_s26  ;;  %v2800_v38 = vsub.f32 %v2717_v39, %v5219_v30  ;;  %2982 = vmatmul.f32.gmra.mxu3 %v5219_v30 }
 0x350   : > { %2162 = vrot.lane.b32.xlu0 %v5116_v15, %s3684_s12 }
 0x351   : > { %2336 = vrot.lane.b32.xlu2 %v5116_v15, %s3689_s17  ;;  %v2377_v48 = vpop.permute.xlu1 %2376  ;;  %3084 = vmatmul.f32.gmra.mxu0 %v2800_v38  ;;  %v2801_v8 = vand.u32 4294901760, %v2800_v38  ;;  %v1859_v15 = vmul.f32 %v5243_v56, %v1835_v40  ;;  %v5289_v40 = vld [vmem:[#allocation3 + $0x69] sm:$0xff] }
 0x352   : > { %v5236_v19 = vpop.permute.xlu0 %2152  ;;  %v2636_v4 = vsel %vm2632_vm11, %v2619_v17, %v2377_v48 }
 0x353   : > { %v2429_v58 = vpop.permute.xlu2 %2428  ;;  %3193 = vmatmul.f32.gmra.mxu1 %v2801_v8  ;;  %v2802_v6 = vsub.f32 %v2800_v38, %v2801_v8  ;;  %v2653_v57 = vsel %vm2649_vm12, %v2636_v4, %v2427_v35  ;;  %v1879_v46 = vadd.f32 %v5195_v44, %v1859_v15  ;;  %v2572_v35 = vsel %vm1001_vm2, %v4738_v50, %v5170_v63 }
 0x354   : > { %v2588_v37 = vsel %vm1035_vm4, %v2572_v35, %v5188_v11  ;;  %v1752_v11 = vpop.f32.mrf.mxu0 }
 0x355   : > { %v2803_v59 = vand.u32 4294901760, %v2802_v6  ;;  %v1911_v45 = vmul.f32 0.01, %v1879_v46  ;;  %vm1895_vm3 = vcmp.gt.f32.partialorder %v1879_v46, 0.0  ;;  %v2604_v9 = vsel %vm1069_vm6, %v2588_v37, %v5153_v24  ;;  %v1838_v24 = vpop.f32.mrf.mxu1 }
 0x357   : > { %2160 = vrot.lane.b32.xlu1 %v5054_v54, %s3684_s12  ;;  %2804 = vmatmul.f32.gmra.mxu2 %v2803_v59  ;;  %v1432_v54 = vadd.f32 %v4685_v3, %v4691_v2  ;;  %v1656_v2 = vpop.f32.mrf.mxu3  ;;  %v1927_v63 = vsel %vm1895_vm3, %v1879_v46, %v1911_v45 }
 0x358   : > { %2340 = vrot.lane.b32.xlu0 %v5249_v21, %s3689_s17 }
 0x359   : > { %2486 = vrot.lane.b32.xlu2 %v5249_v21, %s3695_s29  ;;  %v2477_v5 = vpop.permute.xlu1 %2476  ;;  %v1539_v51 = vadd.f32 %v1538_v53, %v1432_v54 }
 0x35a   : > { %v5258_v55 = vpop.permute.xlu0 %2330  ;;  %v2670_v36 = vsel %vm2666_vm13, %v2653_v57, %v2477_v5  ;;  %v5306_v57 = vld [vmem:[#allocation3 + $0x6a] sm:$0xff] }
 0x35b   : > { %v2529_v31 = vpop.permute.xlu2 %2528  ;;  %v2687_v27 = vsel %vm2683_vm14, %v2670_v36, %v2527_v7  ;;  %v1657_v41 = vadd.f32 %v1656_v2, %v1539_v51 }
 0x35c   : > { %v2720_v43 = vsel %vm2709_vm15, %v2687_v27, 0 }
 0x35d   : > { %v5266_v26 = vand.u32 4294901760, %v2720_v43  ;;  %v1753_v28 = vadd.f32 %v1752_v11, %v1657_v41 }
 0x35f   : > { %2338 = vrot.lane.b32.xlu1 %v5101_v22, %s3689_s17  ;;  %v2808_v3 = vsub.f32 %v2720_v43, %v5266_v26  ;;  %2986 = vmatmul.f32.gmra.mxu3 %v5266_v26  ;;  %v1839_v48 = vadd.f32 %v1838_v24, %v1753_v28  ;;  %v2573_v43 = vsel %vm1001_vm2, %v4781_v14, %v5236_v19 }
 0x360   : > { %2490 = vrot.lane.b32.xlu0 %v5271_v1, %s3695_s29 }
 0x361   : > { %2224 = vrot.lane.b32.xlu2 %v5086_v32, %s3688_s16  ;;  %v2379_v50 = vpop.permute.xlu1 %2378  ;;  %3089 = vmatmul.f32.gmra.mxu0 %v2808_v3  ;;  %v2809_v7 = vand.u32 4294901760, %v2808_v3  ;;  %v2620_v32 = vsel %vm1103_vm8, %v2604_v9, %v5190_v13  ;;  %v1860_v4 = vmul.f32 %v5243_v56, %v1839_v48 }
 0x362   : > { %v2018_v52 = vpop.permute.xlu0 %2017  ;;  %v2637_v25 = vsel %vm2632_vm11, %v2620_v32, %v2379_v50  ;;  %v5336_v50 = vld [vmem:[#allocation3 + $0x72] sm:$0xff] }
 0x363   : > { %v2039_v0 = vmul.f32 %v2018_v52, %v1927_v63  ;;  %v2281_v39 = vpop.permute.xlu2 %2280  ;;  %3199 = vmatmul.f32.gmra.mxu1 %v2809_v7  ;;  %v2810_v10 = vsub.f32 %v2808_v3, %v2809_v7  ;;  %v2654_v13 = vsel %vm2649_vm12, %v2637_v25, %v2429_v58  ;;  %v1880_v36 = vadd.f32 %v5195_v44, %v1860_v4  ;;  %v5338_v63 = vld [vmem:[#allocation3 + $0x70] sm:$0xff] }
 0x365   : > { %2059 = vst.msk [vmem:[#allocation3 + $0x81] sm:$0xff] %vm1001_vm2, %v2039_v0  ;;  %v2811_v38 = vand.u32 4294901760, %v2810_v10  ;;  %v1912_v27 = vmul.f32 0.01, %v1880_v36  ;;  %vm1896_vm5 = vcmp.gt.f32.partialorder %v1880_v36, 0.0 }
 0x367   : > { %2488 = vrot.lane.b32.xlu1 %v5289_v40, %s3695_s29  ;;  %2812 = vmatmul.f32.gmra.mxu2 %v2811_v38  ;;  %v1928_v51 = vsel %vm1896_vm5, %v1880_v36, %v1912_v27 }
 0x368   : > { %2228 = vrot.lane.b32.xlu0 %v5173_v34, %s3688_s16 }
 0x369   : > { %2388 = vrot.lane.b32.xlu2 %v5173_v34, %s3693_s25  ;;  %v2479_v8 = vpop.permute.xlu1 %2478 }
 0x36a   : > { %v5298_v61 = vpop.permute.xlu0 %2154  ;;  %v2671_v6 = vsel %vm2666_vm13, %v2654_v13, %v2479_v8 }
 0x36b   : > { %v2431_v15 = vpop.permute.xlu2 %2430  ;;  %v2688_v17 = vsel %vm2683_vm14, %v2671_v6, %v2529_v31  ;;  %v2574_v13 = vsel %vm1001_vm2, %v4823_v49, %v5298_v61  ;;  %v5365_v6 = vld [vmem:[#allocation3 + $0x78] sm:$0xff] }
 0x36c   : > { %v2723_v59 = vsel %vm2709_vm15, %v2688_v17, 0  ;;  %v5322_v45 = vld [vmem:[#allocation3 + $0x7a] sm:$0xff] }
 0x36d   : > { %v5304_v5 = vand.u32 4294901760, %v2723_v59  ;;  %v5352_v10 = vld [vmem:[#allocation3 + $0x80] sm:$0xff] }
 0x36f   : > { %2226 = vrot.lane.b32.xlu1 %v5142_v16, %s3688_s16  ;;  %v2816_v34 = vsub.f32 %v2723_v59, %v5304_v5  ;;  %2990 = vmatmul.f32.gmra.mxu3 %v5304_v5 }
 0x370   : > { %2392 = vrot.lane.b32.xlu0 %v5306_v57, %s3693_s25 }
 0x371   : > { %2538 = vrot.lane.b32.xlu2 %v5306_v57, %s3696_s30  ;;  %v2217_v58 = vpop.permute.xlu1 %2216  ;;  %3094 = vmatmul.f32.gmra.mxu0 %v2816_v34  ;;  %v2817_v56 = vand.u32 4294901760, %v2816_v34 }
 0x372   : > { %v5316_v46 = vpop.permute.xlu0 %2332  ;;  %v2589_v53 = vsel %vm1035_vm4, %v2573_v43, %v2217_v58 }
 0x373   : > { %v2531_v31 = vpop.permute.xlu2 %2530  ;;  %3205 = vmatmul.f32.gmra.mxu1 %v2817_v56  ;;  %v2818_v16 = vsub.f32 %v2816_v34, %v2817_v56  ;;  %v2605_v14 = vsel %vm1069_vm6, %v2589_v53, %v2281_v39  ;;  %v5378_v34 = vld [vmem:[#allocation3 + $0x79] sm:$0xff] }
 0x374   : > { %v2621_v3 = vsel %vm1103_vm8, %v2605_v14, %v5258_v55 }
 0x375   : > { %v2819_v54 = vand.u32 4294901760, %v2818_v16 }
 0x377   : > { %2390 = vrot.lane.b32.xlu1 %v5160_v33, %s3693_s25  ;;  %2820 = vmatmul.f32.gmra.mxu2 %v2819_v54 }
 0x378   : > { %2542 = vrot.lane.b32.xlu0 %v5322_v45, %s3696_s30 }
 0x379   : > { %2290 = vrot.lane.b32.xlu2 %v5224_v60, %s3686_s14  ;;  %v2381_v44 = vpop.permute.xlu1 %2380 }
 0x37a   : > { %v2023_v35 = vpop.permute.xlu0 %2022  ;;  %v2638_v2 = vsel %vm2632_vm11, %v2621_v3, %v2381_v44  ;;  %v5405_v3 = vld [vmem:[#allocation3 + $0x81] sm:$0xff] }
 0x37b   : > { %v2040_v19 = vmul.f32 %v2023_v35, %v1928_v51  ;;  %v2283_v37 = vpop.permute.xlu2 %2282  ;;  %v2655_v7 = vsel %vm2649_vm12, %v2638_v2, %v2431_v15 }
 0x37d   : > { %2060 = vst.msk [vmem:[#allocation3 + $0x89] sm:$0xff] %vm1001_vm2, %v2040_v19 }
 0x37f   : > { %2540 = vrot.lane.b32.xlu1 %v5336_v50, %s3696_s30 }
 0x380   : > { %2294 = vrot.lane.b32.xlu0 %v5338_v63, %s3686_s14 }
 0x381   : > { %2440 = vrot.lane.b32.xlu2 %v5338_v63, %s3694_s26  ;;  %v2481_v52 = vpop.permute.xlu1 %2480 }
 0x382   : > { %v2157_v11 = vpop.permute.xlu0 %2156  ;;  %v2672_v55 = vsel %vm2666_vm13, %v2655_v7, %v2481_v52 }
 0x383   : > { %v2433_v9 = vpop.permute.xlu2 %2432  ;;  %v2689_v0 = vsel %vm2683_vm14, %v2672_v55, %v2531_v31  ;;  %v2575_v51 = vsel %vm1001_vm2, %v4861_v47, %v2157_v11 }
 0x384   : > { %v2726_v39 = vsel %vm2709_vm15, %v2689_v0, 0 }
 0x385   : > { %v5350_v41 = vand.u32 4294901760, %v2726_v39 }
 0x387   : > { %2292 = vrot.lane.b32.xlu1 %v5205_v20, %s3686_s14  ;;  %v2824_v28 = vsub.f32 %v2726_v39, %v5350_v41  ;;  %2994 = vmatmul.f32.gmra.mxu3 %v5350_v41 }
 0x388   : > { %2444 = vrot.lane.b32.xlu0 %v5352_v10, %s3694_s26 }
 0x389   : > { %2164 = vrot.lane.b32.xlu2 %v5101_v22, %s3684_s12  ;;  %v2219_v32 = vpop.permute.xlu1 %2218  ;;  %3099 = vmatmul.f32.gmra.mxu0 %v2824_v28  ;;  %v2825_v25 = vand.u32 4294901760, %v2824_v28 }
 0x38a   : > { %v2335_v38 = vpop.permute.xlu0 %2334  ;;  %v2590_v15 = vsel %vm1035_vm4, %v2574_v13, %v2219_v32 }
 0x38b   : > { %v2533_v24 = vpop.permute.xlu2 %2532  ;;  %3211 = vmatmul.f32.gmra.mxu1 %v2825_v25  ;;  %v2826_v48 = vsub.f32 %v2824_v28, %v2825_v25  ;;  %v2606_v59 = vsel %vm1069_vm6, %v2590_v15, %v2283_v37 }
 0x38c   : > { %v2622_v49 = vsel %vm1103_vm8, %v2606_v59, %v5316_v46 }
 0x38d   : > { %v2827_v8 = vand.u32 4294901760, %v2826_v48 }
 0x38f   : > { %2442 = vrot.lane.b32.xlu1 %v5365_v6, %s3694_s26  ;;  %2828 = vmatmul.f32.gmra.mxu2 %v2827_v8 }
 0x390   : > { %2168 = vrot.lane.b32.xlu0 %v5289_v40, %s3684_s12 }
 0x391   : > { %2342 = vrot.lane.b32.xlu2 %v5289_v40, %s3689_s17  ;;  %v2383_v22 = vpop.permute.xlu1 %2382 }
 0x392   : > { %v2485_v17 = vpop.permute.xlu0 %2484  ;;  %v2639_v61 = vsel %vm2632_vm11, %v2622_v49, %v2383_v22 }
 0x393   : > { %v2285_v4 = vpop.permute.xlu2 %2284  ;;  %v2656_v58 = vsel %vm2649_vm12, %v2639_v61, %v2433_v9  ;;  %v2118_v9 = vld [vmem:[#allocation3 + $0x82] sm:$0xff]  ;;  %v5438_v61 = vld [vmem:[#allocation3 + $0x8a] sm:$0xff] }
 0x397   : > { %2166 = vrot.lane.b32.xlu1 %v5249_v21, %s3684_s12  ;;  %v5395_v21 = vld [vmem:[#allocation3 + $0x89] sm:$0xff] }
 0x398   : > { %2346 = vrot.lane.b32.xlu0 %v5378_v34, %s3689_s17 }
 0x399   : > { %2492 = vrot.lane.b32.xlu2 %v5378_v34, %s3695_s29  ;;  %v2483_v40 = vpop.permute.xlu1 %2482 }
 0x39a   : > { %v2223_v56 = vpop.permute.xlu0 %2222  ;;  %v2673_v36 = vsel %vm2666_vm13, %v2656_v58, %v2483_v40  ;;  %v2115_v40 = vld [vmem:[#allocation3 + $0x88] sm:$0xff] }
 0x39b   : > { %v2435_v46 = vpop.permute.xlu2 %2434  ;;  %v2690_v31 = vsel %vm2683_vm14, %v2673_v36, %v2533_v24  ;;  %v2124_v24 = vld [vmem:[#allocation3 + $0x92] sm:$0xff] }
 0x39c   : > { %v2729_v16 = vsel %vm2709_vm15, %v2690_v31, 0 }
 0x39d   : > { %v5390_v54 = vand.u32 4294901760, %v2729_v16 }
 0x39f   : > { %2344 = vrot.lane.b32.xlu1 %v5271_v1, %s3689_s17  ;;  %2998 = vmatmul.f32.gmra.mxu3 %v5390_v54  ;;  %v2832_v27 = vsub.f32 %v2729_v16, %v5390_v54 }
 0x3a0   : > { %2496 = vrot.lane.b32.xlu0 %v5395_v21, %s3695_s29 }
 0x3a1   : > { %2230 = vrot.lane.b32.xlu2 %v5160_v33, %s3688_s16  ;;  %v2221_v43 = vpop.permute.xlu1 %2220  ;;  %3104 = vmatmul.f32.gmra.mxu0 %v2832_v27  ;;  %v2833_v44 = vand.u32 4294901760, %v2832_v27 }
 0x3a2   : > { %v2387_v53 = vpop.permute.xlu0 %2386  ;;  %v2591_v19 = vsel %vm1035_vm4, %v2575_v51, %v2221_v43 }
 0x3a3   : > { %v2159_v35 = vpop.permute.xlu2 %2158  ;;  %3217 = vmatmul.f32.gmra.mxu1 %v2833_v44  ;;  %v2834_v14 = vsub.f32 %v2832_v27, %v2833_v44  ;;  %v2607_v33 = vsel %vm1069_vm6, %v2591_v19, %v2285_v4 }
 0x3a4   : > { %v2623_v52 = vsel %vm1103_vm8, %v2607_v33, %v2335_v38 }
 0x3a5   : > { %v2835_v37 = vand.u32 4294901760, %v2834_v14 }
 0x3a7   : > { %2494 = vrot.lane.b32.xlu1 %v5405_v3, %s3695_s29  ;;  %2836 = vmatmul.f32.gmra.mxu2 %v2835_v37 }
 0x3a8   : > { %2234 = vrot.lane.b32.xlu0 %v5336_v50, %s3688_s16 }
 0x3a9   : > { %2394 = vrot.lane.b32.xlu2 %v5336_v50, %s3693_s25  ;;  %v2385_v47 = vpop.permute.xlu1 %2384 }
 0x3aa   : > { %v2537_v2 = vpop.permute.xlu0 %2536  ;;  %v2640_v11 = vsel %vm2632_vm11, %v2623_v52, %v2385_v47 }
 0x3ab   : > { %v2337_v7 = vpop.permute.xlu2 %2336  ;;  %v2657_v55 = vsel %vm2649_vm12, %v2640_v11, %v2435_v46 }
 0x3ac   : > { %v2674_v50 = vsel %vm2666_vm13, %v2657_v55, %v2485_v17 }
 0x3af   : > { %2232 = vrot.lane.b32.xlu1 %v5306_v57, %s3688_s16  ;;  %v2576_v57 = vsel %vm1001_vm2, %v4989_v23, %v2159_v35  ;;  %v2121_v35 = vld [vmem:[#allocation3 + $0x98] sm:$0xff] }
 0x3b0   : > { %2398 = vrot.lane.b32.xlu0 %v2118_v9, %s3693_s25  ;;  %v2592_v22 = vsel %vm1035_vm4, %v2576_v57, %v2223_v56 }
 0x3b1   : > { %2544 = vrot.lane.b32.xlu2 %v2118_v9, %s3696_s30  ;;  %v2535_v0 = vpop.permute.xlu1 %2534 }
 0x3b2   : > { %v2289_v39 = vpop.permute.xlu0 %2288  ;;  %v2691_v28 = vsel %vm2683_vm14, %v2674_v50, %v2535_v0 }
 0x3b3   : > { %v2487_v32 = vpop.permute.xlu2 %2486  ;;  %v2732_v38 = vsel %vm2709_vm15, %v2691_v28, 0 }
 0x3b4   : > { %v5424_v25 = vand.u32 4294901760, %v2732_v38 }
 0x3b6   : > { %v2840_v48 = vsub.f32 %v2732_v38, %v5424_v25  ;;  %3002 = vmatmul.f32.gmra.mxu3 %v5424_v25 }
 0x3b7   : > { %2396 = vrot.lane.b32.xlu1 %v5322_v45, %s3693_s25 }
 0x3b8   : > { %2548 = vrot.lane.b32.xlu0 %v2124_v24, %s3696_s30  ;;  %v2841_v8 = vand.u32 4294901760, %v2840_v48  ;;  %3109 = vmatmul.f32.gmra.mxu0 %v2840_v48 }
 0x3b9   : > { %2296 = vrot.lane.b32.xlu2 %v5365_v6, %s3686_s14  ;;  %v2287_v13 = vpop.permute.xlu1 %2286 }
 0x3ba   : > { %v2439_v15 = vpop.permute.xlu0 %2438  ;;  %3223 = vmatmul.f32.gmra.mxu1 %v2841_v8  ;;  %v2842_v59 = vsub.f32 %v2840_v48, %v2841_v8  ;;  %v2608_v4 = vsel %vm1069_vm6, %v2592_v22, %v2287_v13 }
 0x3bb   : > { %v2225_v17 = vpop.permute.xlu2 %2224  ;;  %v2624_v49 = vsel %vm1103_vm8, %v2608_v4, %v2337_v7 }
 0x3bc   : > { %v2843_v23 = vand.u32 4294901760, %v2842_v59  ;;  %v2641_v56 = vsel %vm2632_vm11, %v2624_v49, %v2387_v53  ;;  %v2123_v59 = vld [vmem:[#allocation3 + $0x99] sm:$0xff] }
 0x3be   : > { %2844 = vmatmul.f32.gmra.mxu2 %v2843_v23 }
 0x3bf   : > { %2546 = vrot.lane.b32.xlu1 %v5438_v61, %s3696_s30 }
 0x3c0   : > { %2300 = vrot.lane.b32.xlu0 %v2115_v40, %s3686_s14 }
 0x3c1   : > { %2446 = vrot.lane.b32.xlu2 %v2115_v40, %s3694_s26  ;;  %v2437_v58 = vpop.permute.xlu1 %2436 }
 0x3c2   : > { %v2163_v36 = vpop.permute.xlu0 %2162  ;;  %v2658_v46 = vsel %vm2649_vm12, %v2641_v56, %v2437_v58  ;;  %v2125_v58 = vld [vmem:[#allocation3 + $0x9a] sm:$0xff] }
 0x3c3   : > { %v2389_v31 = vpop.permute.xlu2 %2388  ;;  %v2675_v16 = vsel %vm2666_vm13, %v2658_v46, %v2487_v32 }
 0x3c4   : > { %v2692_v27 = vsel %vm2683_vm14, %v2675_v16, %v2537_v2 }
 0x3c5   : > { %v2735_v43 = vsel %vm2709_vm15, %v2692_v27, 0 }
 0x3c6   : > { %v5449_v44 = vand.u32 4294901760, %v2735_v43 }
 0x3c7   : > { %2298 = vrot.lane.b32.xlu1 %v5352_v10, %s3686_s14  ;;  %v2120_v10 = vld [vmem:[#allocation3 + $0x90] sm:$0xff] }
 0x3c8   : > { %3006 = vmatmul.f32.gmra.mxu3 %v5449_v44  ;;  %v2848_v53 = vsub.f32 %v2735_v43, %v5449_v44  ;;  %2450 = vrot.lane.b32.xlu0 %v2121_v35, %s3694_s26 }
 0x3c9   : > { %2170 = vrot.lane.b32.xlu2 %v5271_v1, %s3684_s12  ;;  %v2161_v51 = vpop.permute.xlu1 %2160 }
 0x3ca   : > { %3114 = vmatmul.f32.gmra.mxu0 %v2848_v53  ;;  %v2849_v19 = vand.u32 4294901760, %v2848_v53  ;;  %v2341_v37 = vpop.permute.xlu0 %2340  ;;  %v2577_v33 = vsel %vm1001_vm2, %v5062_v29, %v2161_v51  ;;  %v2122_v29 = vld [vmem:[#allocation3 + $0x91] sm:$0xff] }
 0x3cb   : > { %v2539_v14 = vpop.permute.xlu2 %2538  ;;  %v2593_v1 = vsel %vm1035_vm4, %v2577_v33, %v2225_v17 }
 0x3cc   : > { %3229 = vmatmul.f32.gmra.mxu1 %v2849_v19  ;;  %v2850_v47 = vsub.f32 %v2848_v53, %v2849_v19  ;;  %v2609_v7 = vsel %vm1069_vm6, %v2593_v1, %v2289_v39 }
 0x3ce   : > { %v2851_v2 = vand.u32 4294901760, %v2850_v47 }
 0x3cf   : > { %2448 = vrot.lane.b32.xlu1 %v2120_v10, %s3694_s26 }
 0x3d0   : > { %2852 = vmatmul.f32.gmra.mxu2 %v2851_v2 }
 0x3d1   : > { %2348 = vrot.lane.b32.xlu2 %v5405_v3, %s3689_s17  ;;  %v2339_v52 = vpop.permute.xlu1 %2338 }
 0x3d2   : > { %v2625_v55 = vsel %vm1103_vm8, %v2609_v7, %v2339_v52  ;;  %v2491_v9 = vpop.permute.xlu0 %2490 }
 0x3d3   : > { %v2291_v11 = vpop.permute.xlu2 %2290  ;;  %v2642_v0 = vsel %vm2632_vm11, %v2625_v55, %v2389_v31 }
 0x3d4   : > { %v2659_v28 = vsel %vm2649_vm12, %v2642_v0, %v2439_v15  ;;  %v2578_v15 = vsel %vm1001_vm2, %v5122_v12, %v2163_v36 }
 0x3d7   : > { %2172 = vrot.lane.b32.xlu1 %v5378_v34, %s3684_s12 }
 0x3d9   : > { %2498 = vrot.lane.b32.xlu2 %v2122_v29, %s3695_s29  ;;  %v2489_v50 = vpop.permute.xlu1 %2488 }
 0x3da   : > { %v2676_v3 = vsel %vm2666_vm13, %v2659_v28, %v2489_v50  ;;  %v2229_v48 = vpop.permute.xlu0 %2228 }
 0x3db   : > { %v2441_v32 = vpop.permute.xlu2 %2440  ;;  %v2693_v39 = vsel %vm2683_vm14, %v2676_v3, %v2539_v14 }
 0x3dc   : > { %v2738_v38 = vsel %vm2709_vm15, %v2693_v39, 0 }
 0x3dd   : > { %v5474_v24 = vand.u32 4294901760, %v2738_v38 }
 0x3df   : > { %3010 = vmatmul.f32.gmra.mxu3 %v5474_v24  ;;  %2350 = vrot.lane.b32.xlu1 %v5395_v21, %s3689_s17  ;;  %v2856_v34 = vsub.f32 %v2738_v38, %v5474_v24 }
 0x3e1   : > { %2236 = vrot.lane.b32.xlu2 %v5322_v45, %s3688_s16  ;;  %v2227_v57 = vpop.permute.xlu1 %2226  ;;  %3119 = vmatmul.f32.gmra.mxu0 %v2856_v34  ;;  %v2857_v8 = vand.u32 4294901760, %v2856_v34 }
 0x3e2   : > { %v2594_v17 = vsel %vm1035_vm4, %v2578_v15, %v2227_v57  ;;  %v2393_v45 = vpop.permute.xlu0 %2392  ;;  %v5517_v15 = vpop.f32.mrf.mxu3 }
 0x3e3   : > { %v2165_v13 = vpop.permute.xlu2 %2164  ;;  %3235 = vmatmul.f32.gmra.mxu1 %v2857_v8  ;;  %v2858_v22 = vsub.f32 %v2856_v34, %v2857_v8  ;;  %v2610_v21 = vsel %vm1069_vm6, %v2594_v17, %v2291_v11  ;;  %v5520_v17 = vpop.f32.mrf.mxu2 }
 0x3e4   : > { %v2626_v49 = vsel %vm1103_vm8, %v2610_v21, %v2341_v37  ;;  %v2579_v53 = vsel %vm1001_vm2, %v5175_v42, %v2165_v13 }
 0x3e5   : > { %v2859_v4 = vand.u32 4294901760, %v2858_v22  ;;  %v2595_v19 = vsel %vm1035_vm4, %v2579_v53, %v2229_v48 }
 0x3e7   : > { %2860 = vmatmul.f32.gmra.mxu2 %v2859_v4  ;;  %2500 = vrot.lane.b32.xlu1 %v2123_v59, %s3695_s29 }
 0x3e9   : > { %2400 = vrot.lane.b32.xlu2 %v5438_v61, %s3693_s25  ;;  %v2391_v23 = vpop.permute.xlu1 %2390  ;;  %s3642_s25 = sshll.u32 %s5761_s28, 7 }
 0x3ea   : > { %v2643_v12 = vsel %vm2632_vm11, %v2626_v49, %v2391_v23  ;;  %v2543_v27 = vpop.permute.xlu0 %2542  ;;  %v5525_v23 = vpop.f32.mrf.mxu3 }
 0x3eb   : > { %v2343_v40 = vpop.permute.xlu2 %2342  ;;  %v2660_v56 = vsel %vm2649_vm12, %v2643_v12, %v2441_v32 }
 0x3ec   : > { %v2677_v46 = vsel %vm2666_vm13, %v2660_v56, %v2491_v9 }
 0x3f1   : > { %2550 = vrot.lane.b32.xlu2 %v2125_v58, %s3696_s30  ;;  %v2541_v36 = vpop.permute.xlu1 %2540  ;;  %s5666_s30 = scalar_lea.vmem %s5759_s8, %s3642_s25 }
 0x3f2   : > { %v2694_v31 = vsel %vm2683_vm14, %v2677_v46, %v2541_v36  ;;  %v2295_v2 = vpop.permute.xlu0 %2294 }
 0x3f3   : > { %v2493_v16 = vpop.permute.xlu2 %2492  ;;  %v2741_v61 = vsel %vm2709_vm15, %v2694_v31, 0 }
 0x3f4   : > { %v5496_v43 = vand.u32 4294901760, %v2741_v61 }
 0x3f6   : > { %v2864_v35 = vsub.f32 %v2741_v61, %v5496_v43  ;;  %3014 = vmatmul.f32.gmra.mxu3 %v5496_v43  ;;  %v5536_v61 = vpop.f32.mrf.mxu3 }
 0x3f8   : > { %3124 = vmatmul.f32.gmra.mxu0 %v2864_v35  ;;  %v2865_v51 = vand.u32 4294901760, %v2864_v35 }
 0x3f9   : > { %v2293_v14 = vpop.permute.xlu1 %2292 }
 0x3fa   : > { %3241 = vmatmul.f32.gmra.mxu1 %v2865_v51  ;;  %v2866_v33 = vsub.f32 %v2864_v35, %v2865_v51  ;;  %v2611_v47 = vsel %vm1069_vm6, %v2595_v19, %v2293_v14  ;;  %v2445_v50 = vpop.permute.xlu0 %2444 }
 0x3fb   : > { %v2231_v37 = vpop.permute.xlu2 %2230  ;;  %v2627_v1 = vsel %vm1103_vm8, %v2611_v47, %v2343_v40  ;;  %v5528_v40 = vpop.f32.mrf.mxu2 }
 0x3fc   : > { %v2867_v10 = vand.u32 4294901760, %v2866_v33  ;;  %v2644_v7 = vsel %vm2632_vm11, %v2627_v1, %v2393_v45 }
 0x3fe   : > { %2868 = vmatmul.f32.gmra.mxu2 %v2867_v10 }
 0x401   : > { %v2443_v52 = vpop.permute.xlu1 %2442 }
 0x402   : > { %v2661_v42 = vsel %vm2649_vm12, %v2644_v7, %v2443_v52  ;;  %v2169_v8 = vpop.permute.xlu0 %2168 }
 0x403   : > { %v2395_v11 = vpop.permute.xlu2 %2394  ;;  %v2678_v55 = vsel %vm2666_vm13, %v2661_v42, %v2493_v16  ;;  %v5538_v35 = vpop.f32.mrf.mxu2  ;;  %v2581_v53 = vsel %vm1001_vm2, %v5205_v20, %v2169_v8 }
 0x404   : > { %v2695_v9 = vsel %vm2683_vm14, %v2678_v55, %v2543_v27 }
 0x405   : > { %v2744_v29 = vsel %vm2709_vm15, %v2695_v9, 0 }
 0x406   : > { %v5510_v0 = vand.u32 4294901760, %v2744_v29 }
 0x408   : > { %3018 = vmatmul.f32.gmra.mxu3 %v5510_v0  ;;  %v2872_v28 = vsub.f32 %v2744_v29, %v5510_v0 }
 0x409   : > { %v2167_v3 = vpop.permute.xlu1 %2166 }
 0x40a   : > { %3129 = vmatmul.f32.gmra.mxu0 %v2872_v28  ;;  %v2873_v39 = vand.u32 4294901760, %v2872_v28  ;;  %v2580_v38 = vsel %vm1001_vm2, %v5224_v60, %v2167_v3  ;;  %v2347_v12 = vpop.permute.xlu0 %2346 }
 0x40b   : > { %v2545_v32 = vpop.permute.xlu2 %2544  ;;  %v2596_v57 = vsel %vm1035_vm4, %v2580_v38, %v2231_v37  ;;  %v5547_v52 = vpop.f32.mrf.mxu2 }
 0x40c   : > { %3247 = vmatmul.f32.gmra.mxu1 %v2873_v39  ;;  %v2874_v48 = vsub.f32 %v2872_v28, %v2873_v39  ;;  %v2612_v22 = vsel %vm1069_vm6, %v2596_v57, %v2295_v2  ;;  %v5544_v2 = vpop.f32.mrf.mxu3 }
 0x40e   : > { %v2875_v34 = vand.u32 4294901760, %v2874_v48 }
 0x410   : > { %2876 = vmatmul.f32.gmra.mxu2 %v2875_v34 }
 0x411   : > { %v2345_v13 = vpop.permute.xlu1 %2344 }
 0x412   : > { %v2628_v59 = vsel %vm1103_vm8, %v2612_v22, %v2345_v13  ;;  %v2497_v19 = vpop.permute.xlu0 %2496 }
 0x413   : > { %v2297_v4 = vpop.permute.xlu2 %2296  ;;  %v2645_v21 = vsel %vm2632_vm11, %v2628_v59, %v2395_v11  ;;  %v5555_v28 = vpop.f32.mrf.mxu2 }
 0x414   : > { %v2662_v45 = vsel %vm2649_vm12, %v2645_v21, %v2445_v50  ;;  %v5552_v9 = vpop.f32.mrf.mxu3 }
 0x419   : > { %v2495_v60 = vpop.permute.xlu1 %2494 }
 0x41a   : > { %v2679_v49 = vsel %vm2666_vm13, %v2662_v45, %v2495_v60  ;;  %v2235_v42 = vpop.permute.xlu0 %2234 }
 0x41b   : > { %v2696_v58 = vsel %vm2683_vm14, %v2679_v49, %v2545_v32  ;;  %v2447_v46 = vpop.permute.xlu2 %2446  ;;  %v5567_v59 = vpop.f32.mrf.mxu2 }
 0x41c   : > { %v2747_v56 = vsel %vm2709_vm15, %v2696_v58, 0  ;;  %v5564_v8 = vpop.f32.mrf.mxu3 }
 0x41d   : > { %v5532_v36 = vand.u32 4294901760, %v2747_v56 }
 0x41f   : > { %3022 = vmatmul.f32.gmra.mxu3 %v5532_v36  ;;  %v2880_v31 = vsub.f32 %v2747_v56, %v5532_v36 }
 0x421   : > { %v2233_v16 = vpop.permute.xlu1 %2232  ;;  %3134 = vmatmul.f32.gmra.mxu0 %v2880_v31  ;;  %v2881_v27 = vand.u32 4294901760, %v2880_v31 }
 0x422   : > { %v2597_v14 = vsel %vm1035_vm4, %v2581_v53, %v2233_v16  ;;  %v2399_v34 = vpop.permute.xlu0 %2398 }
 0x423   : > { %3253 = vmatmul.f32.gmra.mxu1 %v2881_v27  ;;  %v2882_v51 = vsub.f32 %v2880_v31, %v2881_v27  ;;  %v2613_v33 = vsel %vm1069_vm6, %v2597_v14, %v2297_v4  ;;  %v2171_v47 = vpop.permute.xlu2 %2170 }
 0x424   : > { %v2629_v1 = vsel %vm1103_vm8, %v2613_v33, %v2347_v12  ;;  %v2582_v38 = vsel %vm1001_vm2, %v5338_v63, %v2171_v47  ;;  %v5572_v12 = vpop.f32.mrf.mxu3 }
 0x425   : > { %v2883_v37 = vand.u32 4294901760, %v2882_v51  ;;  %v2598_v13 = vsel %vm1035_vm4, %v2582_v38, %v2235_v42 }
 0x427   : > { %2884 = vmatmul.f32.gmra.mxu2 %v2883_v37 }
 0x429   : > { %v2397_v10 = vpop.permute.xlu1 %2396 }
 0x42a   : > { %v2646_v7 = vsel %vm2632_vm11, %v2629_v1, %v2397_v10  ;;  %v2549_v56 = vpop.permute.xlu0 %2548 }
 0x42b   : > { %v2663_v20 = vsel %vm2649_vm12, %v2646_v7, %v2447_v46  ;;  %v2349_v29 = vpop.permute.xlu2 %2348  ;;  %v5575_v46 = vpop.f32.mrf.mxu2 }
 0x42c   : > { %v2680_v55 = vsel %vm2666_vm13, %v2663_v20, %v2497_v19 }
 0x431   : > { %v2547_v11 = vpop.permute.xlu1 %2546 }
 0x432   : > { %v2697_v50 = vsel %vm2683_vm14, %v2680_v55, %v2547_v11  ;;  %v2301_v7 = vpop.permute.xlu0 %2300 }
 0x433   : > { %v2750_v3 = vsel %vm2709_vm15, %v2697_v50, 0  ;;  %v2499_v21 = vpop.permute.xlu2 %2498 }
 0x434   : > { %v5558_v32 = vand.u32 4294901760, %v2750_v3 }
 0x436   : > { %v2888_v39 = vsub.f32 %v2750_v3, %v5558_v32  ;;  %3026 = vmatmul.f32.gmra.mxu3 %v5558_v32 }
 0x438   : > { %3139 = vmatmul.f32.gmra.mxu0 %v2888_v39  ;;  %v2889_v48 = vand.u32 4294901760, %v2888_v39 }
 0x439   : > { %v2299_v57 = vpop.permute.xlu1 %2298  ;;  %v5584_v33 = vpop.f32.mrf.mxu3 }
 0x43a   : > { %3259 = vmatmul.f32.gmra.mxu1 %v2889_v48  ;;  %v2890_v22 = vsub.f32 %v2888_v39, %v2889_v48  ;;  %v2614_v4 = vsel %vm1069_vm6, %v2598_v13, %v2299_v57  ;;  %v2451_v48 = vpop.permute.xlu0 %2450 }
 0x43b   : > { %v2630_v45 = vsel %vm1103_vm8, %v2614_v4, %v2349_v29  ;;  %v2237_v53 = vpop.permute.xlu2 %2236 }
 0x43c   : > { %v2891_v60 = vand.u32 4294901760, %v2890_v22  ;;  %v2647_v49 = vsel %vm2632_vm11, %v2630_v45, %v2399_v34 }
 0x43e   : > { %2892 = vmatmul.f32.gmra.mxu2 %v2891_v60 }
 0x441   : > { %v2449_v63 = vpop.permute.xlu1 %2448  ;;  %v5586_v47 = vpop.f32.mrf.mxu2 }
 0x442   : > { %v2664_v58 = vsel %vm2649_vm12, %v2647_v49, %v2449_v63 }
 0x443   : > { %v2681_v31 = vsel %vm2666_vm13, %v2664_v58, %v2499_v21  ;;  %v2401_v11 = vpop.permute.xlu2 %2400 }
 0x444   : > { %v2698_v16 = vsel %vm2683_vm14, %v2681_v31, %v2549_v56 }
 0x445   : > { %v2753_v27 = vsel %vm2709_vm15, %v2698_v16, 0 }
 0x446   : > { %v5580_v51 = vand.u32 4294901760, %v2753_v27 }
 0x448   : > { %3030 = vmatmul.f32.gmra.mxu3 %v5580_v51  ;;  %v2896_v14 = vsub.f32 %v2753_v27, %v5580_v51 }
 0x449   : > { %v2173_v19 = vpop.permute.xlu1 %2172 }
 0x44a   : > { %3144 = vmatmul.f32.gmra.mxu0 %v2896_v14  ;;  %v2897_v37 = vand.u32 4294901760, %v2896_v14  ;;  %v2583_v10 = vsel %vm1001_vm2, %v5365_v6, %v2173_v19 }
 0x44b   : > { %v2599_v42 = vsel %vm1035_vm4, %v2583_v10, %v2237_v53  ;;  %v3007_v50 = vpop.f32.mrf.mxu3  ;;  %v2551_v34 = vpop.permute.xlu2 %2550 }
 0x44c   : > { %3265 = vmatmul.f32.gmra.mxu1 %v2897_v37  ;;  %v2898_v1 = vsub.f32 %v2896_v14, %v2897_v37  ;;  %v2615_v29 = vsel %vm1069_vm6, %v2599_v42, %v2301_v7  ;;  %v3075_v7 = vpop.f32.mrf.mxu0  ;;  %v3182_v42 = vpop.f32.mrf.mxu1 }
 0x44e   : > { %v2899_v20 = vand.u32 4294901760, %v2898_v1 }
 0x450   : > { %2900 = vmatmul.f32.gmra.mxu2 %v2899_v20 }
 0x451   : > { %v2351_v55 = vpop.permute.xlu1 %2350 }
 0x452   : > { %v2631_v3 = vsel %vm1103_vm8, %v2615_v29, %v2351_v55 }
 0x453   : > { %v2853_v39 = vpop.f32.mrf.mxu2  ;;  %v2648_v6 = vsel %vm2632_vm11, %v2631_v3, %v2401_v11 }
 0x454   : > { %v5593_v38 = vadd.f32 %v3007_v50, %v2853_v39  ;;  %v2665_v57 = vsel %vm2649_vm12, %v2648_v6, %v2451_v48  ;;  %v5651_v50 = vld [vmem:[%s5757_s6] ss:$0 sm:$0xff] }
 0x455   : > { %v5656_v39 = vld [vmem:[%s5758_s7] ss:$0 sm:$0xff] }
 0x459   : > { %v2501_v13 = vpop.permute.xlu1 %2500 }
 0x45a   : > { %v2682_v22 = vsel %vm2666_vm13, %v2665_v57, %v2501_v13 }
 0x45b   : > { %v2699_v4 = vsel %vm2683_vm14, %v2682_v22, %v2551_v34 }
 0x45c   : > { %v2756_v21 = vsel %vm2709_vm15, %v2699_v4, 0 }
 0x45d   : > { %v2903_v60 = vand.u32 4294901760, %v2756_v21 }
 0x45f   : > { %v2904_v45 = vsub.f32 %v2756_v21, %v2903_v60  ;;  %3034 = vmatmul.f32.gmra.mxu3 %v2903_v60 }
 0x461   : > { %3149 = vmatmul.f32.gmra.mxu0 %v2904_v45  ;;  %v2905_v63 = vand.u32 4294901760, %v2904_v45 }
 0x462   : > { %v3011_v56 = vpop.f32.mrf.mxu3 }
 0x463   : > { %3271 = vmatmul.f32.gmra.mxu1 %v2905_v63  ;;  %v2906_v49 = vsub.f32 %v2904_v45, %v2905_v63 }
 0x465   : > { %v2907_v58 = vand.u32 4294901760, %v2906_v49  ;;  %v2988_v49 = vadd.f32 %v5544_v2, %v5547_v52  ;;  %v2992_v2 = vadd.f32 %v5552_v9, %v5555_v28  ;;  %v2996_v9 = vadd.f32 %v5564_v8, %v5567_v59 }
 0x466   : > { %v3000_v8 = vadd.f32 %v5572_v12, %v5575_v46  ;;  %v3004_v12 = vadd.f32 %v5584_v33, %v5586_v47 }
 0x467   : > { %2908 = vmatmul.f32.gmra.mxu2 %v2907_v58  ;;  %3409 = vmatmul.f32.vlgmr.msra.gmra.mxu3 %v5099_v18 }
 0x46a   : > { %v2861_v31 = vpop.f32.mrf.mxu2 }
 0x46b   : > { %v5601_v16 = vadd.f32 %v3011_v56, %v2861_v31 }
 0x46f   : > { %3319 = vmatmul.f32.vlgmr.msra.gmra.mxu2 %v5099_v18  ;;  %3413 = vmatmul.f32.gmra.mxu3 %v5158_v62 }
 0x477   : > { %3323 = vmatmul.f32.gmra.mxu2 %v5158_v62  ;;  %3417 = vmatmul.f32.gmra.mxu3 %v5219_v30 }
 0x479   : > { %v3015_v27 = vpop.f32.mrf.mxu3 }
 0x47f   : > { %3327 = vmatmul.f32.gmra.mxu2 %v5219_v30  ;;  %3421 = vmatmul.f32.gmra.mxu3 %v5266_v26 }
 0x481   : > { %v2869_v53 = vpop.f32.mrf.mxu2 }
 0x482   : > { %v5609_v14 = vadd.f32 %v3015_v27, %v2869_v53 }
 0x487   : > { %3331 = vmatmul.f32.gmra.mxu2 %v5266_v26  ;;  %3425 = vmatmul.f32.gmra.mxu3 %v5304_v5 }
 0x48b   : > { %v3019_v18 = vpop.f32.mrf.mxu3 }
 0x48f   : > { %3335 = vmatmul.f32.gmra.mxu2 %v5304_v5  ;;  %3429 = vmatmul.f32.gmra.mxu3 %v5350_v41 }
 0x493   : > { %v2877_v62 = vpop.f32.mrf.mxu2 }
 0x494   : > { %v5615_v19 = vadd.f32 %v3019_v18, %v2877_v62 }
 0x497   : > { %3339 = vmatmul.f32.gmra.mxu2 %v5350_v41  ;;  %3433 = vmatmul.f32.gmra.mxu3 %v5390_v54 }
 0x49f   : > { %3343 = vmatmul.f32.gmra.mxu2 %v5390_v54  ;;  %3437 = vmatmul.f32.gmra.mxu3 %v5424_v25 }
 0x4a2   : > { %v3023_v30 = vpop.f32.mrf.mxu3 }
 0x4a7   : > { %3347 = vmatmul.f32.gmra.mxu2 %v5424_v25  ;;  %3441 = vmatmul.f32.gmra.mxu3 %v5449_v44 }
 0x4aa   : > { %v2885_v26 = vpop.f32.mrf.mxu2 }
 0x4ab   : > { %v5623_v5 = vadd.f32 %v3023_v30, %v2885_v26 }
 0x4af   : > { %3351 = vmatmul.f32.gmra.mxu2 %v5449_v44  ;;  %3445 = vmatmul.f32.gmra.mxu3 %v5474_v24 }
 0x4b7   : > { %3355 = vmatmul.f32.gmra.mxu2 %v5474_v24  ;;  %3449 = vmatmul.f32.gmra.mxu3 %v5496_v43 }
 0x4b9   : > { %v3027_v41 = vpop.f32.mrf.mxu3 }
 0x4bf   : > { %3359 = vmatmul.f32.gmra.mxu2 %v5496_v43  ;;  %3453 = vmatmul.f32.gmra.mxu3 %v5510_v0 }
 0x4c1   : > { %v2893_v54 = vpop.f32.mrf.mxu2 }
 0x4c2   : > { %v5631_v25 = vadd.f32 %v3027_v41, %v2893_v54 }
 0x4c7   : > { %3363 = vmatmul.f32.gmra.mxu2 %v5510_v0  ;;  %3457 = vmatmul.f32.gmra.mxu3 %v5532_v36  ;;  %v2976_v0 = vadd.f32 %v5517_v15, %v5520_v17  ;;  %v3080_v15 = vpop.f32.mrf.mxu0 }
 0x4c9   : > { %v3076_v20 = vadd.f32 %v3075_v7, %v2976_v0 }
 0x4cb   : > { %v3031_v44 = vpop.f32.mrf.mxu3  ;;  %v3183_v11 = vadd.f32 %v3182_v42, %v3076_v20 }
 0x4cf   : > { %3367 = vmatmul.f32.gmra.mxu2 %v5532_v36  ;;  %3461 = vmatmul.f32.gmra.mxu3 %v5558_v32  ;;  %v3085_v21 = vpop.f32.mrf.mxu0 }
 0x4d3   : > { %v2901_v24 = vpop.f32.mrf.mxu2 }
 0x4d4   : > { %v5637_v37 = vadd.f32 %v3031_v44, %v2901_v24 }
 0x4d7   : > { %3371 = vmatmul.f32.gmra.mxu2 %v5558_v32  ;;  %3465 = vmatmul.f32.gmra.mxu3 %v5580_v51  ;;  %v2980_v32 = vadd.f32 %v5525_v23, %v5528_v40  ;;  %v3188_v23 = vpop.f32.mrf.mxu1  ;;  %v2984_v40 = vadd.f32 %v5536_v61, %v5538_v35  ;;  %v3090_v62 = vpop.f32.mrf.mxu0 }
 0x4d8   : > { %v3091_v30 = vadd.f32 %v3090_v62, %v2988_v49 }
 0x4d9   : > { %v3081_v17 = vadd.f32 %v3080_v15, %v2980_v32 }
 0x4db   : > { %v3189_v34 = vadd.f32 %v3188_v23, %v3081_v17 }
 0x4df   : > { %3375 = vmatmul.f32.gmra.mxu2 %v5580_v51  ;;  %3469 = vmatmul.f32.gmra.mxu3 %v2903_v60  ;;  %v3194_v35 = vpop.f32.mrf.mxu1  ;;  %v3095_v7 = vpop.f32.mrf.mxu0 }
 0x4e0   : > { %v3096_v20 = vadd.f32 %v3095_v7, %v2992_v2 }
 0x4e2   : > { %v3035_v43 = vpop.f32.mrf.mxu3 }
 0x4e7   : > { %3379 = vmatmul.f32.gmra.mxu2 %v2903_v60  ;;  %v3086_v60 = vadd.f32 %v3085_v21, %v2984_v40  ;;  %v3200_v44 = vpop.f32.mrf.mxu1 }
 0x4e8   : > { %v3201_v24 = vadd.f32 %v3200_v44, %v3091_v30 }
 0x4e9   : > { %v3195_v56 = vadd.f32 %v3194_v35, %v3086_v60 }
 0x4ea   : > { %v2909_v10 = vpop.f32.mrf.mxu2  ;;  %v3410_v36 = vpop.f32.mrf.mxu3 }
 0x4eb   : > { %v5644_v1 = vadd.f32 %v3035_v43, %v2909_v10 }
 0x4f2   : > { %v3320_v55 = vpop.f32.mrf.mxu2  ;;  %v3414_v51 = vpop.f32.mrf.mxu3 }
 0x4f3   : > { %v3321_v29 = vadd.f32 %v3320_v55, %v3183_v11  ;;  %v3206_v55 = vpop.f32.mrf.mxu1 }
 0x4f5   : > { %v3411_v3 = vadd.f32 %v3410_v36, %v3321_v29 }
 0x4f7   : > { %v3477_v48 = vmul.f32 %v5651_v50, %v3411_v3 }
 0x4f9   : > { %v3497_v6 = vadd.f32 %v5656_v39, %v3477_v48  ;;  %v3100_v48 = vpop.f32.mrf.mxu0 }
 0x4fa   : > { %v3324_v57 = vpop.f32.mrf.mxu2  ;;  %v3418_v13 = vpop.f32.mrf.mxu3  ;;  %v3101_v23 = vadd.f32 %v3100_v48, %v2996_v9 }
 0x4fb   : > { %vm3513_vm4 = vcmp.gt.f32.partialorder %v3497_v6, 0.0  ;;  %v3529_v22 = vmul.f32 0.01, %v3497_v6  ;;  %v3325_v4 = vadd.f32 %v3324_v57, %v3189_v34  ;;  %v3212_v57 = vpop.f32.mrf.mxu1 }
 0x4fd   : > { %v3545_v45 = vsel %vm3513_vm4, %v3497_v6, %v3529_v22  ;;  %v3415_v63 = vadd.f32 %v3414_v51, %v3325_v4  ;;  %v3207_v51 = vadd.f32 %v3206_v55, %v3096_v20 }
 0x4fe   : > { %3561 = vst.msk [vmem:[%s5666_s30] sm:$0xff] %vm1001_vm2, %v3545_v45 }
 0x4ff   : > { %v3478_v61 = vmul.f32 %v5651_v50, %v3415_v63 }
 0x501   : > { %v3498_v58 = vadd.f32 %v5656_v39, %v3478_v61  ;;  %v3105_v45 = vpop.f32.mrf.mxu0 }
 0x502   : > { %v3328_v31 = vpop.f32.mrf.mxu2  ;;  %v3422_v27 = vpop.f32.mrf.mxu3  ;;  %v3106_v63 = vadd.f32 %v3105_v45, %v3000_v8 }
 0x503   : > { %vm3514_vm6 = vcmp.gt.f32.partialorder %v3498_v58, 0.0  ;;  %v3530_v53 = vmul.f32 0.01, %v3498_v58  ;;  %v3329_v18 = vadd.f32 %v3328_v31, %v3195_v56 }
 0x505   : > { %v3546_v26 = vsel %vm3514_vm6, %v3498_v58, %v3530_v53  ;;  %v3419_v41 = vadd.f32 %v3418_v13, %v3329_v18  ;;  %v3213_v13 = vadd.f32 %v3212_v57, %v3101_v23  ;;  %v3218_v58 = vpop.f32.mrf.mxu1 }
 0x506   : > { %3562 = vst.msk [vmem:[%s5666_s30 + $0x8] sm:$0xff] %vm1001_vm2, %v3546_v26  ;;  %v3219_v56 = vadd.f32 %v3218_v58, %v3106_v63 }
 0x507   : > { %v3479_v54 = vmul.f32 %v5651_v50, %v3419_v41 }
 0x509   : > { %v3499_v52 = vadd.f32 %v5656_v39, %v3479_v54  ;;  %v3110_v62 = vpop.f32.mrf.mxu0 }
 0x50a   : > { %v3332_v43 = vpop.f32.mrf.mxu2  ;;  %v3426_v0 = vpop.f32.mrf.mxu3  ;;  %v3111_v30 = vadd.f32 %v3110_v62, %v3004_v12 }
 0x50b   : > { %vm3515_vm8 = vcmp.gt.f32.partialorder %v3499_v52, 0.0  ;;  %v3531_v10 = vmul.f32 0.01, %v3499_v52  ;;  %v3333_v36 = vadd.f32 %v3332_v43, %v3201_v24 }
 0x50d   : > { %v3547_v42 = vsel %vm3515_vm8, %v3499_v52, %v3531_v10  ;;  %v3423_v32 = vadd.f32 %v3422_v27, %v3333_v36  ;;  %v3224_v44 = vpop.f32.mrf.mxu1 }
 0x50e   : > { %3563 = vst.msk [vmem:[%s5666_s30 + $0x10] sm:$0xff] %vm1001_vm2, %v3547_v42  ;;  %v3225_v47 = vadd.f32 %v3224_v44, %v3111_v30 }
 0x50f   : > { %v3480_v11 = vmul.f32 %v5651_v50, %v3423_v32 }
 0x511   : > { %v3500_v28 = vadd.f32 %v5656_v39, %v3480_v11 }
 0x512   : > { %v3336_v29 = vpop.f32.mrf.mxu2  ;;  %v3430_v15 = vpop.f32.mrf.mxu3 }
 0x513   : > { %vm3516_vm7 = vcmp.gt.f32.partialorder %v3500_v28, 0.0  ;;  %v3532_v17 = vmul.f32 0.01, %v3500_v28  ;;  %v3337_v3 = vadd.f32 %v3336_v29, %v3207_v51 }
 0x515   : > { %v3548_v40 = vsel %vm3516_vm7, %v3500_v28, %v3532_v17  ;;  %v3427_v6 = vadd.f32 %v3426_v0, %v3337_v3  ;;  %v3115_v0 = vpop.f32.mrf.mxu0  ;;  %v3230_v42 = vpop.f32.mrf.mxu1 }
 0x516   : > { %3564 = vst.msk [vmem:[%s5666_s30 + $0x18] sm:$0xff] %vm1001_vm2, %v3548_v40  ;;  %v3116_v10 = vadd.f32 %v3115_v0, %v5593_v38 }
 0x517   : > { %v3481_v34 = vmul.f32 %v5651_v50, %v3427_v6 }
 0x518   : > { %v3231_v11 = vadd.f32 %v3230_v42, %v3116_v10 }
 0x519   : > { %v3501_v59 = vadd.f32 %v5656_v39, %v3481_v34 }
 0x51a   : > { %v3340_v22 = vpop.f32.mrf.mxu2  ;;  %v3434_v4 = vpop.f32.mrf.mxu3 }
 0x51b   : > { %vm3517_vm9 = vcmp.gt.f32.partialorder %v3501_v59, 0.0  ;;  %v3533_v21 = vmul.f32 0.01, %v3501_v59  ;;  %v3341_v60 = vadd.f32 %v3340_v22, %v3213_v13 }
 0x51d   : > { %v3549_v61 = vsel %vm3517_vm9, %v3501_v59, %v3533_v21  ;;  %v3431_v35 = vadd.f32 %v3430_v15, %v3341_v60  ;;  %v3120_v29 = vpop.f32.mrf.mxu0  ;;  %v3236_v48 = vpop.f32.mrf.mxu1 }
 0x51e   : > { %3565 = vst.msk [vmem:[%s5666_s30 + $0x20] sm:$0xff] %vm1001_vm2, %v3549_v61  ;;  %v3121_v15 = vadd.f32 %v3120_v29, %v5601_v16 }
 0x51f   : > { %v3482_v49 = vmul.f32 %v5651_v50, %v3431_v35 }
 0x520   : > { %v3237_v40 = vadd.f32 %v3236_v48, %v3121_v15 }
 0x521   : > { %v3502_v46 = vadd.f32 %v5656_v39, %v3482_v49 }
 0x522   : > { %v3344_v31 = vpop.f32.mrf.mxu2  ;;  %v3438_v27 = vpop.f32.mrf.mxu3 }
 0x523   : > { %vm3518_vm10 = vcmp.gt.f32.partialorder %v3502_v46, 0.0  ;;  %v3534_v53 = vmul.f32 0.01, %v3502_v46  ;;  %v3345_v18 = vadd.f32 %v3344_v31, %v3219_v56 }
 0x525   : > { %v3550_v26 = vsel %vm3518_vm10, %v3502_v46, %v3534_v53  ;;  %v3435_v41 = vadd.f32 %v3434_v4, %v3345_v18  ;;  %v3125_v59 = vpop.f32.mrf.mxu0  ;;  %v3242_v21 = vpop.f32.mrf.mxu1 }
 0x526   : > { %3566 = vst.msk [vmem:[%s5666_s30 + $0x28] sm:$0xff] %vm1001_vm2, %v3550_v26  ;;  %v3126_v13 = vadd.f32 %v3125_v59, %v5609_v14 }
 0x527   : > { %v3483_v54 = vmul.f32 %v5651_v50, %v3435_v41 }
 0x528   : > { %v3243_v45 = vadd.f32 %v3242_v21, %v3126_v13 }
 0x529   : > { %v3503_v33 = vadd.f32 %v5656_v39, %v3483_v54 }
 0x52a   : > { %v3348_v2 = vpop.f32.mrf.mxu2  ;;  %v3442_v52 = vpop.f32.mrf.mxu3 }
 0x52b   : > { %vm3519_vm11 = vcmp.gt.f32.partialorder %v3503_v33, 0.0  ;;  %v3535_v24 = vmul.f32 0.01, %v3503_v33  ;;  %v3349_v43 = vadd.f32 %v3348_v2, %v3225_v47 }
 0x52d   : > { %v3551_v36 = vsel %vm3519_vm11, %v3503_v33, %v3535_v24  ;;  %v3439_v7 = vadd.f32 %v3438_v27, %v3349_v43  ;;  %v3130_v49 = vpop.f32.mrf.mxu0  ;;  %v3248_v31 = vpop.f32.mrf.mxu1 }
 0x52e   : > { %3567 = vst.msk [vmem:[%s5666_s30 + $0x30] sm:$0xff] %vm1001_vm2, %v3551_v36  ;;  %v3131_v12 = vadd.f32 %v3130_v49, %v5615_v19 }
 0x52f   : > { %v3484_v20 = vmul.f32 %v5651_v50, %v3439_v7 }
 0x530   : > { %v3249_v53 = vadd.f32 %v3248_v31, %v3131_v12 }
 0x531   : > { %v3504_v32 = vadd.f32 %v5656_v39, %v3484_v20 }
 0x532   : > { %v3352_v55 = vpop.f32.mrf.mxu2  ;;  %v3446_v9 = vpop.f32.mrf.mxu3 }
 0x533   : > { %vm3520_vm12 = vcmp.gt.f32.partialorder %v3504_v32, 0.0  ;;  %v3536_v28 = vmul.f32 0.01, %v3504_v32  ;;  %v3353_v51 = vadd.f32 %v3352_v55, %v3231_v11 }
 0x535   : > { %v3552_v38 = vsel %vm3520_vm12, %v3504_v32, %v3536_v28  ;;  %v3443_v17 = vadd.f32 %v3442_v52, %v3353_v51  ;;  %v3135_v26 = vpop.f32.mrf.mxu0  ;;  %v3254_v47 = vpop.f32.mrf.mxu1 }
 0x536   : > { %3568 = vst.msk [vmem:[%s5666_s30 + $0x38] sm:$0xff] %vm1001_vm2, %v3552_v38  ;;  %v3136_v41 = vadd.f32 %v3135_v26, %v5623_v5 }
 0x537   : > { %v3485_v3 = vmul.f32 %v5651_v50, %v3443_v17 }
 0x538   : > { %v3255_v52 = vadd.f32 %v3254_v47, %v3136_v41 }
 0x539   : > { %v3505_v23 = vadd.f32 %v5656_v39, %v3485_v3 }
 0x53a   : > { %v3356_v6 = vpop.f32.mrf.mxu2  ;;  %v3450_v34 = vpop.f32.mrf.mxu3 }
 0x53b   : > { %vm3521_vm13 = vcmp.gt.f32.partialorder %v3505_v23, 0.0  ;;  %v3537_v57 = vmul.f32 0.01, %v3505_v23  ;;  %v3357_v8 = vadd.f32 %v3356_v6, %v3237_v40 }
 0x53d   : > { %v3553_v16 = vsel %vm3521_vm13, %v3505_v23, %v3537_v57  ;;  %v3447_v22 = vadd.f32 %v3446_v9, %v3357_v8  ;;  %v3140_v10 = vpop.f32.mrf.mxu0  ;;  %v3260_v42 = vpop.f32.mrf.mxu1 }
 0x53e   : > { %3569 = vst.msk [vmem:[%s5666_s30 + $0x40] sm:$0xff] %vm1001_vm2, %v3553_v16  ;;  %v3141_v36 = vadd.f32 %v3140_v10, %v5631_v25 }
 0x53f   : > { %v3486_v4 = vmul.f32 %v5651_v50, %v3447_v22 }
 0x540   : > { %v3261_v55 = vadd.f32 %v3260_v42, %v3141_v36 }
 0x541   : > { %v3506_v60 = vadd.f32 %v5656_v39, %v3486_v4 }
 0x542   : > { %v3360_v63 = vpop.f32.mrf.mxu2  ;;  %v3454_v58 = vpop.f32.mrf.mxu3 }
 0x543   : > { %vm3522_vm14 = vcmp.gt.f32.partialorder %v3506_v60, 0.0  ;;  %v3538_v61 = vmul.f32 0.01, %v3506_v60  ;;  %v3361_v35 = vadd.f32 %v3360_v63, %v3243_v45 }
 0x545   : > { %v3554_v14 = vsel %vm3522_vm14, %v3506_v60, %v3538_v61  ;;  %v3451_v46 = vadd.f32 %v3450_v34, %v3361_v35  ;;  %v3145_v29 = vpop.f32.mrf.mxu0  ;;  %v3266_v3 = vpop.f32.mrf.mxu1 }
 0x546   : > { %3570 = vst.msk [vmem:[%s5666_s30 + $0x48] sm:$0xff] %vm1001_vm2, %v3554_v14  ;;  %v3146_v15 = vadd.f32 %v3145_v29, %v5637_v37 }
 0x547   : > { %v3487_v56 = vmul.f32 %v5651_v50, %v3451_v46 }
 0x548   : > { %v3267_v23 = vadd.f32 %v3266_v3, %v3146_v15 }
 0x549   : > { %v3507_v27 = vadd.f32 %v5656_v39, %v3487_v56 }
 0x54a   : > { %v3364_v18 = vpop.f32.mrf.mxu2  ;;  %v3458_v44 = vpop.f32.mrf.mxu3 }
 0x54b   : > { %vm3523_vm15 = vcmp.gt.f32.partialorder %v3507_v27, 0.0  ;;  %v3539_v62 = vmul.f32 0.01, %v3507_v27  ;;  %v3365_v30 = vadd.f32 %v3364_v18, %v3249_v53 }
 0x54d   : > { %v3555_v54 = vsel %vm3523_vm15, %v3507_v27, %v3539_v62  ;;  %v3455_v19 = vadd.f32 %v3454_v58, %v3365_v30  ;;  %v3150_v8 = vpop.f32.mrf.mxu0  ;;  %v3272_v22 = vpop.f32.mrf.mxu1 }
 0x54e   : > { %3571 = vst.msk [vmem:[%s5666_s30 + $0x50] sm:$0xff] %vm1001_vm2, %v3555_v54  ;;  %v3151_v37 = vadd.f32 %v3150_v8, %v5644_v1 }
 0x54f   : > { %v3488_v33 = vmul.f32 %v5651_v50, %v3455_v19 }
 0x550   : > { %v3273_v21 = vadd.f32 %v3272_v22, %v3151_v37 }
 0x551   : > { %v3508_v2 = vadd.f32 %v5656_v39, %v3488_v33 }
 0x552   : > { %v3368_v24 = vpop.f32.mrf.mxu2  ;;  %v3462_v32 = vpop.f32.mrf.mxu3 }
 0x553   : > { %vm3524_vm0 = vcmp.gt.f32.partialorder %v3508_v2, 0.0  ;;  %v3540_v43 = vmul.f32 0.01, %v3508_v2  ;;  %v3369_v0 = vadd.f32 %v3368_v24, %v3255_v52 }
 0x555   : > { %v3556_v5 = vsel %vm3524_vm0, %v3508_v2, %v3540_v43  ;;  %v3459_v7 = vadd.f32 %v3458_v44, %v3369_v0 }
 0x556   : > { %3572 = vst.msk [vmem:[%s5666_s30 + $0x58] sm:$0xff] %vm1001_vm2, %v3556_v5 }
 0x557   : > { %v3489_v20 = vmul.f32 %v5651_v50, %v3459_v7 }
 0x559   : > { %v3509_v11 = vadd.f32 %v5656_v39, %v3489_v20 }
 0x55a   : > { %v3372_v9 = vpop.f32.mrf.mxu2  ;;  %v3466_v40 = vpop.f32.mrf.mxu3 }
 0x55b   : > { %vm3525_vm1 = vcmp.gt.f32.partialorder %v3509_v11, 0.0  ;;  %v3541_v28 = vmul.f32 0.01, %v3509_v11  ;;  %v3373_v51 = vadd.f32 %v3372_v9, %v3261_v55 }
 0x55d   : > { %v3557_v25 = vsel %vm3525_vm1, %v3509_v11, %v3541_v28  ;;  %v3463_v38 = vadd.f32 %v3462_v32, %v3373_v51 }
 0x55e   : > { %3573 = vst.msk [vmem:[%s5666_s30 + $0x60] sm:$0xff] %vm1001_vm2, %v3557_v25 }
 0x55f   : > { %v3490_v17 = vmul.f32 %v5651_v50, %v3463_v38 }
 0x561   : > { %v3510_v48 = vadd.f32 %v5656_v39, %v3490_v17 }
 0x562   : > { %v3376_v6 = vpop.f32.mrf.mxu2  ;;  %v3470_v61 = vpop.f32.mrf.mxu3 }
 0x563   : > { %vm3526_vm3 = vcmp.gt.f32.partialorder %v3510_v48, 0.0  ;;  %v3542_v34 = vmul.f32 0.01, %v3510_v48  ;;  %v3377_v57 = vadd.f32 %v3376_v6, %v3267_v23 }
 0x565   : > { %v3558_v59 = vsel %vm3526_vm3, %v3510_v48, %v3542_v34  ;;  %v3467_v13 = vadd.f32 %v3466_v40, %v3377_v57 }
 0x566   : > { %3574 = vst.msk [vmem:[%s5666_s30 + $0x68] sm:$0xff] %vm1001_vm2, %v3558_v59 }
 0x567   : > { %v3491_v16 = vmul.f32 %v5651_v50, %v3467_v13 }
 0x569   : > { %v3511_v4 = vadd.f32 %v5656_v39, %v3491_v16 }
 0x56a   : > { %v3380_v60 = vpop.f32.mrf.mxu2 }
 0x56b   : > { %vm3527_vm5 = vcmp.gt.f32.partialorder %v3511_v4, 0.0  ;;  %v3543_v45 = vmul.f32 0.01, %v3511_v4  ;;  %v3381_v63 = vadd.f32 %v3380_v60, %v3273_v21 }
 0x56d   : > { %v3559_v35 = vsel %vm3527_vm5, %v3511_v4, %v3543_v45  ;;  %v3471_v49 = vadd.f32 %v3470_v61, %v3381_v63 }
 0x56e   : > { %3575 = vst.msk [vmem:[%s5666_s30 + $0x70] sm:$0xff] %vm1001_vm2, %v3559_v35 }
 0x56f   : > { %v3492_v1 = vmul.f32 %v5651_v50, %v3471_v49 }
 0x571   : > { %v3512_v58 = vadd.f32 %v5656_v39, %v3492_v1 }
 0x573   : > { %vm3528_vm4 = vcmp.gt.f32.partialorder %v3512_v58, 0.0  ;;  %v3544_v12 = vmul.f32 0.01, %v3512_v58 }
 0x575   : > { %v3560_v14 = vsel %vm3528_vm4, %v3512_v58, %v3544_v12 }
 0x576   : > { %3576 = vst.msk [vmem:[%s5666_s30 + $0x78] sm:$0xff] %vm1001_vm2, %v3560_v14 }
 0x577 PF: > { %s18_s27 = sadd.s32 1, %s3681_s27  }
 0x578   : > { %p15_p4 = scmp.ge.s32.totalorder %s18_s27, 4  }
 0x57a   :  { %17 = sbr.rel (!%p15_p4) target bundleno = 1 (0x1), region = 82 }

</bundles_post_ra>
